<compile_context>
chip_gen: v5e
topology: v5e:2x2
jax: 0.10.0
libtpu: 0.0.40
codegen_flags: <defaults>
</compile_context>

<pallas_src>
import functools

import jax
import jax.numpy as jnp
from jax import lax
from jax.experimental import pallas as pl
from jax.experimental.pallas import tpu as pltpu

BLOCK_SIZE = 256       # module's max sequence length
N_EMBED = 384          # hardcoded in the PyTorch module
NUM_HEADS = 6
HEAD_SIZE = N_EMBED // NUM_HEADS   # 64


# ---------------------------------------------------------------------------
# Fused kernel: QKV projection (all heads) + causal attention + output proj
# for a block of Bb batch elements.
# ---------------------------------------------------------------------------
def _mha_fused_kernel(x_ref, wqkv_ref, wproj_ref, bproj_ref, mask_ref, o_ref,
                      *, num_heads, head_size):
    Bb, T, C = x_ref.shape
    H, hs = num_heads, head_size
    Hh = H * hs
    BbT = Bb * T

    # --- fused QKV projection for all heads / all batch rows in the block ---
    # (Bb*T, C) @ (C, 3*H*hs), f32 accumulation on the MXU.
    x2 = x_ref[...].reshape(BbT, C).astype(jnp.bfloat16)
    qkv = jnp.dot(x2, wqkv_ref[...], preferred_element_type=jnp.float32)
    # Only consumed as bf16 matmul operands below -> single cast, then slice.
    qkv = qkv.astype(jnp.bfloat16).reshape(Bb, T, 3 * Hh)

    # Additive causal mask (0 / -inf), hoisted broadcast over the batch block.
    mask = jnp.broadcast_to(mask_ref[...], (Bb, T, T))

    # Accumulate the output projection per head; seed with the bias.
    y = jnp.broadcast_to(bproj_ref[...], (BbT, C))          # (Bb*T, C) f32

    for h in range(H):                                       # static unroll, H=6
        q = qkv[:, :, h * hs:(h + 1) * hs]                   # (Bb, T, hs) bf16
        k = qkv[:, :, Hh + h * hs:Hh + (h + 1) * hs]
        v = qkv[:, :, 2 * Hh + h * hs:2 * Hh + (h + 1) * hs]

        # Scale (n_embed**-0.5) was folded into the Q weights at pack time.
        # Contract last dims directly -> no k transpose/relayout.
        scores = jnp.einsum('btd,bsd->bts', q, k,
                            preferred_element_type=jnp.float32)   # (Bb, T, T)
        scores = scores + mask

        # Softmax in f32 (safe: causal mask leaves >=1 unmasked entry per row).
        m = jnp.max(scores, axis=-1, keepdims=True)
        e = jnp.exp(scores - m)
        inv_l = pl.reciprocal(jnp.sum(e, axis=-1, keepdims=True), approx=True)
        wei = (e * inv_l).astype(jnp.bfloat16)
        # dropout(wei): identity in eval mode

        head_out = jnp.einsum('bts,bsd->btd', wei, v,
                              preferred_element_type=jnp.float32)  # (Bb, T, hs)

        # Accumulate this head's contribution to the output projection:
        # concat(heads) @ W_proj == sum_h head_out_h @ W_proj[h*hs:(h+1)*hs, :]
        y = y + jnp.dot(head_out.reshape(BbT, hs).astype(jnp.bfloat16),
                        wproj_ref[h * hs:(h + 1) * hs, :],
                        preferred_element_type=jnp.float32)

    # Lane-dense (Bb, T, C=384) store.
    o_ref[...] = y.reshape(Bb, T, C).astype(o_ref.dtype)
    # final dropout: identity in eval mode


# ---------------------------------------------------------------------------
# One-time parameter packing (do this at init time, NOT per forward call).
# ---------------------------------------------------------------------------
def pack_mha_params(params):
    """params = (wq, wk, wv, w_proj, b_proj); wq/wk/wv: (H, C, hs) input-major,
       w_proj: (C, C) input-major, b_proj: (C,)."""
    wq, wk, wv, w_proj, b_proj = params
    H, C, hs = wq.shape

    def stack(w):                                   # (H, C, hs) -> (C, H*hs)
        return jnp.transpose(w, (1, 0, 2)).reshape(C, H * hs)

    # Fold the module's C**-0.5 score scale (C = n_embed) into the Q weights.
    scale = float(C) ** -0.5
    w_qkv = jnp.concatenate([stack(wq) * scale, stack(wk), stack(wv)],
                            axis=-1).astype(jnp.bfloat16)        # (C, 3*H*hs)
    return {
        "w_qkv": w_qkv,
        "w_proj": w_proj.astype(jnp.bfloat16),                   # (C, C)
        "b_proj": b_proj.reshape(1, C).astype(jnp.float32),      # (1, C)
        "num_heads": H,
        "head_size": hs,
    }


def _pick_batch_block(B, T, target_rows=256, max_rows=1024):
    """Batch elements per grid step: aim for >=256 matmul rows (MXU width on
    v6e/v7x) while keeping rows/step bounded; must divide B exactly."""
    bb = max(1, min(B, max(1, target_rows // max(T, 1))))
    while bb > 1 and bb * T > max_rows:
        bb -= 1
    while B % bb:        # shrink to a divisor of B (terminates at 1)
        bb -= 1
    return bb


# ---------------------------------------------------------------------------
# Wrapper
# ---------------------------------------------------------------------------
def multi_head_attention(x, packed):
    """x: (B, T, C); packed = pack_mha_params(params)."""
    B, T, C = x.shape
    H, hs = packed["num_heads"], packed["head_size"]
    w_qkv, w_proj, b_proj = packed["w_qkv"], packed["w_proj"], packed["b_proj"]

    Bb = _pick_batch_block(B, T)
    n_blocks = B // Bb
    # NOTE(v7x): with very small B this can yield a grid of length 1 (one TC
    # idle); at these tiny demo shapes the kernel is sub-microsecond either way.

    # Precomputed additive causal mask (0 where col<=row, -inf elsewhere).
    # T <= block_size = 256 so the full (T,T) tile fits comfortably in VMEM.
    row = jnp.arange(T, dtype=jnp.int32)[:, None]
    col = jnp.arange(T, dtype=jnp.int32)[None, :]
    mask = jnp.where(col <= row, 0.0, -jnp.inf).astype(jnp.float32)   # (T, T)

    kernel = functools.partial(_mha_fused_kernel, num_heads=H, head_size=hs)

    return pl.pallas_call(
        kernel,
        out_shape=jax.ShapeDtypeStruct((B, T, C), x.dtype),
        grid_spec=pltpu.PrefetchScalarGridSpec(
            num_scalar_prefetch=0,
            grid=(n_blocks,),                                    # Bb batches / step
            in_specs=[
                pl.BlockSpec((Bb, T, C), lambda b: (b, 0, 0)),       # x block
                pl.BlockSpec((C, 3 * H * hs), lambda b: (0, 0)),     # W_qkv, resident
                pl.BlockSpec((C, C), lambda b: (0, 0)),              # W_proj, resident
                pl.BlockSpec((1, C), lambda b: (0, 0)),              # bias, resident
                pl.BlockSpec((T, T), lambda b: (0, 0)),              # causal mask, resident
            ],
            out_specs=pl.BlockSpec((Bb, T, C), lambda b: (b, 0, 0)),
        ),
        compiler_params=pltpu.CompilerParams(
            dimension_semantics=("parallel",),
            # Real footprint is a few MiB; keep well under v7x's 64 MiB VMEM.
            vmem_limit_bytes=16 * 1024 * 1024,
        ),
    )(x, w_qkv, w_proj, b_proj, mask)


# ---------------------------------------------------------------------------
# Pure-JAX reference (f32 throughout, mirrors the PyTorch module, eval mode)
# ---------------------------------------------------------------------------
def _reference(x, params):
    wq, wk, wv, w_proj, b_proj = params
    B, T, C = x.shape
    scale = float(C) ** -0.5
    mask = jnp.tril(jnp.ones((T, T), dtype=bool))
    outs = []
    for h in range(wq.shape[0]):
        q = x @ wq[h]
        k = x @ wk[h]
        v = x @ wv[h]
        wei = (q @ jnp.swapaxes(k, -2, -1)) * scale
        wei = jnp.where(mask, wei, -jnp.inf)
        wei = jax.nn.softmax(wei, axis=-1)
        outs.append(wei @ v)
    cat = jnp.concatenate(outs, axis=-1)
    return cat @ w_proj + b_proj


if __name__ == "__main__":
    key = jax.random.PRNGKey(0)
    kx, kq, kk, kv, kw, kb = jax.random.split(key, 6)

    B, T = 2, 8  # small sequence length (<= block_size = 256)
    x = jax.random.normal(kx, (B, T, N_EMBED), dtype=jnp.float32)

    # Deterministic parameter init (input-major weights so y = x @ W).
    scale_init = 0.02
    wq = scale_init * jax.random.normal(kq, (NUM_HEADS, N_EMBED, HEAD_SIZE), jnp.float32)
    wk = scale_init * jax.random.normal(kk, (NUM_HEADS, N_EMBED, HEAD_SIZE), jnp.float32)
    wv = scale_init * jax.random.normal(kv, (NUM_HEADS, N_EMBED, HEAD_SIZE), jnp.float32)
    w_proj = scale_init * jax.random.normal(kw, (N_EMBED, N_EMBED), jnp.float32)
    b_proj = scale_init * jax.random.normal(kb, (N_EMBED,), jnp.float32)

    params = (wq, wk, wv, w_proj, b_proj)

    # Pack once at "init" time (scale fold, head-major concat, bf16 cast).
    packed = jax.block_until_ready(
        jax.tree_util.tree_map(lambda a: a, pack_mha_params(params)))

    out = multi_head_attention(x, packed)
    out = jax.block_until_ready(out)

    ref = _reference(x, params)
    assert out.shape == (B, T, N_EMBED), out.shape
    # bf16 MXU inputs + approx reciprocal vs. f32 reference -> relaxed tolerance.
    max_err = float(jnp.max(jnp.abs(out - ref)))
    assert jnp.allclose(out, ref, atol=5e-3, rtol=5e-3), max_err

    print("KERNEL_OK")
</pallas_src>

<mosaic_0001>
module attributes {stable_mosaic.version = 11 : i64} {
  func.func @_mha_fused_kernel(%arg0: i32, %arg1: memref<2x8x384xf32, #tpu.memory_space<vmem>>, %arg2: memref<384x1152xbf16, #tpu.memory_space<vmem>>, %arg3: memref<384x384xbf16, #tpu.memory_space<vmem>>, %arg4: memref<1x384xf32, #tpu.memory_space<vmem>>, %arg5: memref<8x8xf32, #tpu.memory_space<vmem>>, %arg6: memref<2x8x384xf32, #tpu.memory_space<vmem>>) attributes {dimension_semantics = [#tpu.dimension_semantics<parallel>], iteration_bounds = array<i64: 1>, scalar_prefetch = 0 : i64, scratch_operands = 0 : i64, tpu.core_type = #tpu.core_type<tc>, window_params = [{transform_indices = @transform_0, window_bounds = array<i64: 2, 8, 384>}, {pipeline_mode = #tpu.pipeline_mode<synchronous>, transform_indices = @transform_1, window_bounds = array<i64: 384, 1152>}, {pipeline_mode = #tpu.pipeline_mode<synchronous>, transform_indices = @transform_2, window_bounds = array<i64: 384, 384>}, {pipeline_mode = #tpu.pipeline_mode<synchronous>, transform_indices = @transform_3, window_bounds = array<i64: 1, 384>}, {pipeline_mode = #tpu.pipeline_mode<synchronous>, transform_indices = @transform_4, window_bounds = array<i64: 8, 8>}, {transform_indices = @transform_5, window_bounds = array<i64: 2, 8, 384>}]} {
    %c0 = arith.constant 0 : index
    %c0_0 = arith.constant 0 : index
    %c0_1 = arith.constant 0 : index
    %0 = vector.load %arg1[%c0, %c0_0, %c0_1] : memref<2x8x384xf32, #tpu.memory_space<vmem>>, vector<2x8x384xf32>
    %1 = vector.shape_cast %0 : vector<2x8x384xf32> to vector<16x384xf32>
    %2 = arith.truncf %1 : vector<16x384xf32> to vector<16x384xbf16>
    %c0_2 = arith.constant 0 : index
    %c0_3 = arith.constant 0 : index
    %3 = vector.load %arg2[%c0_2, %c0_3] : memref<384x1152xbf16, #tpu.memory_space<vmem>>, vector<384x1152xbf16>
    %cst = arith.constant dense<0.000000e+00> : vector<16x1152xf32>
    %4 = tpu.matmul %2, %3, %cst {dimension_numbers = #tpu.dot_dimension_numbers<[1], [0], [0], [1], [0, 0, 1, 1], [], []>} : vector<16x384xbf16>, vector<384x1152xbf16>, vector<16x1152xf32> -> vector<16x1152xf32>
    %5 = arith.truncf %4 : vector<16x1152xf32> to vector<16x1152xbf16>
    %6 = vector.shape_cast %5 : vector<16x1152xbf16> to vector<2x8x1152xbf16>
    %c0_4 = arith.constant 0 : index
    %c0_5 = arith.constant 0 : index
    %7 = vector.load %arg5[%c0_4, %c0_5] : memref<8x8xf32, #tpu.memory_space<vmem>>, vector<8x8xf32>
    %8 = vector.shape_cast %7 : vector<8x8xf32> to vector<1x8x8xf32>
    %9 = vector.broadcast %8 : vector<1x8x8xf32> to vector<2x8x8xf32>
    %c0_6 = arith.constant 0 : index
    %c0_7 = arith.constant 0 : index
    %10 = vector.load %arg4[%c0_6, %c0_7] : memref<1x384xf32, #tpu.memory_space<vmem>>, vector<1x384xf32>
    %11 = vector.shape_cast %10 : vector<1x384xf32> to vector<1x384xf32>
    %12 = vector.broadcast %11 : vector<1x384xf32> to vector<16x384xf32>
    %13 = vector.extract_strided_slice %6 {offsets = [0, 0, 0], sizes = [2, 8, 64], strides = [1, 1, 1]} : vector<2x8x1152xbf16> to vector<2x8x64xbf16>
    %14 = vector.extract_strided_slice %6 {offsets = [0, 0, 384], sizes = [2, 8, 64], strides = [1, 1, 1]} : vector<2x8x1152xbf16> to vector<2x8x64xbf16>
    %15 = vector.extract_strided_slice %6 {offsets = [0, 0, 768], sizes = [2, 8, 64], strides = [1, 1, 1]} : vector<2x8x1152xbf16> to vector<2x8x64xbf16>
    "tpu.trace_start"() <{level = 10 : i32, message = "btd,bsd->bts"}> : () -> ()
    %cst_8 = arith.constant dense<0.000000e+00> : vector<2x8x8xf32>
    %16 = tpu.matmul %13, %14, %cst_8 {dimension_numbers = #tpu.dot_dimension_numbers<[2], [2], [1], [1], [0, 0, 0, 1, 1, 1], [0], [0]>} : vector<2x8x64xbf16>, vector<2x8x64xbf16>, vector<2x8x8xf32> -> vector<2x8x8xf32>
    "tpu.trace_stop"() : () -> ()
    %17 = arith.addf %16, %9 : vector<2x8x8xf32>
    %cst_9 = arith.constant dense<0xFF800000> : vector<2x8xf32>
    %18 = vector.multi_reduction <maximumf>, %17, %cst_9 [2] : vector<2x8x8xf32> to vector<2x8xf32>
    %19 = vector.shape_cast %18 : vector<2x8xf32> to vector<2x8x1xf32>
    %20 = vector.broadcast %19 : vector<2x8x1xf32> to vector<2x8x8xf32>
    %21 = arith.subf %17, %20 : vector<2x8x8xf32>
    %22 = math.exp %21 : vector<2x8x8xf32>
    %cst_10 = arith.constant dense<0.000000e+00> : vector<2x8xf32>
    %23 = vector.multi_reduction <add>, %22, %cst_10 [2] : vector<2x8x8xf32> to vector<2x8xf32>
    %24 = vector.shape_cast %23 : vector<2x8xf32> to vector<2x8x1xf32>
    %25 = tpu.reciprocal %24 {approx = true} : vector<2x8x1xf32> -> vector<2x8x1xf32>
    %26 = vector.broadcast %25 : vector<2x8x1xf32> to vector<2x8x8xf32>
    %27 = arith.mulf %22, %26 : vector<2x8x8xf32>
    %28 = arith.truncf %27 : vector<2x8x8xf32> to vector<2x8x8xbf16>
    "tpu.trace_start"() <{level = 10 : i32, message = "bts,bsd->btd"}> : () -> ()
    %cst_11 = arith.constant dense<0.000000e+00> : vector<2x8x64xf32>
    %29 = tpu.matmul %28, %15, %cst_11 {dimension_numbers = #tpu.dot_dimension_numbers<[2], [1], [1], [2], [0, 0, 0, 1, 1, 2], [0], [0]>} : vector<2x8x8xbf16>, vector<2x8x64xbf16>, vector<2x8x64xf32> -> vector<2x8x64xf32>
    "tpu.trace_stop"() : () -> ()
    %30 = vector.shape_cast %29 : vector<2x8x64xf32> to vector<16x64xf32>
    %31 = arith.truncf %30 : vector<16x64xf32> to vector<16x64xbf16>
    %c0_12 = arith.constant 0 : index
    %c0_13 = arith.constant 0 : index
    %32 = vector.load %arg3[%c0_12, %c0_13] : memref<384x384xbf16, #tpu.memory_space<vmem>>, vector<64x384xbf16>
    %cst_14 = arith.constant dense<0.000000e+00> : vector<16x384xf32>
    %33 = tpu.matmul %31, %32, %cst_14 {dimension_numbers = #tpu.dot_dimension_numbers<[1], [0], [0], [1], [0, 0, 1, 1], [], []>} : vector<16x64xbf16>, vector<64x384xbf16>, vector<16x384xf32> -> vector<16x384xf32>
    %34 = arith.addf %12, %33 : vector<16x384xf32>
    %35 = vector.extract_strided_slice %6 {offsets = [0, 0, 64], sizes = [2, 8, 64], strides = [1, 1, 1]} : vector<2x8x1152xbf16> to vector<2x8x64xbf16>
    %36 = vector.extract_strided_slice %6 {offsets = [0, 0, 448], sizes = [2, 8, 64], strides = [1, 1, 1]} : vector<2x8x1152xbf16> to vector<2x8x64xbf16>
    %37 = vector.extract_strided_slice %6 {offsets = [0, 0, 832], sizes = [2, 8, 64], strides = [1, 1, 1]} : vector<2x8x1152xbf16> to vector<2x8x64xbf16>
    "tpu.trace_start"() <{level = 10 : i32, message = "btd,bsd->bts"}> : () -> ()
    %cst_15 = arith.constant dense<0.000000e+00> : vector<2x8x8xf32>
    %38 = tpu.matmul %35, %36, %cst_15 {dimension_numbers = #tpu.dot_dimension_numbers<[2], [2], [1], [1], [0, 0, 0, 1, 1, 1], [0], [0]>} : vector<2x8x64xbf16>, vector<2x8x64xbf16>, vector<2x8x8xf32> -> vector<2x8x8xf32>
    "tpu.trace_stop"() : () -> ()
    %39 = arith.addf %38, %9 : vector<2x8x8xf32>
    %cst_16 = arith.constant dense<0xFF800000> : vector<2x8xf32>
    %40 = vector.multi_reduction <maximumf>, %39, %cst_16 [2] : vector<2x8x8xf32> to vector<2x8xf32>
    %41 = vector.shape_cast %40 : vector<2x8xf32> to vector<2x8x1xf32>
    %42 = vector.broadcast %41 : vector<2x8x1xf32> to vector<2x8x8xf32>
    %43 = arith.subf %39, %42 : vector<2x8x8xf32>
    %44 = math.exp %43 : vector<2x8x8xf32>
    %cst_17 = arith.constant dense<0.000000e+00> : vector<2x8xf32>
    %45 = vector.multi_reduction <add>, %44, %cst_17 [2] : vector<2x8x8xf32> to vector<2x8xf32>
    %46 = vector.shape_cast %45 : vector<2x8xf32> to vector<2x8x1xf32>
    %47 = tpu.reciprocal %46 {approx = true} : vector<2x8x1xf32> -> vector<2x8x1xf32>
    %48 = vector.broadcast %47 : vector<2x8x1xf32> to vector<2x8x8xf32>
    %49 = arith.mulf %44, %48 : vector<2x8x8xf32>
    %50 = arith.truncf %49 : vector<2x8x8xf32> to vector<2x8x8xbf16>
    "tpu.trace_start"() <{level = 10 : i32, message = "bts,bsd->btd"}> : () -> ()
    %cst_18 = arith.constant dense<0.000000e+00> : vector<2x8x64xf32>
    %51 = tpu.matmul %50, %37, %cst_18 {dimension_numbers = #tpu.dot_dimension_numbers<[2], [1], [1], [2], [0, 0, 0, 1, 1, 2], [0], [0]>} : vector<2x8x8xbf16>, vector<2x8x64xbf16>, vector<2x8x64xf32> -> vector<2x8x64xf32>
    "tpu.trace_stop"() : () -> ()
    %52 = vector.shape_cast %51 : vector<2x8x64xf32> to vector<16x64xf32>
    %53 = arith.truncf %52 : vector<16x64xf32> to vector<16x64xbf16>
    %c64 = arith.constant 64 : index
    %c0_19 = arith.constant 0 : index
    %54 = vector.load %arg3[%c64, %c0_19] : memref<384x384xbf16, #tpu.memory_space<vmem>>, vector<64x384xbf16>
    %cst_20 = arith.constant dense<0.000000e+00> : vector<16x384xf32>
    %55 = tpu.matmul %53, %54, %cst_20 {dimension_numbers = #tpu.dot_dimension_numbers<[1], [0], [0], [1], [0, 0, 1, 1], [], []>} : vector<16x64xbf16>, vector<64x384xbf16>, vector<16x384xf32> -> vector<16x384xf32>
    %56 = arith.addf %34, %55 : vector<16x384xf32>
    %57 = vector.extract_strided_slice %6 {offsets = [0, 0, 128], sizes = [2, 8, 64], strides = [1, 1, 1]} : vector<2x8x1152xbf16> to vector<2x8x64xbf16>
    %58 = vector.extract_strided_slice %6 {offsets = [0, 0, 512], sizes = [2, 8, 64], strides = [1, 1, 1]} : vector<2x8x1152xbf16> to vector<2x8x64xbf16>
    %59 = vector.extract_strided_slice %6 {offsets = [0, 0, 896], sizes = [2, 8, 64], strides = [1, 1, 1]} : vector<2x8x1152xbf16> to vector<2x8x64xbf16>
    "tpu.trace_start"() <{level = 10 : i32, message = "btd,bsd->bts"}> : () -> ()
    %cst_21 = arith.constant dense<0.000000e+00> : vector<2x8x8xf32>
    %60 = tpu.matmul %57, %58, %cst_21 {dimension_numbers = #tpu.dot_dimension_numbers<[2], [2], [1], [1], [0, 0, 0, 1, 1, 1], [0], [0]>} : vector<2x8x64xbf16>, vector<2x8x64xbf16>, vector<2x8x8xf32> -> vector<2x8x8xf32>
    "tpu.trace_stop"() : () -> ()
    %61 = arith.addf %60, %9 : vector<2x8x8xf32>
    %cst_22 = arith.constant dense<0xFF800000> : vector<2x8xf32>
    %62 = vector.multi_reduction <maximumf>, %61, %cst_22 [2] : vector<2x8x8xf32> to vector<2x8xf32>
    %63 = vector.shape_cast %62 : vector<2x8xf32> to vector<2x8x1xf32>
    %64 = vector.broadcast %63 : vector<2x8x1xf32> to vector<2x8x8xf32>
    %65 = arith.subf %61, %64 : vector<2x8x8xf32>
    %66 = math.exp %65 : vector<2x8x8xf32>
    %cst_23 = arith.constant dense<0.000000e+00> : vector<2x8xf32>
    %67 = vector.multi_reduction <add>, %66, %cst_23 [2] : vector<2x8x8xf32> to vector<2x8xf32>
    %68 = vector.shape_cast %67 : vector<2x8xf32> to vector<2x8x1xf32>
    %69 = tpu.reciprocal %68 {approx = true} : vector<2x8x1xf32> -> vector<2x8x1xf32>
    %70 = vector.broadcast %69 : vector<2x8x1xf32> to vector<2x8x8xf32>
    %71 = arith.mulf %66, %70 : vector<2x8x8xf32>
    %72 = arith.truncf %71 : vector<2x8x8xf32> to vector<2x8x8xbf16>
    "tpu.trace_start"() <{level = 10 : i32, message = "bts,bsd->btd"}> : () -> ()
    %cst_24 = arith.constant dense<0.000000e+00> : vector<2x8x64xf32>
    %73 = tpu.matmul %72, %59, %cst_24 {dimension_numbers = #tpu.dot_dimension_numbers<[2], [1], [1], [2], [0, 0, 0, 1, 1, 2], [0], [0]>} : vector<2x8x8xbf16>, vector<2x8x64xbf16>, vector<2x8x64xf32> -> vector<2x8x64xf32>
    "tpu.trace_stop"() : () -> ()
    %74 = vector.shape_cast %73 : vector<2x8x64xf32> to vector<16x64xf32>
    %75 = arith.truncf %74 : vector<16x64xf32> to vector<16x64xbf16>
    %c128 = arith.constant 128 : index
    %c0_25 = arith.constant 0 : index
    %76 = vector.load %arg3[%c128, %c0_25] : memref<384x384xbf16, #tpu.memory_space<vmem>>, vector<64x384xbf16>
    %cst_26 = arith.constant dense<0.000000e+00> : vector<16x384xf32>
    %77 = tpu.matmul %75, %76, %cst_26 {dimension_numbers = #tpu.dot_dimension_numbers<[1], [0], [0], [1], [0, 0, 1, 1], [], []>} : vector<16x64xbf16>, vector<64x384xbf16>, vector<16x384xf32> -> vector<16x384xf32>
    %78 = arith.addf %56, %77 : vector<16x384xf32>
    %79 = vector.extract_strided_slice %6 {offsets = [0, 0, 192], sizes = [2, 8, 64], strides = [1, 1, 1]} : vector<2x8x1152xbf16> to vector<2x8x64xbf16>
    %80 = vector.extract_strided_slice %6 {offsets = [0, 0, 576], sizes = [2, 8, 64], strides = [1, 1, 1]} : vector<2x8x1152xbf16> to vector<2x8x64xbf16>
    %81 = vector.extract_strided_slice %6 {offsets = [0, 0, 960], sizes = [2, 8, 64], strides = [1, 1, 1]} : vector<2x8x1152xbf16> to vector<2x8x64xbf16>
    "tpu.trace_start"() <{level = 10 : i32, message = "btd,bsd->bts"}> : () -> ()
    %cst_27 = arith.constant dense<0.000000e+00> : vector<2x8x8xf32>
    %82 = tpu.matmul %79, %80, %cst_27 {dimension_numbers = #tpu.dot_dimension_numbers<[2], [2], [1], [1], [0, 0, 0, 1, 1, 1], [0], [0]>} : vector<2x8x64xbf16>, vector<2x8x64xbf16>, vector<2x8x8xf32> -> vector<2x8x8xf32>
    "tpu.trace_stop"() : () -> ()
    %83 = arith.addf %82, %9 : vector<2x8x8xf32>
    %cst_28 = arith.constant dense<0xFF800000> : vector<2x8xf32>
    %84 = vector.multi_reduction <maximumf>, %83, %cst_28 [2] : vector<2x8x8xf32> to vector<2x8xf32>
    %85 = vector.shape_cast %84 : vector<2x8xf32> to vector<2x8x1xf32>
    %86 = vector.broadcast %85 : vector<2x8x1xf32> to vector<2x8x8xf32>
    %87 = arith.subf %83, %86 : vector<2x8x8xf32>
    %88 = math.exp %87 : vector<2x8x8xf32>
    %cst_29 = arith.constant dense<0.000000e+00> : vector<2x8xf32>
    %89 = vector.multi_reduction <add>, %88, %cst_29 [2] : vector<2x8x8xf32> to vector<2x8xf32>
    %90 = vector.shape_cast %89 : vector<2x8xf32> to vector<2x8x1xf32>
    %91 = tpu.reciprocal %90 {approx = true} : vector<2x8x1xf32> -> vector<2x8x1xf32>
    %92 = vector.broadcast %91 : vector<2x8x1xf32> to vector<2x8x8xf32>
    %93 = arith.mulf %88, %92 : vector<2x8x8xf32>
    %94 = arith.truncf %93 : vector<2x8x8xf32> to vector<2x8x8xbf16>
    "tpu.trace_start"() <{level = 10 : i32, message = "bts,bsd->btd"}> : () -> ()
    %cst_30 = arith.constant dense<0.000000e+00> : vector<2x8x64xf32>
    %95 = tpu.matmul %94, %81, %cst_30 {dimension_numbers = #tpu.dot_dimension_numbers<[2], [1], [1], [2], [0, 0, 0, 1, 1, 2], [0], [0]>} : vector<2x8x8xbf16>, vector<2x8x64xbf16>, vector<2x8x64xf32> -> vector<2x8x64xf32>
    "tpu.trace_stop"() : () -> ()
    %96 = vector.shape_cast %95 : vector<2x8x64xf32> to vector<16x64xf32>
    %97 = arith.truncf %96 : vector<16x64xf32> to vector<16x64xbf16>
    %c192 = arith.constant 192 : index
    %c0_31 = arith.constant 0 : index
    %98 = vector.load %arg3[%c192, %c0_31] : memref<384x384xbf16, #tpu.memory_space<vmem>>, vector<64x384xbf16>
    %cst_32 = arith.constant dense<0.000000e+00> : vector<16x384xf32>
    %99 = tpu.matmul %97, %98, %cst_32 {dimension_numbers = #tpu.dot_dimension_numbers<[1], [0], [0], [1], [0, 0, 1, 1], [], []>} : vector<16x64xbf16>, vector<64x384xbf16>, vector<16x384xf32> -> vector<16x384xf32>
    %100 = arith.addf %78, %99 : vector<16x384xf32>
    %101 = vector.extract_strided_slice %6 {offsets = [0, 0, 256], sizes = [2, 8, 64], strides = [1, 1, 1]} : vector<2x8x1152xbf16> to vector<2x8x64xbf16>
    %102 = vector.extract_strided_slice %6 {offsets = [0, 0, 640], sizes = [2, 8, 64], strides = [1, 1, 1]} : vector<2x8x1152xbf16> to vector<2x8x64xbf16>
    %103 = vector.extract_strided_slice %6 {offsets = [0, 0, 1024], sizes = [2, 8, 64], strides = [1, 1, 1]} : vector<2x8x1152xbf16> to vector<2x8x64xbf16>
    "tpu.trace_start"() <{level = 10 : i32, message = "btd,bsd->bts"}> : () -> ()
    %cst_33 = arith.constant dense<0.000000e+00> : vector<2x8x8xf32>
    %104 = tpu.matmul %101, %102, %cst_33 {dimension_numbers = #tpu.dot_dimension_numbers<[2], [2], [1], [1], [0, 0, 0, 1, 1, 1], [0], [0]>} : vector<2x8x64xbf16>, vector<2x8x64xbf16>, vector<2x8x8xf32> -> vector<2x8x8xf32>
    "tpu.trace_stop"() : () -> ()
    %105 = arith.addf %104, %9 : vector<2x8x8xf32>
    %cst_34 = arith.constant dense<0xFF800000> : vector<2x8xf32>
    %106 = vector.multi_reduction <maximumf>, %105, %cst_34 [2] : vector<2x8x8xf32> to vector<2x8xf32>
    %107 = vector.shape_cast %106 : vector<2x8xf32> to vector<2x8x1xf32>
    %108 = vector.broadcast %107 : vector<2x8x1xf32> to vector<2x8x8xf32>
    %109 = arith.subf %105, %108 : vector<2x8x8xf32>
    %110 = math.exp %109 : vector<2x8x8xf32>
    %cst_35 = arith.constant dense<0.000000e+00> : vector<2x8xf32>
    %111 = vector.multi_reduction <add>, %110, %cst_35 [2] : vector<2x8x8xf32> to vector<2x8xf32>
    %112 = vector.shape_cast %111 : vector<2x8xf32> to vector<2x8x1xf32>
    %113 = tpu.reciprocal %112 {approx = true} : vector<2x8x1xf32> -> vector<2x8x1xf32>
    %114 = vector.broadcast %113 : vector<2x8x1xf32> to vector<2x8x8xf32>
    %115 = arith.mulf %110, %114 : vector<2x8x8xf32>
    %116 = arith.truncf %115 : vector<2x8x8xf32> to vector<2x8x8xbf16>
    "tpu.trace_start"() <{level = 10 : i32, message = "bts,bsd->btd"}> : () -> ()
    %cst_36 = arith.constant dense<0.000000e+00> : vector<2x8x64xf32>
    %117 = tpu.matmul %116, %103, %cst_36 {dimension_numbers = #tpu.dot_dimension_numbers<[2], [1], [1], [2], [0, 0, 0, 1, 1, 2], [0], [0]>} : vector<2x8x8xbf16>, vector<2x8x64xbf16>, vector<2x8x64xf32> -> vector<2x8x64xf32>
    "tpu.trace_stop"() : () -> ()
    %118 = vector.shape_cast %117 : vector<2x8x64xf32> to vector<16x64xf32>
    %119 = arith.truncf %118 : vector<16x64xf32> to vector<16x64xbf16>
    %c256 = arith.constant 256 : index
    %c0_37 = arith.constant 0 : index
    %120 = vector.load %arg3[%c256, %c0_37] : memref<384x384xbf16, #tpu.memory_space<vmem>>, vector<64x384xbf16>
    %cst_38 = arith.constant dense<0.000000e+00> : vector<16x384xf32>
    %121 = tpu.matmul %119, %120, %cst_38 {dimension_numbers = #tpu.dot_dimension_numbers<[1], [0], [0], [1], [0, 0, 1, 1], [], []>} : vector<16x64xbf16>, vector<64x384xbf16>, vector<16x384xf32> -> vector<16x384xf32>
    %122 = arith.addf %100, %121 : vector<16x384xf32>
    %123 = vector.extract_strided_slice %6 {offsets = [0, 0, 320], sizes = [2, 8, 64], strides = [1, 1, 1]} : vector<2x8x1152xbf16> to vector<2x8x64xbf16>
    %124 = vector.extract_strided_slice %6 {offsets = [0, 0, 704], sizes = [2, 8, 64], strides = [1, 1, 1]} : vector<2x8x1152xbf16> to vector<2x8x64xbf16>
    %125 = vector.extract_strided_slice %6 {offsets = [0, 0, 1088], sizes = [2, 8, 64], strides = [1, 1, 1]} : vector<2x8x1152xbf16> to vector<2x8x64xbf16>
    "tpu.trace_start"() <{level = 10 : i32, message = "btd,bsd->bts"}> : () -> ()
    %cst_39 = arith.constant dense<0.000000e+00> : vector<2x8x8xf32>
    %126 = tpu.matmul %123, %124, %cst_39 {dimension_numbers = #tpu.dot_dimension_numbers<[2], [2], [1], [1], [0, 0, 0, 1, 1, 1], [0], [0]>} : vector<2x8x64xbf16>, vector<2x8x64xbf16>, vector<2x8x8xf32> -> vector<2x8x8xf32>
    "tpu.trace_stop"() : () -> ()
    %127 = arith.addf %126, %9 : vector<2x8x8xf32>
    %cst_40 = arith.constant dense<0xFF800000> : vector<2x8xf32>
    %128 = vector.multi_reduction <maximumf>, %127, %cst_40 [2] : vector<2x8x8xf32> to vector<2x8xf32>
    %129 = vector.shape_cast %128 : vector<2x8xf32> to vector<2x8x1xf32>
    %130 = vector.broadcast %129 : vector<2x8x1xf32> to vector<2x8x8xf32>
    %131 = arith.subf %127, %130 : vector<2x8x8xf32>
    %132 = math.exp %131 : vector<2x8x8xf32>
    %cst_41 = arith.constant dense<0.000000e+00> : vector<2x8xf32>
    %133 = vector.multi_reduction <add>, %132, %cst_41 [2] : vector<2x8x8xf32> to vector<2x8xf32>
    %134 = vector.shape_cast %133 : vector<2x8xf32> to vector<2x8x1xf32>
    %135 = tpu.reciprocal %134 {approx = true} : vector<2x8x1xf32> -> vector<2x8x1xf32>
    %136 = vector.broadcast %135 : vector<2x8x1xf32> to vector<2x8x8xf32>
    %137 = arith.mulf %132, %136 : vector<2x8x8xf32>
    %138 = arith.truncf %137 : vector<2x8x8xf32> to vector<2x8x8xbf16>
    "tpu.trace_start"() <{level = 10 : i32, message = "bts,bsd->btd"}> : () -> ()
    %cst_42 = arith.constant dense<0.000000e+00> : vector<2x8x64xf32>
    %139 = tpu.matmul %138, %125, %cst_42 {dimension_numbers = #tpu.dot_dimension_numbers<[2], [1], [1], [2], [0, 0, 0, 1, 1, 2], [0], [0]>} : vector<2x8x8xbf16>, vector<2x8x64xbf16>, vector<2x8x64xf32> -> vector<2x8x64xf32>
    "tpu.trace_stop"() : () -> ()
    %140 = vector.shape_cast %139 : vector<2x8x64xf32> to vector<16x64xf32>
    %141 = arith.truncf %140 : vector<16x64xf32> to vector<16x64xbf16>
    %c320 = arith.constant 320 : index
    %c0_43 = arith.constant 0 : index
    %142 = vector.load %arg3[%c320, %c0_43] : memref<384x384xbf16, #tpu.memory_space<vmem>>, vector<64x384xbf16>
    %cst_44 = arith.constant dense<0.000000e+00> : vector<16x384xf32>
    %143 = tpu.matmul %141, %142, %cst_44 {dimension_numbers = #tpu.dot_dimension_numbers<[1], [0], [0], [1], [0, 0, 1, 1], [], []>} : vector<16x64xbf16>, vector<64x384xbf16>, vector<16x384xf32> -> vector<16x384xf32>
    %144 = arith.addf %122, %143 : vector<16x384xf32>
    %145 = vector.shape_cast %144 : vector<16x384xf32> to vector<2x8x384xf32>
    %c0_45 = arith.constant 0 : index
    %c0_46 = arith.constant 0 : index
    %c0_47 = arith.constant 0 : index
    %146 = vector.load %arg6[%c0_45, %c0_46, %c0_47] : memref<2x8x384xf32, #tpu.memory_space<vmem>>, vector<2x8x384xf32>
    tpu.vector_store %arg6[%c0_45, %c0_46, %c0_47], %145 {strides = array<i32>} : memref<2x8x384xf32, #tpu.memory_space<vmem>>, vector<2x8x384xf32>,
    return
  }
  func.func @transform_0(%arg0: i32) -> (i32, i32, i32) {
    %c0_i32 = arith.constant 0 : i32
    %c0_i32_0 = arith.constant 0 : i32
    %c0_i32_1 = arith.constant 0 : i32
    return %arg0, %c0_i32, %c0_i32_0 : i32, i32, i32
  }
  func.func @transform_1(%arg0: i32) -> (i32, i32) {
    %c0_i32 = arith.constant 0 : i32
    %c0_i32_0 = arith.constant 0 : i32
    %c0_i32_1 = arith.constant 0 : i32
    return %c0_i32, %c0_i32_0 : i32, i32
  }
  func.func @transform_2(%arg0: i32) -> (i32, i32) {
    %c0_i32 = arith.constant 0 : i32
    %c0_i32_0 = arith.constant 0 : i32
    %c0_i32_1 = arith.constant 0 : i32
    return %c0_i32, %c0_i32_0 : i32, i32
  }
  func.func @transform_3(%arg0: i32) -> (i32, i32) {
    %c0_i32 = arith.constant 0 : i32
    %c0_i32_0 = arith.constant 0 : i32
    %c0_i32_1 = arith.constant 0 : i32
    return %c0_i32, %c0_i32_0 : i32, i32
  }
  func.func @transform_4(%arg0: i32) -> (i32, i32) {
    %c0_i32 = arith.constant 0 : i32
    %c0_i32_0 = arith.constant 0 : i32
    %c0_i32_1 = arith.constant 0 : i32
    return %c0_i32, %c0_i32_0 : i32, i32
  }
  func.func @transform_5(%arg0: i32) -> (i32, i32, i32) {
    %c0_i32 = arith.constant 0 : i32
    %c0_i32_0 = arith.constant 0 : i32
    %c0_i32_1 = arith.constant 0 : i32
    return %arg0, %c0_i32, %c0_i32_0 : i32, i32, i32
  }
}

</mosaic_0001>

<bundles_post_ra>
// kernel: tpu_custom_call.1
= control target key start
LH: loop header
LB: loop body
LE: loop exit
PB: predicated region body
PF: predicated region fallthrough
CT: control target
= control target key end

     0   :  { %10 = vsyncpa [#allocation3], 0  ;;  %s5446_s0 = inlined_call_operand.hbm [shape: f32[2,8,384], index: 0, kind: input, shape index: {}]   ;;  %s5447_s1 = inlined_call_operand.hbm [shape: bf16[384,1152], index: 1, kind: input, shape index: {}]   ;;  %s5448_s2 = inlined_call_operand.hbm [shape: bf16[384,384], index: 2, kind: input, shape index: {}]   ;;  %s5449_s3 = inlined_call_operand.hbm [shape: f32[1,384], index: 3, kind: input, shape index: {}]   ;;  %s5450_s4 = inlined_call_operand.hbm [shape: f32[8,8], index: 4, kind: input, shape index: {}]   ;;  %s5451_s5 = inlined_call_operand.hbm [shape: f32[2,8,384], index: 5, kind: output, shape index: {}]  }
   0x1   :  { %11 = vsyncpa [#allocation6], 0 }
   0x2   :  { %12 = vsyncpa [#allocation9], 0  ;;  %s31_s20 = sshll.u32 %s5447_s1, 4  ;;  %s32_s20 = int_to_ptr.hbm [resolvable:$true] %s31_s20 }
   0x3   :  { %13 = vsyncpa [#allocation4], 0  ;;  %s5046_s21 = smov [#allocation5]   ;;  %s58_s25 = sshll.u32 %s5449_s3, 4  ;;  %s59_s25 = int_to_ptr.hbm [resolvable:$true] %s58_s25 }
   0x4   :  { %s33_s22 = sshll.u32 %s5046_s21, 4  ;;  %s5047_s26 = smov 576   ;;  %s34_s22 = int_to_ptr.vmem [resolvable:$true] %s33_s22 }
   0x5   :  { %s5048_s27 = smov 36   ;;  %s5049_s28 = smov [#allocation8]  }
   0x6   :  { %39 = dma.hbm_to_vmem [thread:$0]  %s32_s20, 27648, %s34_s22, [#allocation6], %s5047_s26, %s5047_s26, %s5048_s27  }
   0x7   :  { %s60_s29 = sshll.u32 %s5049_s28, 4  ;;  %s18_s7 = sshll.u32 %s5446_s0, 4  ;;  %s61_s29 = int_to_ptr.vmem [resolvable:$true] %s60_s29  ;;  %s19_s7 = int_to_ptr.hbm [resolvable:$true] %s18_s7 }
   0x8   :  { %63 = dma.hbm_to_vmem [thread:$0]  %s59_s25, 48, %s61_s29, [#allocation9]  }
   0x9   :  { %s5050_s1 = smov [#allocation2]   ;;  %s44_s3 = sshll.u32 %s5448_s2, 4  ;;  %s45_s3 = int_to_ptr.hbm [resolvable:$true] %s44_s3 }
   0xa   :  { %s20_s8 = sshll.u32 %s5050_s1, 4  ;;  %s5051_s11 = smov 384   ;;  %s21_s8 = int_to_ptr.vmem [resolvable:$true] %s20_s8 }
   0xb   :  { %s5052_s12 = smov 24   ;;  %s5053_s13 = smov [#allocation7]  }
   0xc   :  { %26 = dma.hbm_to_vmem [thread:$0]  %s19_s7, 768, %s21_s8, [#allocation3], %s5051_s11, %s5051_s11, %s5052_s12  }
   0xd   :  { %s46_s14 = sshll.u32 %s5053_s13, 4  ;;  %s5054_s0 = smov 192   ;;  %s47_s14 = int_to_ptr.vmem [resolvable:$true] %s46_s14 }
   0xe   :  { %s5055_s15 = smov 12   ;;  %s69_s18 = sshll.u32 %s5450_s4, 4  ;;  %s70_s18 = int_to_ptr.hbm [resolvable:$true] %s69_s18 }
   0xf   :  { %52 = dma.hbm_to_vmem [thread:$0]  %s45_s3, 9216, %s47_s14, [#allocation6], %s5054_s0, %s5054_s0, %s5055_s15  }
  0x10   :  { %s5056_s19 = smov [#allocation10]  }
  0x11   :  { %s71_s2 = sshll.u32 %s5056_s19, 4  ;;  %s72_s2 = int_to_ptr.vmem [resolvable:$true] %s71_s2 }
  0x12   :  { %74 = dma.hbm_to_vmem [thread:$0]  %s70_s18, 128, %s72_s2, [#allocation9]  }
  0x13   :  { %5038 = dma.done.wait [#allocation3], 768  }
  0x14   :  { %5039 = vsyncadd [#allocation3], 4294966528 }
  0x15   :  { %5040 = dma.done.wait [#allocation6], 36864  }
  0x16   :  { %5041 = vsyncadd [#allocation6], 4294930432 }
  0x17   :  { %5042 = dma.done.wait [#allocation9], 176  }
  0x18   :  { %5043 = vsyncadd [#allocation9], 4294967120  ;;  %v3604_v0 = vld [vmem:[#allocation5 + $0x1f8] sm:$0xf]  ;;  %v4611_v1 = vld [vmem:[#allocation5 + $0x218] sm:$0xf0] }
  0x19   :  { %v3892_v2 = vld [vmem:[#allocation5 + $0x438] sm:$0xf]  ;;  %v3605_v3 = vor.u32 %v4611_v1, %v3604_v0  ;;  %v4683_v4 = vld [vmem:[#allocation5 + $0x458] sm:$0xf0]  ;;  %v3606_v10 = vld [vmem:[#allocation5 + $0x21c] sm:$0xf0] }
  0x1a   :  { %v4180_v5 = vld [vmem:[#allocation5 + $0x678] sm:$0xf]  ;;  %v4755_v6 = vld [vmem:[#allocation5 + $0x698] sm:$0xf0]  ;;  %v3893_v7 = vor.u32 %v4683_v4, %v3892_v2  ;;  %v3568_v11 = vld [vmem:[#allocation5 + $0x1b0] sm:$0xf] }
  0x1b   :  { %v4181_v8 = vor.u32 %v4755_v6, %v4180_v5  ;;  %v4607_v9 = vld [vmem:[#allocation5 + $0x1fc] sm:$0xf]  ;;  %1449 = vmatpush.bf16.msra.mxu0 %v3605_v3  ;;  %v4602_v13 = vld [vmem:[#allocation5 + $0x1d0] sm:$0xf0]  ;;  %v3856_v14 = vld [vmem:[#allocation5 + $0x3f0] sm:$0xf] }
  0x1c   :  { %v3609_v12 = vor.u32 %v4607_v9, %v3606_v10  ;;  %v4674_v15 = vld [vmem:[#allocation5 + $0x410] sm:$0xf0]  ;;  %1463 = vmatpush.bf16.msra.mxu1 %v3893_v7  ;;  %v3569_v16 = vor.u32 %v4602_v13, %v3568_v11  ;;  %v4144_v18 = vld [vmem:[#allocation5 + $0x630] sm:$0xf]  ;;  %v3570_v22 = vld [vmem:[#allocation5 + $0x1d4] sm:$0xf0] }
  0x1d   :  { %1477 = vmatpush.bf16.msra.mxu2 %v4181_v8  ;;  %v3857_v17 = vor.u32 %v4674_v15, %v3856_v14  ;;  %v4746_v19 = vld [vmem:[#allocation5 + $0x650] sm:$0xf0]  ;;  %v3532_v23 = vld [vmem:[#allocation5 + $0x168] sm:$0xf]  ;;  %v4593_v24 = vld [vmem:[#allocation5 + $0x188] sm:$0xf0] }
  0x1e   :  { %v4598_v20 = vld [vmem:[#allocation5 + $0x1b4] sm:$0xf]  ;;  %1491 = vmatpush.bf16.msra.mxu3 %v3609_v12  ;;  %v4145_v21 = vor.u32 %v4746_v19, %v4144_v18  ;;  %v3820_v26 = vld [vmem:[#allocation5 + $0x3a8] sm:$0xf]  ;;  %v4665_v27 = vld [vmem:[#allocation5 + $0x3c8] sm:$0xf0]  ;;  %v3533_v29 = vor.u32 %v4593_v24, %v3532_v23 }
  0x1f   :  { %v3573_v25 = vor.u32 %v4598_v20, %v3570_v22  ;;  %v4108_v28 = vld [vmem:[#allocation5 + $0x5e8] sm:$0xf]  ;;  %1450 = vmatpush.bf16.msra.mxu0 %v3569_v16  ;;  %v4737_v30 = vld [vmem:[#allocation5 + $0x608] sm:$0xf0]  ;;  %v3534_v32 = vld [vmem:[#allocation5 + $0x18c] sm:$0xf0]  ;;  %v3821_v33 = vor.u32 %v4665_v27, %v3820_v26 }
  0x20   :  { %v4589_v31 = vld [vmem:[#allocation5 + $0x16c] sm:$0xf]  ;;  %1464 = vmatpush.bf16.msra.mxu1 %v3857_v17  ;;  %v4109_v34 = vor.u32 %v4737_v30, %v4108_v28  ;;  %v3496_v35 = vld [vmem:[#allocation5 + $0x120] sm:$0xf]  ;;  %v4584_v36 = vld [vmem:[#allocation5 + $0x140] sm:$0xf0] }
  0x21   :  { %1478 = vmatpush.bf16.msra.mxu2 %v4145_v21  ;;  %v3784_v37 = vld [vmem:[#allocation5 + $0x360] sm:$0xf]  ;;  %v3537_v38 = vor.u32 %v4589_v31, %v3534_v32  ;;  %v4656_v39 = vld [vmem:[#allocation5 + $0x380] sm:$0xf0]  ;;  %v3498_v43 = vld [vmem:[#allocation5 + $0x144] sm:$0xf0]  ;;  %v3497_v44 = vor.u32 %v4584_v36, %v3496_v35 }
  0x22   :  { %1492 = vmatpush.bf16.msra.mxu3 %v3573_v25  ;;  %v4072_v40 = vld [vmem:[#allocation5 + $0x5a0] sm:$0xf]  ;;  %v4728_v41 = vld [vmem:[#allocation5 + $0x5c0] sm:$0xf0]  ;;  %v3785_v45 = vor.u32 %v4656_v39, %v3784_v37  ;;  %v3460_v47 = vld [vmem:[#allocation5 + $0xd8] sm:$0xf] }
  0x23   :  { %v4580_v42 = vld [vmem:[#allocation5 + $0x124] sm:$0xf]  ;;  %1451 = vmatpush.bf16.msra.mxu0 %v3533_v29  ;;  %v4073_v46 = vor.u32 %v4728_v41, %v4072_v40  ;;  %v4575_v48 = vld [vmem:[#allocation5 + $0xf8] sm:$0xf0]  ;;  %v3748_v49 = vld [vmem:[#allocation5 + $0x318] sm:$0xf] }
  0x24   :  { %1465 = vmatpush.bf16.msra.mxu1 %v3821_v33  ;;  %v3501_v50 = vor.u32 %v4580_v42, %v3498_v43  ;;  %v4647_v51 = vld [vmem:[#allocation5 + $0x338] sm:$0xf0]  ;;  %v4036_v52 = vld [vmem:[#allocation5 + $0x558] sm:$0xf]  ;;  %v3462_v55 = vld [vmem:[#allocation5 + $0xfc] sm:$0xf0]  ;;  %v3461_v56 = vor.u32 %v4575_v48, %v3460_v47 }
  0x25   :  { %1479 = vmatpush.bf16.msra.mxu2 %v4109_v34  ;;  %v4719_v53 = vld [vmem:[#allocation5 + $0x578] sm:$0xf0]  ;;  %v3749_v57 = vor.u32 %v4647_v51, %v3748_v49  ;;  %v3424_v59 = vld [vmem:[#allocation5 + $0x90] sm:$0xf]  ;;  %v4566_v60 = vld [vmem:[#allocation5 + $0xb0] sm:$0xf0] }
  0x26   :  { %1493 = vmatpush.bf16.msra.mxu3 %v3537_v38  ;;  %v4571_v54 = vld [vmem:[#allocation5 + $0xdc] sm:$0xf]  ;;  %v4037_v58 = vor.u32 %v4719_v53, %v4036_v52  ;;  %v3712_v61 = vld [vmem:[#allocation5 + $0x2d0] sm:$0xf]  ;;  %v4638_v63 = vld [vmem:[#allocation5 + $0x2f0] sm:$0xf0]  ;;  %v3425_v4 = vor.u32 %v4566_v60, %v3424_v59 }
  0x27   :  { %1452 = vmatpush.bf16.msra.mxu0 %v3497_v44  ;;  %v3465_v62 = vor.u32 %v4571_v54, %v3462_v55  ;;  %v4000_v0 = vld [vmem:[#allocation5 + $0x510] sm:$0xf]  ;;  %v4710_v1 = vld [vmem:[#allocation5 + $0x530] sm:$0xf0]  ;;  %v3426_v3 = vld [vmem:[#allocation5 + $0xb4] sm:$0xf0]  ;;  %v3713_v5 = vor.u32 %v4638_v63, %v3712_v61 }
  0x28   :  { %1466 = vmatpush.bf16.msra.mxu1 %v3785_v45  ;;  %v4562_v2 = vld [vmem:[#allocation5 + $0x94] sm:$0xf]  ;;  %v4001_v6 = vor.u32 %v4710_v1, %v4000_v0  ;;  %v3388_v7 = vld [vmem:[#allocation5 + $0x48] sm:$0xf]  ;;  %v4557_v8 = vld [vmem:[#allocation5 + $0x68] sm:$0xf0] }
  0x29   :  { %1480 = vmatpush.bf16.msra.mxu2 %v4073_v46  ;;  %v3676_v9 = vld [vmem:[#allocation5 + $0x288] sm:$0xf]  ;;  %v3429_v10 = vor.u32 %v4562_v2, %v3426_v3  ;;  %v4629_v11 = vld [vmem:[#allocation5 + $0x2a8] sm:$0xf0]  ;;  %v3390_v15 = vld [vmem:[#allocation5 + $0x6c] sm:$0xf0]  ;;  %v3389_v16 = vor.u32 %v4557_v8, %v3388_v7 }
  0x2a   :  { %1494 = vmatpush.bf16.msra.mxu3 %v3501_v50  ;;  %v3964_v12 = vld [vmem:[#allocation5 + $0x4c8] sm:$0xf]  ;;  %v4701_v13 = vld [vmem:[#allocation5 + $0x4e8] sm:$0xf0]  ;;  %v3352_v17 = vld [vmem:[#allocation5] sm:$0xf]  ;;  %v3677_v19 = vor.u32 %v4629_v11, %v3676_v9 }
  0x2b   :  { %1453 = vmatpush.bf16.msra.mxu0 %v3461_v56  ;;  %v4553_v14 = vld [vmem:[#allocation5 + $0x4c] sm:$0xf]  ;;  %v4548_v18 = vld [vmem:[#allocation5 + $0x20] sm:$0xf0]  ;;  %v3965_v20 = vor.u32 %v4701_v13, %v3964_v12  ;;  %v3640_v21 = vld [vmem:[#allocation5 + $0x240] sm:$0xf] }
  0x2c   :  { %1467 = vmatpush.bf16.msra.mxu1 %v3749_v57  ;;  %v4620_v22 = vld [vmem:[#allocation5 + $0x260] sm:$0xf0]  ;;  %v3928_v23 = vld [vmem:[#allocation5 + $0x480] sm:$0xf]  ;;  %v3393_v24 = vor.u32 %v4553_v14, %v3390_v15  ;;  %v3354_v27 = vld [vmem:[#allocation5 + $0x24] sm:$0xf0]  ;;  %v3353_v31 = vor.u32 %v4548_v18, %v3352_v17 }
  0x2d   :  { %1481 = vmatpush.bf16.msra.mxu2 %v4037_v58  ;;  %v4692_v25 = vld [vmem:[#allocation5 + $0x4a0] sm:$0xf0]  ;;  %v4679_v28 = vld [vmem:[#allocation5 + $0x43c] sm:$0xf]  ;;  %v3894_v29 = vld [vmem:[#allocation5 + $0x45c] sm:$0xf0]  ;;  %v3641_v35 = vor.u32 %v4620_v22, %v3640_v21 }
  0x2e   :  { %1495 = vmatpush.bf16.msra.mxu3 %v3465_v62  ;;  %v4544_v26 = vld [vmem:[#allocation5 + $0x4] sm:$0xf]  ;;  %v4751_v30 = vld [vmem:[#allocation5 + $0x67c] sm:$0xf]  ;;  %v4182_v32 = vld [vmem:[#allocation5 + $0x69c] sm:$0xf0]  ;;  %v3929_v36 = vor.u32 %v4692_v25, %v3928_v23  ;;  %v3897_v40 = vor.u32 %v4679_v28, %v3894_v29 }
  0x2f   :  { %1454 = vmatpush.bf16.msra.mxu0 %v3425_v4  ;;  %v3612_v33 = vld [vmem:[#allocation5 + $0x200] sm:$0xf]  ;;  %v4612_v34 = vld [vmem:[#allocation5 + $0x220] sm:$0xf0]  ;;  %v3357_v39 = vor.u32 %v4544_v26, %v3354_v27  ;;  %v4670_v41 = vld [vmem:[#allocation5 + $0x3f4] sm:$0xf]  ;;  %v4185_v42 = vor.u32 %v4751_v30, %v4182_v32 }
  0x30   :  { %1468 = vmatpush.bf16.msra.mxu1 %v3713_v5  ;;  %v3900_v37 = vld [vmem:[#allocation5 + $0x440] sm:$0xf]  ;;  %v4684_v38 = vld [vmem:[#allocation5 + $0x460] sm:$0xf0]  ;;  %v3613_v43 = vor.u32 %v4612_v34, %v3612_v33  ;;  %v3858_v44 = vld [vmem:[#allocation5 + $0x414] sm:$0xf0] }
  0x31   :  { %1482 = vmatpush.bf16.msra.mxu2 %v4001_v6  ;;  %v4742_v45 = vld [vmem:[#allocation5 + $0x634] sm:$0xf]  ;;  %v4146_v46 = vld [vmem:[#allocation5 + $0x654] sm:$0xf0]  ;;  %v3901_v47 = vor.u32 %v4684_v38, %v3900_v37  ;;  %v4603_v49 = vld [vmem:[#allocation5 + $0x1d8] sm:$0xf0]  ;;  %v3861_v54 = vor.u32 %v4670_v41, %v3858_v44 }
  0x32   :  { %1496 = vmatpush.bf16.msra.mxu3 %v3429_v10  ;;  %v3576_v48 = vld [vmem:[#allocation5 + $0x1b8] sm:$0xf]  ;;  %v4675_v51 = vld [vmem:[#allocation5 + $0x418] sm:$0xf0]  ;;  %v96_v52 = vld [vmem:[#allocation2] sm:$0xff]  ;;  %v4149_v59 = vor.u32 %v4742_v45, %v4146_v46  ;;  %vm1848_vm0 = vcmask 523264  }
  0x33   :  { %1455 = vmatpush.bf16.msra.mxu0 %v3389_v16  ;;  %v3864_v50 = vld [vmem:[#allocation5 + $0x3f8] sm:$0xf]  ;;  %v99_v53 = vld [vmem:[#allocation2 + $0x18] sm:$0xff]  ;;  %v3822_v56 = vld [vmem:[#allocation5 + $0x3cc] sm:$0xf0]  ;;  %v3577_v60 = vor.u32 %v4603_v49, %v3576_v48  ;;  %s5057_s4 = smov 64  }
  0x34   :  { %1469 = vmatpush.bf16.msra.mxu1 %v3677_v19  ;;  %v4661_v55 = vld [vmem:[#allocation5 + $0x3ac] sm:$0xf]  ;;  %v5107_v58 = vpack.c.bf16 %v99_v53, %v96_v52  ;;  %v4110_v61 = vld [vmem:[#allocation5 + $0x60c] sm:$0xf0]  ;;  %v4594_v63 = vld [vmem:[#allocation5 + $0x190] sm:$0xf0]  ;;  %v3865_v0 = vor.u32 %v4675_v51, %v3864_v50 }
  0x35   :  { %1483 = vmatpush.bf16.msra.mxu2 %v3965_v20  ;;  %v4733_v57 = vld [vmem:[#allocation5 + $0x5ec] sm:$0xf]  ;;  %v3540_v62 = vld [vmem:[#allocation5 + $0x170] sm:$0xf]  ;;  %v97_v2 = vld [vmem:[#allocation2 + $0x8] sm:$0xff]  ;;  %v3825_v8 = vor.u32 %v4661_v55, %v3822_v56  ;;  %vm1917_vm1 = vcmask 1043456  }
  0x36   :  { %1497 = vmatpush.bf16.msra.mxu3 %v3393_v24  ;;  %v3828_v1 = vld [vmem:[#allocation5 + $0x3b0] sm:$0xf]  ;;  %v4666_v4 = vld [vmem:[#allocation5 + $0x3d0] sm:$0xf0]  ;;  %v98_v6 = vld [vmem:[#allocation2 + $0x10] sm:$0xff]  ;;  %v4113_v10 = vor.u32 %v4733_v57, %v4110_v61  ;;  %v3541_v11 = vor.u32 %v4594_v63, %v3540_v62  ;;  %vm1889_vm2 = vcmask 64512  }
  0x37   :  { %1456 = vmatpush.bf16.msra.mxu0 %v3353_v31  ;;  %v100_v3 = vld [vmem:[#allocation2 + $0x20] sm:$0xff]  ;;  %v101_v7 = vld [vmem:[#allocation2 + $0x28] sm:$0xff]  ;;  %v4652_v12 = vld [vmem:[#allocation5 + $0x364] sm:$0xf]  ;;  %v3829_v15 = vor.u32 %v4666_v4, %v3828_v1  ;;  %s5058_s20 = smov [#allocation11]   ;;  %s3335_s24 = sshll.u32 %s5451_s5, 4  ;;  %s3336_s24 = int_to_ptr.hbm [resolvable:$true] %s3335_s24 }
  0x38   :  { %1470 = vmatpush.bf16.msra.mxu1 %v3641_v35  ;;  %v5110_v5 = vpack.c.bf16 %v100_v3, %v97_v2  ;;  %v5113_v9 = vpack.c.bf16 %v101_v7, %v98_v6  ;;  %v3786_v13 = vld [vmem:[#allocation5 + $0x384] sm:$0xf0]  ;;  %v4724_v14 = vld [vmem:[#allocation5 + $0x5a4] sm:$0xf]  ;;  %v4585_v18 = vld [vmem:[#allocation5 + $0x148] sm:$0xf0] }
  0x39   :  { %1484 = vmatpush.bf16.msra.mxu2 %v3929_v36  ;;  %v4074_v16 = vld [vmem:[#allocation5 + $0x5c4] sm:$0xf0]  ;;  %v4657_v20 = vld [vmem:[#allocation5 + $0x388] sm:$0xf0]  ;;  %v3789_v21 = vor.u32 %v4652_v12, %v3786_v13  ;;  %v4643_v24 = vld [vmem:[#allocation5 + $0x31c] sm:$0xf] }
  0x3a   :  { %1498 = vmatpush.bf16.msra.mxu3 %v3357_v39  ;;  %1457 = vmatmul.bf16.vlgmr.msra.gmra.mxu0 %v5107_v58  ;;  %v3504_v17 = vld [vmem:[#allocation5 + $0x128] sm:$0xf]  ;;  %v4077_v22 = vor.u32 %v4724_v14, %v4074_v16  ;;  %v3750_v25 = vld [vmem:[#allocation5 + $0x33c] sm:$0xf0]  ;;  %v4715_v26 = vld [vmem:[#allocation5 + $0x55c] sm:$0xf] }
  0x3b   :  { %1505 = vmatpush.bf16.msrb.mxu0 %v3897_v40  ;;  %1471 = vmatmul.bf16.vlgmr.msra.gmra.mxu1 %v5110_v5  ;;  %v3792_v19 = vld [vmem:[#allocation5 + $0x368] sm:$0xf]  ;;  %v3505_v23 = vor.u32 %v4585_v18, %v3504_v17  ;;  %v4038_v28 = vld [vmem:[#allocation5 + $0x57c] sm:$0xf0]  ;;  %v4576_v30 = vld [vmem:[#allocation5 + $0x100] sm:$0xf0]  ;;  %v3753_v33 = vor.u32 %v4643_v24, %v3750_v25 }
  0x3c   :  { %1519 = vmatpush.bf16.msrb.mxu1 %v4185_v42  ;;  %1485 = vmatmul.bf16.vlgmr.msra.gmra.mxu2 %v5113_v9  ;;  %v3793_v27 = vor.u32 %v4657_v20, %v3792_v19  ;;  %v3468_v29 = vld [vmem:[#allocation5 + $0xe0] sm:$0xf]  ;;  %v4648_v32 = vld [vmem:[#allocation5 + $0x340] sm:$0xf0]  ;;  %v4041_v34 = vor.u32 %v4715_v26, %v4038_v28  ;;  %v4634_v36 = vld [vmem:[#allocation5 + $0x2d4] sm:$0xf] }
  0x3d   :  { %1533 = vmatpush.bf16.msrb.mxu2 %v3613_v43  ;;  %1499 = vmatmul.bf16.vlgmr.msra.gmra.mxu3 %v5107_v58  ;;  %v3756_v31 = vld [vmem:[#allocation5 + $0x320] sm:$0xf]  ;;  %v3469_v35 = vor.u32 %v4576_v30, %v3468_v29  ;;  %v3714_v37 = vld [vmem:[#allocation5 + $0x2f4] sm:$0xf0]  ;;  %v4706_v38 = vld [vmem:[#allocation5 + $0x514] sm:$0xf] }
  0x3e   :  { %1547 = vmatpush.bf16.msrb.mxu3 %v3901_v47  ;;  %v3757_v39 = vor.u32 %v4648_v32, %v3756_v31  ;;  %v4002_v40 = vld [vmem:[#allocation5 + $0x534] sm:$0xf0]  ;;  %v4567_v42 = vld [vmem:[#allocation5 + $0xb8] sm:$0xf0]  ;;  %v3717_v45 = vor.u32 %v4634_v36, %v3714_v37  ;;  %v4625_v48 = vld [vmem:[#allocation5 + $0x28c] sm:$0xf] }
  0x3f   :  { %1506 = vmatpush.bf16.msrb.mxu0 %v3861_v54  ;;  %v3432_v41 = vld [vmem:[#allocation5 + $0x98] sm:$0xf]  ;;  %v4639_v44 = vld [vmem:[#allocation5 + $0x2f8] sm:$0xf0]  ;;  %v4005_v46 = vor.u32 %v4706_v38, %v4002_v40  ;;  %v3678_v49 = vld [vmem:[#allocation5 + $0x2ac] sm:$0xf0] }
  0x40   :  { %1520 = vmatpush.bf16.msrb.mxu1 %v4149_v59  ;;  %v3720_v43 = vld [vmem:[#allocation5 + $0x2d8] sm:$0xf]  ;;  %v3433_v47 = vor.u32 %v4567_v42, %v3432_v41  ;;  %v4697_v50 = vld [vmem:[#allocation5 + $0x4cc] sm:$0xf]  ;;  %v3966_v52 = vld [vmem:[#allocation5 + $0x4ec] sm:$0xf0]  ;;  %v3681_v57 = vor.u32 %v4625_v48, %v3678_v49 }
  0x41   :  { %1534 = vmatpush.bf16.msrb.mxu2 %v3577_v60  ;;  %v3721_v51 = vor.u32 %v4639_v44, %v3720_v43  ;;  %v3396_v53 = vld [vmem:[#allocation5 + $0x50] sm:$0xf]  ;;  %v4558_v54 = vld [vmem:[#allocation5 + $0x70] sm:$0xf0]  ;;  %v4616_v59 = vld [vmem:[#allocation5 + $0x244] sm:$0xf]  ;;  %v3969_v61 = vor.u32 %v4697_v50, %v3966_v52 }
  0x42   :  { %1548 = vmatpush.bf16.msrb.mxu3 %v3865_v0  ;;  %v3684_v55 = vld [vmem:[#allocation5 + $0x290] sm:$0xf]  ;;  %v4630_v56 = vld [vmem:[#allocation5 + $0x2b0] sm:$0xf0]  ;;  %v3642_v60 = vld [vmem:[#allocation5 + $0x264] sm:$0xf0]  ;;  %v3397_v62 = vor.u32 %v4558_v54, %v3396_v53 }
  0x43   :  { %1507 = vmatpush.bf16.msrb.mxu0 %v3825_v8  ;;  %v4688_v63 = vld [vmem:[#allocation5 + $0x484] sm:$0xf]  ;;  %v3930_v0 = vld [vmem:[#allocation5 + $0x4a4] sm:$0xf0]  ;;  %v3685_v2 = vor.u32 %v4630_v56, %v3684_v55  ;;  %v4549_v3 = vld [vmem:[#allocation5 + $0x28] sm:$0xf0] }
  0x44   :  { %1521 = vmatpush.bf16.msrb.mxu1 %v4113_v10  ;;  %v3360_v1 = vld [vmem:[#allocation5 + $0x8] sm:$0xf]  ;;  %v4621_v6 = vld [vmem:[#allocation5 + $0x268] sm:$0xf0]  ;;  %v4188_v7 = vld [vmem:[#allocation5 + $0x680] sm:$0xf] }
  0x45   :  { %1535 = vmatpush.bf16.msrb.mxu2 %v3541_v11  ;;  %v3648_v4 = vld [vmem:[#allocation5 + $0x248] sm:$0xf]  ;;  %v4756_v8 = vld [vmem:[#allocation5 + $0x6a0] sm:$0xf0]  ;;  %v3645_v11 = vor.u32 %v4616_v59, %v3642_v60  ;;  %v3361_v16 = vor.u32 %v4549_v3, %v3360_v1  ;;  %v4747_v24 = vld [vmem:[#allocation5 + $0x658] sm:$0xf0] }
  0x46   :  { %1549 = vmatpush.bf16.msrb.mxu3 %v3829_v15  ;;  %v4608_v10 = vld [vmem:[#allocation5 + $0x204] sm:$0xf]  ;;  %v3614_v12 = vld [vmem:[#allocation5 + $0x224] sm:$0xf0]  ;;  %v3933_v15 = vor.u32 %v4688_v63, %v3930_v0  ;;  %v3649_v19 = vor.u32 %v4621_v6, %v3648_v4  ;;  %v4189_v20 = vor.u32 %v4756_v8, %v4188_v7  ;;  %v4599_v25 = vld [vmem:[#allocation5 + $0x1bc] sm:$0xf] }
  0x47   :  { %1508 = vmatpush.bf16.msrb.mxu0 %v3789_v21  ;;  %v4680_v13 = vld [vmem:[#allocation5 + $0x444] sm:$0xf]  ;;  %v3902_v14 = vld [vmem:[#allocation5 + $0x464] sm:$0xf0]  ;;  %v3617_v21 = vor.u32 %v4608_v10, %v3614_v12  ;;  %v4671_v28 = vld [vmem:[#allocation5 + $0x3fc] sm:$0xf] }
  0x48   :  { %1522 = vmatpush.bf16.msrb.mxu1 %v4077_v22  ;;  %v4752_v17 = vld [vmem:[#allocation5 + $0x684] sm:$0xf]  ;;  %v4190_v18 = vld [vmem:[#allocation5 + $0x6a4] sm:$0xf0]  ;;  %v3905_v22 = vor.u32 %v4680_v13, %v3902_v14  ;;  %v3866_v29 = vld [vmem:[#allocation5 + $0x41c] sm:$0xf0] }
  0x49   :  { %1536 = vmatpush.bf16.msrb.mxu2 %v3505_v23  ;;  %v4152_v23 = vld [vmem:[#allocation5 + $0x638] sm:$0xf]  ;;  %v4193_v26 = vor.u32 %v4752_v17, %v4190_v18  ;;  %v4743_v30 = vld [vmem:[#allocation5 + $0x63c] sm:$0xf]  ;;  %v4154_v31 = vld [vmem:[#allocation5 + $0x65c] sm:$0xf0] }
  0x4a   :  { %1550 = vmatpush.bf16.msrb.mxu3 %v3793_v27  ;;  %v3578_v27 = vld [vmem:[#allocation5 + $0x1dc] sm:$0xf0]  ;;  %v4153_v32 = vor.u32 %v4747_v24, %v4152_v23  ;;  %v4738_v36 = vld [vmem:[#allocation5 + $0x610] sm:$0xf0]  ;;  %v4157_v38 = vor.u32 %v4743_v30, %v4154_v31  ;;  %v3830_v41 = vld [vmem:[#allocation5 + $0x3d4] sm:$0xf0] }
  0x4b   :  { %1509 = vmatpush.bf16.msrb.mxu0 %v3753_v33  ;;  %v3581_v33 = vor.u32 %v4599_v25, %v3578_v27  ;;  %v4590_v37 = vld [vmem:[#allocation5 + $0x174] sm:$0xf]  ;;  %v4118_v43 = vld [vmem:[#allocation5 + $0x614] sm:$0xf0]  ;;  %v4729_v48 = vld [vmem:[#allocation5 + $0x5c8] sm:$0xf0] }
  0x4c   :  { %1523 = vmatpush.bf16.msrb.mxu1 %v4041_v34  ;;  %v3869_v34 = vor.u32 %v4671_v28, %v3866_v29  ;;  %v4662_v40 = vld [vmem:[#allocation5 + $0x3b4] sm:$0xf]  ;;  %v4581_v49 = vld [vmem:[#allocation5 + $0x12c] sm:$0xf]  ;;  %v3794_v53 = vld [vmem:[#allocation5 + $0x38c] sm:$0xf0] }
  0x4d   :  { %1537 = vmatpush.bf16.msrb.mxu2 %v3469_v35  ;;  %v4116_v35 = vld [vmem:[#allocation5 + $0x5f0] sm:$0xf]  ;;  %v4734_v42 = vld [vmem:[#allocation5 + $0x5f4] sm:$0xf]  ;;  %v4653_v52 = vld [vmem:[#allocation5 + $0x36c] sm:$0xf] }
  0x4e   :  { %1551 = vmatpush.bf16.msrb.mxu3 %v3757_v39  ;;  %v3542_v39 = vld [vmem:[#allocation5 + $0x194] sm:$0xf0]  ;;  %v4117_v44 = vor.u32 %v4738_v36, %v4116_v35  ;;  %v4121_v50 = vor.u32 %v4734_v42, %v4118_v43  ;;  %v4725_v54 = vld [vmem:[#allocation5 + $0x5ac] sm:$0xf]  ;;  %v4082_v55 = vld [vmem:[#allocation5 + $0x5cc] sm:$0xf0]  ;;  %v3797_v59 = vor.u32 %v4653_v52, %v3794_v53 }
  0x4f   :  { %1510 = vmatpush.bf16.msrb.mxu0 %v3717_v45  ;;  %v3545_v45 = vor.u32 %v4590_v37, %v3542_v39  ;;  %v4044_v60 = vld [vmem:[#allocation5 + $0x560] sm:$0xf]  ;;  %v4085_v63 = vor.u32 %v4725_v54, %v4082_v55  ;;  %v3470_v0 = vld [vmem:[#allocation5 + $0x104] sm:$0xf0]  ;;  %v4644_v1 = vld [vmem:[#allocation5 + $0x324] sm:$0xf] }
  0x50   :  { %1524 = vmatpush.bf16.msrb.mxu1 %v4005_v46  ;;  %v3833_v46 = vor.u32 %v4662_v40, %v3830_v41  ;;  %v4716_v3 = vld [vmem:[#allocation5 + $0x564] sm:$0xf]  ;;  %v4046_v4 = vld [vmem:[#allocation5 + $0x584] sm:$0xf0]  ;;  %v4008_v10 = vld [vmem:[#allocation5 + $0x518] sm:$0xf] }
  0x51   :  { %1538 = vmatpush.bf16.msrb.mxu2 %v3433_v47  ;;  %v4080_v47 = vld [vmem:[#allocation5 + $0x5a8] sm:$0xf]  ;;  %v4563_v12 = vld [vmem:[#allocation5 + $0x9c] sm:$0xf]  ;;  %v4049_v13 = vor.u32 %v4716_v3, %v4046_v4  ;;  %v3434_v14 = vld [vmem:[#allocation5 + $0xbc] sm:$0xf0] }
  0x52   :  { %1552 = vmatpush.bf16.msrb.mxu3 %v3721_v51  ;;  %v3506_v51 = vld [vmem:[#allocation5 + $0x14c] sm:$0xf0]  ;;  %v4081_v56 = vor.u32 %v4729_v48, %v4080_v47  ;;  %v4707_v17 = vld [vmem:[#allocation5 + $0x51c] sm:$0xf]  ;;  %v4010_v18 = vld [vmem:[#allocation5 + $0x53c] sm:$0xf0] }
  0x53   :  { %1511 = vmatpush.bf16.msrb.mxu0 %v3681_v57  ;;  %v3509_v57 = vor.u32 %v4581_v49, %v3506_v51  ;;  %v4702_v23 = vld [vmem:[#allocation5 + $0x4f0] sm:$0xf0]  ;;  %v4013_v25 = vor.u32 %v4707_v17, %v4010_v18  ;;  %v3686_v28 = vld [vmem:[#allocation5 + $0x2b4] sm:$0xf0]  ;;  %v4693_v35 = vld [vmem:[#allocation5 + $0x4a8] sm:$0xf0] }
  0x54   :  { %1525 = vmatpush.bf16.msrb.mxu1 %v3969_v61  ;;  %v4720_v61 = vld [vmem:[#allocation5 + $0x580] sm:$0xf0]  ;;  %v4554_v24 = vld [vmem:[#allocation5 + $0x54] sm:$0xf]  ;;  %v3974_v30 = vld [vmem:[#allocation5 + $0x4f4] sm:$0xf0] }
  0x55   :  { %1539 = vmatpush.bf16.msrb.mxu2 %v3397_v62  ;;  %v4572_v62 = vld [vmem:[#allocation5 + $0xe4] sm:$0xf]  ;;  %v4045_v6 = vor.u32 %v4720_v61, %v4044_v60  ;;  %v4626_v27 = vld [vmem:[#allocation5 + $0x294] sm:$0xf]  ;;  %v4545_v36 = vld [vmem:[#allocation5 + $0xc] sm:$0xf] }
  0x56   :  { %1553 = vmatpush.bf16.msrb.mxu3 %v3685_v2  ;;  %v3758_v2 = vld [vmem:[#allocation5 + $0x344] sm:$0xf0]  ;;  %v3473_v7 = vor.u32 %v4572_v62, %v3470_v0  ;;  %v4698_v29 = vld [vmem:[#allocation5 + $0x4d4] sm:$0xf]  ;;  %v3362_v37 = vld [vmem:[#allocation5 + $0x2c] sm:$0xf0] }
  0x57   :  { %1512 = vmatpush.bf16.msrb.mxu0 %v3645_v11  ;;  %v3761_v8 = vor.u32 %v4644_v1, %v3758_v2  ;;  %v4711_v11 = vld [vmem:[#allocation5 + $0x538] sm:$0xf0]  ;;  %v4617_v39 = vld [vmem:[#allocation5 + $0x24c] sm:$0xf]  ;;  %v3650_v40 = vld [vmem:[#allocation5 + $0x26c] sm:$0xf0]  ;;  %v3365_v48 = vor.u32 %v4545_v36, %v3362_v37 }
  0x58   :  { %1526 = vmatpush.bf16.msrb.mxu1 %v3933_v15  ;;  %v4635_v15 = vld [vmem:[#allocation5 + $0x2dc] sm:$0xf]  ;;  %v4689_v41 = vld [vmem:[#allocation5 + $0x48c] sm:$0xf]  ;;  %v3938_v42 = vld [vmem:[#allocation5 + $0x4ac] sm:$0xf0]  ;;  %v3653_v49 = vor.u32 %v4617_v39, %v3650_v40 }
  0x59   :  { %1540 = vmatpush.bf16.msrb.mxu2 %v3361_v16  ;;  %v3722_v16 = vld [vmem:[#allocation5 + $0x2fc] sm:$0xf0]  ;;  %v4196_v43 = vld [vmem:[#allocation5 + $0x688] sm:$0xf]  ;;  %v3622_v47 = vld [vmem:[#allocation5 + $0x22c] sm:$0xf0] }
  0x5a   :  { %1554 = vmatpush.bf16.msrb.mxu3 %v3649_v19  ;;  %1513 = vmatmul.bf16.vlgmr.msrb.gmra.mxu0 %v5110_v5  ;;  %v4009_v19 = vor.u32 %v4711_v11, %v4008_v10  ;;  %v4160_v52 = vld [vmem:[#allocation5 + $0x640] sm:$0xf]  ;;  %v3908_v53 = vld [vmem:[#allocation5 + $0x448] sm:$0xf]  ;;  %v4685_v54 = vld [vmem:[#allocation5 + $0x468] sm:$0xf0] }
  0x5b   :  { %1561 = vmatpush.bf16.msra.mxu0 %v4189_v20  ;;  %1527 = vmatmul.bf16.vlgmr.msrb.gmra.mxu1 %v5113_v9  ;;  %v3437_v20 = vor.u32 %v4563_v12, %v3434_v14  ;;  %v4600_v60 = vld [vmem:[#allocation5 + $0x1c4] sm:$0xf]  ;;  %v3586_v61 = vld [vmem:[#allocation5 + $0x1e4] sm:$0xf0]  ;;  %v3909_v62 = vor.u32 %v4685_v54, %v3908_v53  ;;  %v4124_v1 = vld [vmem:[#allocation5 + $0x5f8] sm:$0xf] }
  0x5c   :  { %1575 = vmatpush.bf16.msra.mxu1 %v3617_v21  ;;  %1541 = vmatmul.bf16.vlgmr.msrb.gmra.mxu2 %v5107_v58  ;;  %v3725_v21 = vor.u32 %v4635_v15, %v3722_v16  ;;  %v3872_v2 = vld [vmem:[#allocation5 + $0x400] sm:$0xf]  ;;  %v4676_v3 = vld [vmem:[#allocation5 + $0x420] sm:$0xf0]  ;;  %v3589_v4 = vor.u32 %v4600_v60, %v3586_v61  ;;  %v4591_v10 = vld [vmem:[#allocation5 + $0x17c] sm:$0xf] }
  0x5d   :  { %1589 = vmatpush.bf16.msra.mxu2 %v3905_v22  ;;  %1555 = vmatmul.bf16.vlgmr.msrb.gmra.mxu3 %v5110_v5  ;;  %v3972_v22 = vld [vmem:[#allocation5 + $0x4d0] sm:$0xf]  ;;  %v3550_v11 = vld [vmem:[#allocation5 + $0x19c] sm:$0xf0]  ;;  %v3873_v12 = vor.u32 %v4676_v3, %v3872_v2  ;;  %v3836_v16 = vld [vmem:[#allocation5 + $0x3b8] sm:$0xf] }
  0x5e   :  { %1603 = vmatpush.bf16.msra.mxu3 %v4193_v26  ;;  %v3398_v26 = vld [vmem:[#allocation5 + $0x74] sm:$0xf0]  ;;  %v3973_v31 = vor.u32 %v4702_v23, %v3972_v22  ;;  %v4088_v15 = vld [vmem:[#allocation5 + $0x5b0] sm:$0xf]  ;;  %v4667_v17 = vld [vmem:[#allocation5 + $0x3d8] sm:$0xf0]  ;;  %v3553_v18 = vor.u32 %v4591_v10, %v3550_v11 }
  0x5f   :  { %1562 = vmatpush.bf16.msra.mxu0 %v4153_v32  ;;  %v3936_v32 = vld [vmem:[#allocation5 + $0x488] sm:$0xf]  ;;  %v4582_v22 = vld [vmem:[#allocation5 + $0x134] sm:$0xf]  ;;  %v3514_v23 = vld [vmem:[#allocation5 + $0x154] sm:$0xf0] }
  0x60   :  { %1576 = vmatpush.bf16.msra.mxu1 %v3581_v33  ;;  %v3401_v33 = vor.u32 %v4554_v24, %v3398_v26  ;;  %v3837_v24 = vor.u32 %v4667_v17, %v3836_v16  ;;  %v4016_v39 = vld [vmem:[#allocation5 + $0x520] sm:$0xf]  ;;  %v3764_v40 = vld [vmem:[#allocation5 + $0x328] sm:$0xf]  ;;  %v4640_v53 = vld [vmem:[#allocation5 + $0x300] sm:$0xf0] }
  0x61   :  { %1590 = vmatpush.bf16.msra.mxu2 %v3869_v34  ;;  %v3689_v34 = vor.u32 %v4626_v27, %v3686_v28  ;;  %v4052_v27 = vld [vmem:[#allocation5 + $0x568] sm:$0xf]  ;;  %v3800_v28 = vld [vmem:[#allocation5 + $0x370] sm:$0xf]  ;;  %v3406_v60 = vld [vmem:[#allocation5 + $0x7c] sm:$0xf0] }
  0x62   :  { %1604 = vmatpush.bf16.msra.mxu3 %v4157_v38  ;;  %v3977_v38 = vor.u32 %v4698_v29, %v3974_v30  ;;  %v4658_v29 = vld [vmem:[#allocation5 + $0x390] sm:$0xf0]  ;;  %v3517_v30 = vor.u32 %v4582_v22, %v3514_v23  ;;  %v3692_v2 = vld [vmem:[#allocation5 + $0x298] sm:$0xf]  ;;  %v4631_v3 = vld [vmem:[#allocation5 + $0x2b8] sm:$0xf0] }
  0x63   :  { %1563 = vmatpush.bf16.msra.mxu0 %v4117_v44  ;;  %v4757_v44 = vld [vmem:[#allocation5 + $0x6a8] sm:$0xf0]  ;;  %v3801_v36 = vor.u32 %v4658_v29, %v3800_v28  ;;  %v4614_v10 = vld [vmem:[#allocation5 + $0x230] sm:$0xf0]  ;;  %s3333_s21 = sshll.u32 %s5058_s20, 4  ;;  %s3334_s21 = int_to_ptr.vmem [resolvable:$true] %s3333_s21 }
  0x64   :  { %1577 = vmatpush.bf16.msra.mxu1 %v3545_v45  ;;  %v3937_v45 = vor.u32 %v4693_v35, %v3936_v32  ;;  %v4197_v51 = vor.u32 %v4757_v44, %v4196_v43  ;;  %v3512_v32 = vld [vmem:[#allocation5 + $0x130] sm:$0xf]  ;;  %v4712_v43 = vld [vmem:[#allocation5 + $0x540] sm:$0xf0]  ;;  %v3476_v44 = vld [vmem:[#allocation5 + $0xe8] sm:$0xf] }
  0x65   :  { %1591 = vmatpush.bf16.msra.mxu2 %v3833_v46  ;;  %v4609_v46 = vld [vmem:[#allocation5 + $0x20c] sm:$0xf]  ;;  %v3478_v35 = vld [vmem:[#allocation5 + $0x10c] sm:$0xf0]  ;;  %v4546_v11 = vld [vmem:[#allocation5 + $0x14] sm:$0xf] }
  0x66   :  { %1605 = vmatpush.bf16.msra.mxu3 %v4121_v50  ;;  %v3941_v50 = vor.u32 %v4689_v41, %v3938_v42  ;;  %v3625_v55 = vor.u32 %v4609_v46, %v3622_v47  ;;  %v4649_v41 = vld [vmem:[#allocation5 + $0x348] sm:$0xf0]  ;;  %v4564_v46 = vld [vmem:[#allocation5 + $0xa4] sm:$0xf]  ;;  %v3442_v47 = vld [vmem:[#allocation5 + $0xc4] sm:$0xf0] }
  0x67   :  { %1564 = vmatpush.bf16.msra.mxu0 %v4081_v56  ;;  %v4748_v56 = vld [vmem:[#allocation5 + $0x660] sm:$0xf0]  ;;  %v3445_v54 = vor.u32 %v4564_v46, %v3442_v47  ;;  %v4605_v28 = vld [vmem:[#allocation5 + $0x1e8] sm:$0xf0] }
  0x68   :  { %1578 = vmatpush.bf16.msra.mxu1 %v3509_v57  ;;  %v3620_v57 = vld [vmem:[#allocation5 + $0x208] sm:$0xf]  ;;  %v4681_v29 = vld [vmem:[#allocation5 + $0x44c] sm:$0xf]  ;;  %v4668_v46 = vld [vmem:[#allocation5 + $0x3e0] sm:$0xf0] }
  0x69   :  { %1592 = vmatpush.bf16.msra.mxu2 %v3797_v59  ;;  %v4613_v59 = vld [vmem:[#allocation5 + $0x228] sm:$0xf0] }
  0x6a   :  { %1606 = vmatpush.bf16.msra.mxu3 %v4085_v63  ;;  %v4161_v63 = vor.u32 %v4748_v56, %v4160_v52  ;;  %v3621_v0 = vor.u32 %v4613_v59, %v3620_v57  ;;  %v3728_v52 = vld [vmem:[#allocation5 + $0x2e0] sm:$0xf]  ;;  %v4568_v57 = vld [vmem:[#allocation5 + $0xc0] sm:$0xf0]  ;;  %v4555_v59 = vld [vmem:[#allocation5 + $0x5c] sm:$0xf] }
  0x6b   :  { %1565 = vmatpush.bf16.msra.mxu0 %v4045_v6  ;;  %v4739_v6 = vld [vmem:[#allocation5 + $0x618] sm:$0xf0]  ;;  %v3440_v56 = vld [vmem:[#allocation5 + $0xa0] sm:$0xf]  ;;  %v3729_v61 = vor.u32 %v4640_v53, %v3728_v52 }
  0x6c   :  { %1579 = vmatpush.bf16.msra.mxu1 %v3473_v7  ;;  %v3584_v7 = vld [vmem:[#allocation5 + $0x1c0] sm:$0xf] }
  0x6d   :  { %1593 = vmatpush.bf16.msra.mxu2 %v3761_v8  ;;  %v4604_v8 = vld [vmem:[#allocation5 + $0x1e0] sm:$0xf0]  ;;  %v4126_v52 = vld [vmem:[#allocation5 + $0x61c] sm:$0xf0] }
  0x6e   :  { %1607 = vmatpush.bf16.msra.mxu3 %v4049_v13  ;;  %v4125_v13 = vor.u32 %v4739_v6, %v4124_v1  ;;  %v3585_v14 = vor.u32 %v4604_v8, %v3584_v7  ;;  %v4694_v1 = vld [vmem:[#allocation5 + $0x4b0] sm:$0xf0]  ;;  %v3628_v6 = vld [vmem:[#allocation5 + $0x210] sm:$0xf]  ;;  %v3404_v7 = vld [vmem:[#allocation5 + $0x58] sm:$0xf] }
  0x6f   :  { %1566 = vmatpush.bf16.msra.mxu0 %v4009_v19  ;;  %v4730_v19 = vld [vmem:[#allocation5 + $0x5d0] sm:$0xf0]  ;;  %v4559_v8 = vld [vmem:[#allocation5 + $0x78] sm:$0xf0]  ;;  %v3629_v22 = vor.u32 %v4614_v10, %v3628_v6  ;;  %v3802_v6 = vld [vmem:[#allocation5 + $0x394] sm:$0xf0] }
  0x70   :  { %1580 = vmatpush.bf16.msra.mxu1 %v3437_v20  ;;  %v3548_v20 = vld [vmem:[#allocation5 + $0x178] sm:$0xf]  ;;  %v3405_v17 = vor.u32 %v4559_v8, %v3404_v7  ;;  %v3772_v7 = vld [vmem:[#allocation5 + $0x330] sm:$0xf]  ;;  %v4650_v8 = vld [vmem:[#allocation5 + $0x350] sm:$0xf0] }
  0x71   :  { %1594 = vmatpush.bf16.msra.mxu2 %v3725_v21  ;;  %v4595_v21 = vld [vmem:[#allocation5 + $0x198] sm:$0xf0] }
  0x72   :  { %1608 = vmatpush.bf16.msra.mxu3 %v4013_v25  ;;  %v4089_v25 = vor.u32 %v4730_v19, %v4088_v15  ;;  %v3549_v26 = vor.u32 %v4595_v21, %v3548_v20  ;;  %v4686_v15 = vld [vmem:[#allocation5 + $0x470] sm:$0xf0]  ;;  %v3656_v19 = vld [vmem:[#allocation5 + $0x250] sm:$0xf]  ;;  %v4753_v21 = vld [vmem:[#allocation5 + $0x68c] sm:$0xf] }
  0x73   :  { %1567 = vmatpush.bf16.msra.mxu0 %v3973_v31  ;;  %v4721_v31 = vld [vmem:[#allocation5 + $0x588] sm:$0xf0]  ;;  %v4622_v20 = vld [vmem:[#allocation5 + $0x270] sm:$0xf0] }
  0x74   :  { %1581 = vmatpush.bf16.msra.mxu1 %v3401_v33  ;;  %v4586_v33 = vld [vmem:[#allocation5 + $0x150] sm:$0xf0]  ;;  %v4053_v37 = vor.u32 %v4721_v31, %v4052_v27  ;;  %v3657_v31 = vor.u32 %v4622_v20, %v3656_v19  ;;  %v3766_v19 = vld [vmem:[#allocation5 + $0x34c] sm:$0xf0]  ;;  %v3736_v20 = vld [vmem:[#allocation5 + $0x2e8] sm:$0xf] }
  0x75   :  { %1595 = vmatpush.bf16.msra.mxu2 %v3689_v34  ;;  %v4573_v34 = vld [vmem:[#allocation5 + $0xec] sm:$0xf] }
  0x76   :  { %1609 = vmatpush.bf16.msra.mxu3 %v3977_v38  ;;  %v3513_v38 = vor.u32 %v4586_v33, %v3512_v32  ;;  %v3481_v42 = vor.u32 %v4573_v34, %v3478_v35  ;;  %v3880_v32 = vld [vmem:[#allocation5 + $0x408] sm:$0xf]  ;;  %v4677_v33 = vld [vmem:[#allocation5 + $0x428] sm:$0xf0] }
  0x77   :  { %1568 = vmatpush.bf16.msra.mxu0 %v3937_v45  ;;  %v4577_v45 = vld [vmem:[#allocation5 + $0x108] sm:$0xf0] }
  0x78   :  { %1582 = vmatpush.bf16.msra.mxu1 %v3365_v48  ;;  %v3765_v48 = vor.u32 %v4649_v41, %v3764_v40  ;;  %v4162_v40 = vld [vmem:[#allocation5 + $0x664] sm:$0xf0]  ;;  %v3881_v41 = vor.u32 %v4677_v33, %v3880_v32  ;;  %v3700_v32 = vld [vmem:[#allocation5 + $0x2a0] sm:$0xf]  ;;  %v4632_v33 = vld [vmem:[#allocation5 + $0x2c0] sm:$0xf0] }
  0x79   :  { %1596 = vmatpush.bf16.msra.mxu2 %v3653_v49  ;;  %v4017_v49 = vor.u32 %v4712_v43, %v4016_v39  ;;  %v4744_v39 = vld [vmem:[#allocation5 + $0x644] sm:$0xf] }
  0x7a   :  { %1610 = vmatpush.bf16.msra.mxu3 %v3941_v50  ;;  %1569 = vmatmul.bf16.vlgmr.msra.gmra.mxu0 %v5113_v9  ;;  %v3477_v50 = vor.u32 %v4577_v45, %v3476_v44  ;;  %v4672_v43 = vld [vmem:[#allocation5 + $0x404] sm:$0xf]  ;;  %v3874_v44 = vld [vmem:[#allocation5 + $0x424] sm:$0xf0]  ;;  %v3844_v45 = vld [vmem:[#allocation5 + $0x3c0] sm:$0xf]  ;;  %v4165_v47 = vor.u32 %v4744_v39, %v4162_v40 }
  0x7b   :  { %1583 = vmatmul.bf16.vlgmr.msra.gmra.mxu1 %v5107_v58  ;;  %1617 = vmatpush.bf16.msrb.mxu0 %v3621_v0  ;;  %v3441_v0 = vor.u32 %v4568_v57, %v3440_v56  ;;  %v3845_v53 = vor.u32 %v4668_v46, %v3844_v45  ;;  %v3838_v56 = vld [vmem:[#allocation5 + $0x3dc] sm:$0xf0]  ;;  %v3808_v57 = vld [vmem:[#allocation5 + $0x378] sm:$0xf]  ;;  %v4699_v39 = vld [vmem:[#allocation5 + $0x4dc] sm:$0xf] }
  0x7c   :  { %1597 = vmatmul.bf16.vlgmr.msra.gmra.mxu2 %v5110_v5  ;;  %1631 = vmatpush.bf16.msrb.mxu1 %v3909_v62  ;;  %v3944_v62 = vld [vmem:[#allocation5 + $0x490] sm:$0xf]  ;;  %v3982_v40 = vld [vmem:[#allocation5 + $0x4fc] sm:$0xf0]  ;;  %v3918_v45 = vld [vmem:[#allocation5 + $0x474] sm:$0xf0] }
  0x7d   :  { %1645 = vmatpush.bf16.msrb.mxu2 %v4197_v51  ;;  %1611 = vmatmul.bf16.vlgmr.msra.gmra.mxu3 %v5113_v9  ;;  %v3980_v51 = vld [vmem:[#allocation5 + $0x4d8] sm:$0xf]  ;;  %v3945_v16 = vor.u32 %v4694_v1, %v3944_v62 }
  0x7e   :  { %1659 = vmatpush.bf16.msrb.mxu3 %v3625_v55  ;;  %v4703_v55 = vld [vmem:[#allocation5 + $0x4f8] sm:$0xf0]  ;;  %v4090_v1 = vld [vmem:[#allocation5 + $0x5d4] sm:$0xf0] }
  0x7f   :  { %1618 = vmatpush.bf16.msrb.mxu0 %v3585_v14  ;;  %v3916_v14 = vld [vmem:[#allocation5 + $0x450] sm:$0xf]  ;;  %v3664_v46 = vld [vmem:[#allocation5 + $0x258] sm:$0xf] }
  0x80   :  { %1632 = vmatpush.bf16.msrb.mxu1 %v3873_v12  ;;  %v3370_v12 = vld [vmem:[#allocation5 + $0x34] sm:$0xf0]  ;;  %v3917_v27 = vor.u32 %v4686_v15, %v3916_v14  ;;  %v4717_v14 = vld [vmem:[#allocation5 + $0x56c] sm:$0xf]  ;;  %v4054_v15 = vld [vmem:[#allocation5 + $0x58c] sm:$0xf0] }
  0x81   :  { %1646 = vmatpush.bf16.msrb.mxu2 %v4161_v63  ;;  %v3981_v63 = vor.u32 %v4703_v55, %v3980_v51  ;;  %v3373_v23 = vor.u32 %v4546_v11, %v3370_v12  ;;  %v4735_v51 = vld [vmem:[#allocation5 + $0x5fc] sm:$0xf] }
  0x82   :  { %1660 = vmatpush.bf16.msrb.mxu3 %v3589_v4  ;;  %v3409_v4 = vor.u32 %v4555_v59, %v3406_v60  ;;  %v4663_v55 = vld [vmem:[#allocation5 + $0x3bc] sm:$0xf]  ;;  %v4129_v60 = vor.u32 %v4735_v51, %v4126_v52 }
  0x83   :  { %1619 = vmatpush.bf16.msrb.mxu0 %v3549_v26  ;;  %v4550_v26 = vld [vmem:[#allocation5 + $0x30] sm:$0xf0]  ;;  %v4659_v59 = vld [vmem:[#allocation5 + $0x398] sm:$0xf0]  ;;  %v3841_v62 = vor.u32 %v4663_v55, %v3838_v56  ;;  %v3946_v55 = vld [vmem:[#allocation5 + $0x4b4] sm:$0xf0] }
  0x84   :  { %1633 = vmatpush.bf16.msrb.mxu1 %v3837_v24  ;;  %v4198_v24 = vld [vmem:[#allocation5 + $0x6ac] sm:$0xf0]  ;;  %v4610_v56 = vld [vmem:[#allocation5 + $0x214] sm:$0xf] }
  0x85   :  { %1647 = vmatpush.bf16.msrb.mxu2 %v4125_v13  ;;  %v3693_v13 = vor.u32 %v4631_v3, %v3692_v2  ;;  %v4201_v34 = vor.u32 %v4753_v21, %v4198_v24  ;;  %v3809_v2 = vor.u32 %v4659_v59, %v3808_v57  ;;  %v4578_v3 = vld [vmem:[#allocation5 + $0x110] sm:$0xf0]  ;;  %v4641_v21 = vld [vmem:[#allocation5 + $0x308] sm:$0xf0] }
  0x86   :  { %1661 = vmatpush.bf16.msrb.mxu3 %v3553_v18  ;;  %v3592_v18 = vld [vmem:[#allocation5 + $0x1c8] sm:$0xf] }
  0x87   :  { %1620 = vmatpush.bf16.msrb.mxu0 %v3513_v38  ;;  %v3556_v38 = vld [vmem:[#allocation5 + $0x180] sm:$0xf] }
  0x88   :  { %1634 = vmatpush.bf16.msrb.mxu1 %v3801_v36  ;;  %v3593_v36 = vor.u32 %v4605_v28, %v3592_v18  ;;  %v4645_v18 = vld [vmem:[#allocation5 + $0x32c] sm:$0xf]  ;;  %v3737_v28 = vor.u32 %v4641_v21, %v3736_v20  ;;  %v4134_v20 = vld [vmem:[#allocation5 + $0x624] sm:$0xf0] }
  0x89   :  { %1648 = vmatpush.bf16.msrb.mxu2 %v4089_v25  ;;  %v3368_v25 = vld [vmem:[#allocation5 + $0x10] sm:$0xf]  ;;  %v3769_v24 = vor.u32 %v4645_v18, %v3766_v19  ;;  %v4749_v18 = vld [vmem:[#allocation5 + $0x668] sm:$0xf0]  ;;  %v4736_v19 = vld [vmem:[#allocation5 + $0x604] sm:$0xf] }
  0x8a   :  { %1662 = vmatpush.bf16.msrb.mxu3 %v3517_v30  ;;  %v3910_v30 = vld [vmem:[#allocation5 + $0x46c] sm:$0xf0]  ;;  %v3369_v35 = vor.u32 %v4550_v26, %v3368_v25  ;;  %v3412_v25 = vld [vmem:[#allocation5 + $0x60] sm:$0xf]  ;;  %v4708_v26 = vld [vmem:[#allocation5 + $0x524] sm:$0xf] }
  0x8b   :  { %1621 = vmatpush.bf16.msrb.mxu0 %v3477_v50  ;;  %v3520_v50 = vld [vmem:[#allocation5 + $0x138] sm:$0xf] }
  0x8c   :  { %1635 = vmatpush.bf16.msrb.mxu1 %v3765_v48 }
  0x8d   :  { %1649 = vmatpush.bf16.msrb.mxu2 %v4053_v37  ;;  %v3913_v37 = vor.u32 %v4681_v29, %v3910_v30  ;;  %v4560_v29 = vld [vmem:[#allocation5 + $0x80] sm:$0xf0] }
  0x8e   :  { %1663 = vmatpush.bf16.msrb.mxu3 %v3481_v42  ;;  %v4596_v42 = vld [vmem:[#allocation5 + $0x1a0] sm:$0xf0] }
  0x8f   :  { %1622 = vmatpush.bf16.msrb.mxu0 %v3441_v0  ;;  %v3557_v48 = vor.u32 %v4596_v42, %v3556_v38  ;;  %v4726_v0 = vld [vmem:[#allocation5 + $0x5b4] sm:$0xf]  ;;  %v4636_v30 = vld [vmem:[#allocation5 + $0x2e4] sm:$0xf]  ;;  %v4551_v38 = vld [vmem:[#allocation5 + $0x38] sm:$0xf0] }
  0x90   :  { %1636 = vmatpush.bf16.msrb.mxu1 %v3729_v61  ;;  %v4093_v10 = vor.u32 %v4726_v0, %v4090_v1  ;;  %v4682_v42 = vld [vmem:[#allocation5 + $0x454] sm:$0xf]  ;;  %v3882_v0 = vld [vmem:[#allocation5 + $0x42c] sm:$0xf0] }
  0x91   :  { %1650 = vmatpush.bf16.msrb.mxu2 %v4017_v49  ;;  %v3877_v49 = vor.u32 %v4672_v43, %v3874_v44  ;;  %v4627_v43 = vld [vmem:[#allocation5 + $0x29c] sm:$0xf]  ;;  %v3694_v44 = vld [vmem:[#allocation5 + $0x2bc] sm:$0xf0]  ;;  %v3921_v57 = vor.u32 %v4682_v42, %v3918_v45  ;;  %v4204_v1 = vld [vmem:[#allocation5 + $0x690] sm:$0xf] }
  0x92   :  { %1664 = vmatpush.bf16.msrb.mxu3 %v3445_v54  ;;  %v4587_v54 = vld [vmem:[#allocation5 + $0x158] sm:$0xf0]  ;;  %v3697_v52 = vor.u32 %v4627_v43, %v3694_v44  ;;  %v4718_v43 = vld [vmem:[#allocation5 + $0x574] sm:$0xf]  ;;  %v4062_v44 = vld [vmem:[#allocation5 + $0x594] sm:$0xf0] }
  0x93   :  { %1623 = vmatpush.bf16.msrb.mxu0 %v3405_v17  ;;  %v3521_v61 = vor.u32 %v4587_v54, %v3520_v50  ;;  %v4569_v17 = vld [vmem:[#allocation5 + $0xc8] sm:$0xf0]  ;;  %v4206_v50 = vld [vmem:[#allocation5 + $0x6b4] sm:$0xf0]  ;;  %v4690_v54 = vld [vmem:[#allocation5 + $0x494] sm:$0xf] }
  0x94   :  { %1637 = vmatpush.bf16.msrb.mxu1 %v3693_v13  ;;  %v3448_v13 = vld [vmem:[#allocation5 + $0xa8] sm:$0xf]  ;;  %v4731_v42 = vld [vmem:[#allocation5 + $0x5d8] sm:$0xf0] }
  0x95   :  { %1651 = vmatpush.bf16.msrb.mxu2 %v3981_v63  ;;  %v3484_v63 = vld [vmem:[#allocation5 + $0xf0] sm:$0xf] }
  0x96   :  { %1665 = vmatpush.bf16.msrb.mxu3 %v3409_v4  ;;  %v4654_v4 = vld [vmem:[#allocation5 + $0x374] sm:$0xf]  ;;  %v3485_v11 = vor.u32 %v4578_v3, %v3484_v63  ;;  %v3949_v3 = vor.u32 %v4690_v54, %v3946_v55  ;;  %v4709_v55 = vld [vmem:[#allocation5 + $0x52c] sm:$0xf] }
  0x97   :  { %1624 = vmatpush.bf16.msrb.mxu0 %v3369_v35  ;;  %v3805_v12 = vor.u32 %v4654_v4, %v3802_v6  ;;  %v3376_v35 = vld [vmem:[#allocation5 + $0x18] sm:$0xf]  ;;  %v4745_v4 = vld [vmem:[#allocation5 + $0x64c] sm:$0xf]  ;;  %v4170_v6 = vld [vmem:[#allocation5 + $0x66c] sm:$0xf0] }
  0x98   :  { %1638 = vmatpush.bf16.msrb.mxu1 %v3657_v31  ;;  %v3730_v31 = vld [vmem:[#allocation5 + $0x304] sm:$0xf0]  ;;  %v3377_v51 = vor.u32 %v4551_v38, %v3376_v35  ;;  %v3522_v38 = vld [vmem:[#allocation5 + $0x15c] sm:$0xf0]  ;;  %v4722_v54 = vld [vmem:[#allocation5 + $0x590] sm:$0xf0] }
  0x99   :  { %1652 = vmatpush.bf16.msrb.mxu2 %v3945_v16  ;;  %v3773_v16 = vor.u32 %v4650_v8, %v3772_v7 }
  0x9a   :  { %1666 = vmatpush.bf16.msrb.mxu3 %v3373_v23  ;;  %1625 = vmatmul.bf16.vlgmr.msrb.gmra.mxu0 %v5107_v58  ;;  %v3449_v23 = vor.u32 %v4569_v17, %v3448_v13  ;;  %v4601_v13 = vld [vmem:[#allocation5 + $0x1cc] sm:$0xf]  ;;  %v4168_v17 = vld [vmem:[#allocation5 + $0x648] sm:$0xf] }
  0x9b   :  { %1673 = vmatpush.bf16.msra.mxu0 %v3913_v37  ;;  %1639 = vmatmul.bf16.vlgmr.msrb.gmra.mxu1 %v5110_v5  ;;  %v3733_v37 = vor.u32 %v4636_v30, %v3730_v31  ;;  %v4740_v30 = vld [vmem:[#allocation5 + $0x620] sm:$0xf0]  ;;  %v4727_v31 = vld [vmem:[#allocation5 + $0x5bc] sm:$0xf] }
  0x9c   :  { %1653 = vmatmul.bf16.vlgmr.msrb.gmra.mxu2 %v5113_v9  ;;  %1687 = vmatpush.bf16.msra.mxu1 %v4201_v34 }
  0x9d   :  { %1701 = vmatpush.bf16.msra.mxu2 %v3629_v22  ;;  %1667 = vmatmul.bf16.vlgmr.msrb.gmra.mxu3 %v5107_v58  ;;  %v4057_v22 = vor.u32 %v4717_v14, %v4054_v15  ;;  %v3594_v14 = vld [vmem:[#allocation5 + $0x1ec] sm:$0xf0]  ;;  %v4173_v15 = vor.u32 %v4745_v4, %v4170_v6  ;;  %v4700_v4 = vld [vmem:[#allocation5 + $0x4e4] sm:$0xf]  ;;  %v3990_v6 = vld [vmem:[#allocation5 + $0x504] sm:$0xf0] }
  0x9e   :  { %1715 = vmatpush.bf16.msra.mxu3 %v3917_v27  ;;  %v4018_v27 = vld [vmem:[#allocation5 + $0x544] sm:$0xf0]  ;;  %v3597_v21 = vor.u32 %v4601_v13, %v3594_v14  ;;  %v3993_v14 = vor.u32 %v4700_v4, %v3990_v6 }
  0x9f   :  { %1674 = vmatpush.bf16.msra.mxu0 %v3877_v49  ;;  %v4021_v34 = vor.u32 %v4708_v26, %v4018_v27  ;;  %v4754_v49 = vld [vmem:[#allocation5 + $0x694] sm:$0xf]  ;;  %v3558_v26 = vld [vmem:[#allocation5 + $0x1a4] sm:$0xf0]  ;;  %v4137_v27 = vor.u32 %v4736_v19, %v4134_v20  ;;  %v3954_v19 = vld [vmem:[#allocation5 + $0x4bc] sm:$0xf0] }
  0xa0   :  { %1688 = vmatpush.bf16.msra.mxu1 %v4165_v47  ;;  %v4623_v47 = vld [vmem:[#allocation5 + $0x278] sm:$0xf0]  ;;  %v4209_v63 = vor.u32 %v4754_v49, %v4206_v50  ;;  %v4574_v49 = vld [vmem:[#allocation5 + $0xf4] sm:$0xf]  ;;  %v3486_v50 = vld [vmem:[#allocation5 + $0x114] sm:$0xf0] }
  0xa1   :  { %1702 = vmatpush.bf16.msra.mxu2 %v3593_v36  ;;  %v3413_v36 = vor.u32 %v4560_v29, %v3412_v25  ;;  %v3665_v59 = vor.u32 %v4623_v47, %v3664_v46  ;;  %v4592_v25 = vld [vmem:[#allocation5 + $0x184] sm:$0xf]  ;;  %v4132_v29 = vld [vmem:[#allocation5 + $0x600] sm:$0xf]  ;;  %v3414_v13 = vld [vmem:[#allocation5 + $0x84] sm:$0xf0] }
  0xa2   :  { %1716 = vmatpush.bf16.msra.mxu3 %v3881_v41  ;;  %v3701_v41 = vor.u32 %v4632_v33, %v3700_v32  ;;  %v4098_v32 = vld [vmem:[#allocation5 + $0x5dc] sm:$0xf0]  ;;  %v3561_v33 = vor.u32 %v4592_v25, %v3558_v26  ;;  %v4133_v35 = vor.u32 %v4740_v30, %v4132_v29  ;;  %v3952_v26 = vld [vmem:[#allocation5 + $0x498] sm:$0xf] }
  0xa3   :  { %1675 = vmatpush.bf16.msra.mxu0 %v3841_v62  ;;  %v3658_v62 = vld [vmem:[#allocation5 + $0x274] sm:$0xf0] }
  0xa4   :  { %1689 = vmatpush.bf16.msra.mxu1 %v4129_v60  ;;  %v3630_v60 = vld [vmem:[#allocation5 + $0x234] sm:$0xf0] }
  0xa5   :  { %1703 = vmatpush.bf16.msra.mxu2 %v3557_v48  ;;  %v3985_v48 = vor.u32 %v4699_v39, %v3982_v40  ;;  %v3633_v7 = vor.u32 %v4610_v56, %v3630_v60  ;;  %v4101_v39 = vor.u32 %v4727_v31, %v4098_v32  ;;  %v3774_v40 = vld [vmem:[#allocation5 + $0x354] sm:$0xf0]  ;;  %v4026_v56 = vld [vmem:[#allocation5 + $0x54c] sm:$0xf0] }
  0xa6   :  { %1717 = vmatpush.bf16.msra.mxu3 %v3845_v53  ;;  %v4673_v53 = vld [vmem:[#allocation5 + $0x40c] sm:$0xf] }
  0xa7   :  { %1676 = vmatpush.bf16.msra.mxu0 %v3805_v12  ;;  %v4664_v12 = vld [vmem:[#allocation5 + $0x3c4] sm:$0xf] }
  0xa8   :  { %1690 = vmatpush.bf16.msra.mxu1 %v4093_v10  ;;  %v3885_v10 = vor.u32 %v4673_v53, %v3882_v0  ;;  %v4060_v53 = vld [vmem:[#allocation5 + $0x570] sm:$0xf]  ;;  %v4029_v0 = vor.u32 %v4709_v55, %v4026_v56 }
  0xa9   :  { %1704 = vmatpush.bf16.msra.mxu2 %v3521_v61  ;;  %v4618_v61 = vld [vmem:[#allocation5 + $0x254] sm:$0xf]  ;;  %v4061_v60 = vor.u32 %v4722_v54, %v4060_v53 }
  0xaa   :  { %1718 = vmatpush.bf16.msra.mxu3 %v3809_v2  ;;  %v4758_v2 = vld [vmem:[#allocation5 + $0x6b0] sm:$0xf0]  ;;  %v3661_v8 = vor.u32 %v4618_v61, %v3658_v62  ;;  %v4628_v61 = vld [vmem:[#allocation5 + $0x2a4] sm:$0xf]  ;;  %v4565_v62 = vld [vmem:[#allocation5 + $0xac] sm:$0xf] }
  0xab   :  { %1677 = vmatpush.bf16.msra.mxu0 %v3769_v24  ;;  %v4655_v24 = vld [vmem:[#allocation5 + $0x37c] sm:$0xf] }
  0xac   :  { %1691 = vmatpush.bf16.msra.mxu1 %v4057_v22 }
  0xad   :  { %1705 = vmatpush.bf16.msra.mxu2 %v3485_v11  ;;  %v4205_v11 = vor.u32 %v4758_v2, %v4204_v1  ;;  %v3702_v1 = vld [vmem:[#allocation5 + $0x2c4] sm:$0xf0] }
  0xae   :  { %1719 = vmatpush.bf16.msra.mxu3 %v3773_v16  ;;  %v3846_v16 = vld [vmem:[#allocation5 + $0x3e4] sm:$0xf0] }
  0xaf   :  { %1678 = vmatpush.bf16.msra.mxu0 %v3733_v37  ;;  %v3849_v22 = vor.u32 %v4664_v12, %v3846_v16  ;;  %v4583_v37 = vld [vmem:[#allocation5 + $0x13c] sm:$0xf]  ;;  %v4024_v2 = vld [vmem:[#allocation5 + $0x528] sm:$0xf]  ;;  %v4556_v12 = vld [vmem:[#allocation5 + $0x64] sm:$0xf] }
  0xb0   :  { %1692 = vmatpush.bf16.msra.mxu1 %v4021_v34  ;;  %v3525_v45 = vor.u32 %v4583_v37, %v3522_v38  ;;  %v3988_v16 = vld [vmem:[#allocation5 + $0x4e0] sm:$0xf]  ;;  %v3417_v20 = vor.u32 %v4556_v12, %v3414_v13 }
  0xb1   :  { %1706 = vmatpush.bf16.msra.mxu2 %v3449_v23  ;;  %v4169_v23 = vor.u32 %v4749_v18, %v4168_v17  ;;  %v4704_v17 = vld [vmem:[#allocation5 + $0x500] sm:$0xf0]  ;;  %v4691_v18 = vld [vmem:[#allocation5 + $0x49c] sm:$0xf] }
  0xb2   :  { %1720 = vmatpush.bf16.msra.mxu3 %v3737_v28  ;;  %v3810_v28 = vld [vmem:[#allocation5 + $0x39c] sm:$0xf0]  ;;  %v3957_v25 = vor.u32 %v4691_v18, %v3954_v19  ;;  %v4750_v18 = vld [vmem:[#allocation5 + $0x670] sm:$0xf0]  ;;  %v3924_v19 = vld [vmem:[#allocation5 + $0x458] sm:$0xf] }
  0xb3   :  { %1679 = vmatpush.bf16.msra.mxu0 %v3697_v52  ;;  %v3813_v34 = vor.u32 %v4655_v24, %v3810_v28  ;;  %v3738_v52 = vld [vmem:[#allocation5 + $0x30c] sm:$0xf0]  ;;  %v3378_v24 = vld [vmem:[#allocation5 + $0x3c] sm:$0xf0] }
  0xb4   :  { %1693 = vmatpush.bf16.msra.mxu1 %v3985_v48  ;;  %v4637_v48 = vld [vmem:[#allocation5 + $0x2ec] sm:$0xf] }
  0xb5   :  { %1707 = vmatpush.bf16.msra.mxu2 %v3413_v36  ;;  %v4646_v36 = vld [vmem:[#allocation5 + $0x334] sm:$0xf] }
  0xb6   :  { %1721 = vmatpush.bf16.msra.mxu3 %v3701_v41  ;;  %v4096_v41 = vld [vmem:[#allocation5 + $0x5b8] sm:$0xf]  ;;  %v3777_v46 = vor.u32 %v4646_v36, %v3774_v40 }
  0xb7   :  { %1680 = vmatpush.bf16.msra.mxu0 %v3661_v8  ;;  %v4097_v47 = vor.u32 %v4731_v42, %v4096_v41  ;;  %v3705_v8 = vor.u32 %v4628_v61, %v3702_v1  ;;  %v1458_v30 = vpop.f32.mrf.mxu0  ;;  %v4212_v1 = vld [vmem:[#allocation5 + $0x698] sm:$0xf] }
  0xb8   :  { %1694 = vmatpush.bf16.msra.mxu1 %v3949_v3  ;;  %v4713_v3 = vld [vmem:[#allocation5 + $0x548] sm:$0xf0]  ;;  %v1472_v31 = vpop.f32.mrf.mxu1 }
  0xb9   :  { %1708 = vmatpush.bf16.msra.mxu2 %v3377_v51  ;;  %v4065_v51 = vor.u32 %v4718_v43, %v4062_v44  ;;  %v1473_v55 = vadd.f32 %v1472_v31, %v1458_v30  ;;  %v4140_v31 = vld [vmem:[#allocation5 + $0x608] sm:$0xf] }
  0xba   :  { %1722 = vmatpush.bf16.msra.mxu3 %v3665_v59  ;;  %1681 = vmatmul.bf16.vlgmr.msra.gmra.mxu0 %v5110_v5  ;;  %v3741_v59 = vor.u32 %v4637_v48, %v3738_v52 }
  0xbb   :  { %1729 = vmatpush.bf16.msrb.mxu0 %v4205_v11  ;;  %1695 = vmatmul.bf16.vlgmr.msra.gmra.mxu1 %v5113_v9  ;;  %v4619_v11 = vld [vmem:[#allocation5 + $0x25c] sm:$0xf] }
  0xbc   :  { %1709 = vmatmul.bf16.vlgmr.msra.gmra.mxu2 %v5107_v58  ;;  %1743 = vmatpush.bf16.msrb.mxu1 %v3633_v7 }
  0xbd   :  { %1757 = vmatpush.bf16.msrb.mxu2 %v3921_v57  ;;  %1723 = vmatmul.bf16.vlgmr.msra.gmra.mxu3 %v5110_v5  ;;  %v3489_v57 = vor.u32 %v4574_v49, %v3486_v50 }
  0xbe   :  { %1771 = vmatpush.bf16.msrb.mxu3 %v4209_v63  ;;  %v3450_v63 = vld [vmem:[#allocation5 + $0xcc] sm:$0xf0] }
  0xbf   :  { %1730 = vmatpush.bf16.msrb.mxu0 %v4169_v23  ;;  %v3453_v7 = vor.u32 %v4565_v62, %v3450_v63  ;;  %v4547_v23 = vld [vmem:[#allocation5 + $0x1c] sm:$0xf]  ;;  %v1486_v32 = vpop.f32.mrf.mxu2 }
  0xc0   :  { %1744 = vmatpush.bf16.msrb.mxu1 %v3597_v21  ;;  %v3381_v28 = vor.u32 %v4547_v23, %v3378_v24  ;;  %v1487_v6 = vadd.f32 %v1486_v32, %v1473_v55  ;;  %v4687_v24 = vld [vmem:[#allocation5 + $0x478] sm:$0xf0]  ;;  %v4741_v32 = vld [vmem:[#allocation5 + $0x628] sm:$0xf0] }
  0xc1   :  { %1758 = vmatpush.bf16.msrb.mxu2 %v3885_v10  ;;  %v4025_v10 = vor.u32 %v4713_v3, %v4024_v2  ;;  %v4759_v2 = vld [vmem:[#allocation5 + $0x6b8] sm:$0xf0] }
  0xc2   :  { %1772 = vmatpush.bf16.msrb.mxu3 %v4173_v15  ;;  %v3666_v15 = vld [vmem:[#allocation5 + $0x27c] sm:$0xf0]  ;;  %v4213_v4 = vor.u32 %v4759_v2, %v4212_v1 }
  0xc3   :  { %1731 = vmatpush.bf16.msrb.mxu0 %v4133_v35  ;;  %v3669_v21 = vor.u32 %v4619_v11, %v3666_v15  ;;  %v1474_v35 = vpop.f32.mrf.mxu1 }
  0xc4   :  { %1745 = vmatpush.bf16.msrb.mxu1 %v3561_v33  ;;  %v1500_v33 = vpop.f32.mrf.mxu3 }
  0xc5   :  { %1759 = vmatpush.bf16.msrb.mxu2 %v3849_v22  ;;  %v3989_v22 = vor.u32 %v4704_v17, %v3988_v16  ;;  %v4176_v17 = vld [vmem:[#allocation5 + $0x650] sm:$0xf] }
  0xc6   :  { %1773 = vmatpush.bf16.msrb.mxu3 %v4137_v27  ;;  %v4695_v27 = vld [vmem:[#allocation5 + $0x4b8] sm:$0xf0]  ;;  %v4177_v23 = vor.u32 %v4750_v18, %v4176_v17  ;;  %v4696_v17 = vld [vmem:[#allocation5 + $0x4c0] sm:$0xf0]  ;;  %v3708_v18 = vld [vmem:[#allocation5 + $0x2a8] sm:$0xf] }
  0xc7   :  { %1732 = vmatpush.bf16.msrb.mxu0 %v4097_v47  ;;  %v3953_v29 = vor.u32 %v4695_v27, %v3952_v26  ;;  %v1488_v36 = vpop.f32.mrf.mxu2  ;;  %v3925_v26 = vor.u32 %v4687_v24, %v3924_v19  ;;  %v4633_v19 = vld [vmem:[#allocation5 + $0x2c8] sm:$0xf0] }
  0xc8   :  { %1746 = vmatpush.bf16.msrb.mxu1 %v3525_v45 }
  0xc9   :  { %1760 = vmatpush.bf16.msrb.mxu2 %v3813_v34  ;;  %v1460_v34 = vpop.f32.mrf.mxu0 }
  0xca   :  { %1774 = vmatpush.bf16.msrb.mxu3 %v4101_v39  ;;  %v1475_v16 = vadd.f32 %v1474_v35, %v1460_v34  ;;  %v4141_v34 = vor.u32 %v4741_v32, %v4140_v31  ;;  %v4678_v35 = vld [vmem:[#allocation5 + $0x430] sm:$0xf0]  ;;  %v4244_v31 = vld [vmem:[#allocation7 + $0x30] sm:$0xf] }
  0xcb   :  { %1733 = vmatpush.bf16.msrb.mxu0 %v4061_v60 }
  0xcc   :  { %1747 = vmatpush.bf16.msrb.mxu1 %v3489_v57  ;;  %v1502_v37 = vpop.f32.mrf.mxu3  ;;  %v1489_v27 = vadd.f32 %v1488_v36, %v1475_v16 }
  0xcd   :  { %1761 = vmatpush.bf16.msrb.mxu2 %v3777_v46 }
  0xce   :  { %1775 = vmatpush.bf16.msrb.mxu3 %v4065_v51 }
  0xcf   :  { %1734 = vmatpush.bf16.msrb.mxu0 %v4025_v10 }
  0xd0   :  { %1748 = vmatpush.bf16.msrb.mxu1 %v3453_v7 }
  0xd1   :  { %1762 = vmatpush.bf16.msrb.mxu2 %v3741_v59 }
  0xd2   :  { %1776 = vmatpush.bf16.msrb.mxu3 %v4029_v0 }
  0xd3   :  { %1735 = vmatpush.bf16.msrb.mxu0 %v3989_v22 }
  0xd4   :  { %1749 = vmatpush.bf16.msrb.mxu1 %v3417_v20 }
  0xd5   :  { %1763 = vmatpush.bf16.msrb.mxu2 %v3705_v8 }
  0xd6   :  { %1777 = vmatpush.bf16.msrb.mxu3 %v3993_v14 }
  0xd7   :  { %1736 = vmatpush.bf16.msrb.mxu0 %v3953_v29  ;;  %v1514_v38 = vpop.f32.mrf.mxu0 }
  0xd8   :  { %1750 = vmatpush.bf16.msrb.mxu1 %v3381_v28  ;;  %v1528_v39 = vpop.f32.mrf.mxu1  ;;  %v1515_v56 = vadd.f32 %v1514_v38, %v1500_v33  ;;  %v3888_v33 = vld [vmem:[#allocation5 + $0x410] sm:$0xf]  ;;  %v4104_v38 = vld [vmem:[#allocation5 + $0x5c0] sm:$0xf] }
  0xd9   :  { %1764 = vmatpush.bf16.msrb.mxu2 %v3669_v21 }
  0xda   :  { %1778 = vmatpush.bf16.msrb.mxu3 %v3957_v25  ;;  %1737 = vmatmul.bf16.vlgmr.msrb.gmra.mxu0 %v5113_v9  ;;  %v1529_v7 = vadd.f32 %v1528_v39, %v1515_v56  ;;  %v4732_v39 = vld [vmem:[#allocation5 + $0x5e0] sm:$0xf0]  ;;  %v3780_v56 = vld [vmem:[#allocation5 + $0x338] sm:$0xf] }
  0xdb   :  { %1751 = vmatmul.bf16.vlgmr.msrb.gmra.mxu1 %v5107_v58  ;;  %v4105_v36 = vor.u32 %v4732_v39, %v4104_v38  ;;  %v3564_v38 = vld [vmem:[#allocation5 + $0x188] sm:$0xf]  ;;  %v4597_v39 = vld [vmem:[#allocation5 + $0x1a8] sm:$0xf0] }
  0xdc   :  { %1765 = vmatmul.bf16.vlgmr.msrb.gmra.mxu2 %v5110_v5  ;;  %v5145_v12 = vpack.c.bf16 %v1529_v7, %v1487_v6  ;;  %1799 = vmatpush.bf16.msra.mxu1 %v3925_v26  ;;  %v4642_v6 = vld [vmem:[#allocation5 + $0x310] sm:$0xf0] }
  0xdd   :  { %1779 = vmatmul.bf16.vlgmr.msrb.gmra.mxu3 %v5113_v9  ;;  %1813 = vmatpush.bf16.msra.mxu2 %v4213_v4  ;;  %v3744_v4 = vld [vmem:[#allocation5 + $0x2f0] sm:$0xf]  ;;  %v4606_v26 = vld [vmem:[#allocation5 + $0x1f0] sm:$0xf0] }
  0xdf   :  { %v1542_v40 = vpop.f32.mrf.mxu2  ;;  %v1516_v42 = vpop.f32.mrf.mxu0 }
  0xe0   :  { %v1556_v41 = vpop.f32.mrf.mxu3  ;;  %v1530_v43 = vpop.f32.mrf.mxu1  ;;  %v1517_v15 = vadd.f32 %v1516_v42, %v1502_v37  ;;  %v3889_v37 = vor.u32 %v4678_v35, %v3888_v33 }
  0xe1   :  { %v1557_v49 = vadd.f32 %v1556_v41, %v1542_v40  ;;  %1814 = vmatpush.bf16.msra.mxu2 %v4177_v23  ;;  %v3852_v40 = vld [vmem:[#allocation5 + $0x3c8] sm:$0xf]  ;;  %v4669_v41 = vld [vmem:[#allocation5 + $0x3e8] sm:$0xf0]  ;;  %v4770_v23 = vld [vmem:[#allocation7 + $0x50] sm:$0xf0] }
  0xe2   :  { %v1531_v20 = vadd.f32 %v1530_v43, %v1517_v15  ;;  %1800 = vmatpush.bf16.msra.mxu1 %v3889_v37  ;;  %v3853_v42 = vor.u32 %v4669_v41, %v3852_v40  ;;  %v4068_v43 = vld [vmem:[#allocation5 + $0x578] sm:$0xf]  ;;  %v3960_v15 = vld [vmem:[#allocation5 + $0x4a0] sm:$0xf]  ;;  %v3565_v40 = vor.u32 %v4597_v39, %v3564_v38  ;;  %v4764_v41 = vld [vmem:[#allocation7 + $0x20] sm:$0xf0] }
  0xe3   :  { %v5184_v38 = vld [vmem:[#allocation10] sm:$0xff] }
  0xe4   :  { %v5153_v30 = vpack.c.bf16 %v1531_v20, %v1489_v27  ;;  %v3961_v20 = vor.u32 %v4696_v17, %v3960_v15 }
  0xe5   :  { %1815 = vmatpush.bf16.msra.mxu2 %v4141_v34  ;;  %v4767_v34 = vld [vmem:[#allocation7 + $0x38] sm:$0xf0] }
  0xe6   :  { %1801 = vmatpush.bf16.msra.mxu1 %v3853_v42  ;;  %v4245_v37 = vor.u32 %v4767_v34, %v4244_v31 }
  0xe7   :  { %v1544_v44 = vpop.f32.mrf.mxu2 }
  0xe8   :  { %v1558_v45 = vpop.f32.mrf.mxu3 }
  0xe9   :  { %v1559_v62 = vadd.f32 %v1558_v45, %v1544_v44  ;;  %1816 = vmatpush.bf16.msra.mxu2 %v4105_v36  ;;  %v4723_v44 = vld [vmem:[#allocation5 + $0x598] sm:$0xf0]  ;;  %v3816_v45 = vld [vmem:[#allocation5 + $0x380] sm:$0xf]  ;;  %v4232_v36 = vld [vmem:[#allocation7 + $0x18] sm:$0xf] }
  0xea   :  { %v4233_v42 = vor.u32 %v4764_v41, %v4232_v36 }
  0xf7   :  { %v1570_v46 = vpop.f32.mrf.mxu0 }
  0xf8   :  { %v1584_v47 = vpop.f32.mrf.mxu1  ;;  %v1571_v52 = vadd.f32 %v1570_v46, %v1557_v49  ;;  %v4069_v46 = vor.u32 %v4723_v44, %v4068_v43  ;;  %v3528_v43 = vld [vmem:[#allocation5 + $0x140] sm:$0xf]  ;;  %v4588_v44 = vld [vmem:[#allocation5 + $0x160] sm:$0xf0] }
  0xfa   :  { %1817 = vmatpush.bf16.msra.mxu2 %v4069_v46  ;;  %v3529_v46 = vor.u32 %v4588_v44, %v3528_v43 }
  0xff   :  { %v1598_v48 = vpop.f32.mrf.mxu2  ;;  %v1572_v57 = vpop.f32.mrf.mxu0 }
 0x100   :  { %v1599_v50 = vadd.f32 %v1598_v48, %v1584_v47  ;;  %v1612_v51 = vpop.f32.mrf.mxu3  ;;  %v1586_v60 = vpop.f32.mrf.mxu1  ;;  %v1573_v8 = vadd.f32 %v1572_v57, %v1559_v62  ;;  %v4660_v47 = vld [vmem:[#allocation5 + $0x3a0] sm:$0xf0]  ;;  %v4651_v57 = vld [vmem:[#allocation5 + $0x358] sm:$0xf0] }
 0x101   :  { %v3817_v48 = vor.u32 %v4660_v47, %v3816_v45  ;;  %v4220_v47 = vld [vmem:[#allocation7] sm:$0xf] }
 0x102   :  { %v1613_v53 = vadd.f32 %v1612_v51, %v1599_v50 }
 0x103   :  { %1802 = vmatpush.bf16.msra.mxu1 %v3817_v48  ;;  %v4761_v48 = vld [vmem:[#allocation7 + $0x8] sm:$0xf0] }
 0x104   :  { %v5137_v54 = vpack.c.bf16 %v1613_v53, %v1571_v52  ;;  %v4032_v52 = vld [vmem:[#allocation5 + $0x530] sm:$0xf]  ;;  %v4714_v53 = vld [vmem:[#allocation5 + $0x550] sm:$0xf0] }
 0x105   :  { %v4033_v55 = vor.u32 %v4714_v53, %v4032_v52  ;;  %v3492_v53 = vld [vmem:[#allocation5 + $0xf8] sm:$0xf] }
 0x106   :  { %2085 = vrot.lane.b32.xlu2 %v5137_v54, %s5057_s4  ;;  %v1847_v59 = vrot.slane %v5137_v54, 4 }
 0x107   :  { %v1600_v61 = vpop.f32.mrf.mxu2  ;;  %1818 = vmatpush.bf16.msra.mxu2 %v4033_v55  ;;  %v4579_v55 = vld [vmem:[#allocation5 + $0x118] sm:$0xf0] }
 0x108   :  { %v1601_v63 = vadd.f32 %v1600_v61, %v1586_v60  ;;  %v1853_v0 = vsel %vm1848_vm0, %v1847_v59, 0  ;;  %v1614_v3 = vpop.f32.mrf.mxu3  ;;  %v3781_v59 = vor.u32 %v4651_v57, %v3780_v56  ;;  %v3456_v56 = vld [vmem:[#allocation5 + $0xb0] sm:$0xf] }
 0x109   :  { %1862 = vmatpush.bf16.xpose.msra.mxu3 %v1853_v0  ;;  %v4705_v0 = vld [vmem:[#allocation5 + $0x508] sm:$0xf0] }
 0x10a   :  { %v1615_v10 = vadd.f32 %v1614_v3, %v1601_v63  ;;  %1803 = vmatpush.bf16.msra.mxu1 %v3781_v59  ;;  %v3996_v63 = vld [vmem:[#allocation5 + $0x4e8] sm:$0xf]  ;;  %v3493_v59 = vor.u32 %v4579_v55, %v3492_v53 }
 0x10b   :  { %v3997_v3 = vor.u32 %v4705_v0, %v3996_v63  ;;  %v4561_v63 = vld [vmem:[#allocation5 + $0x88] sm:$0xf0] }
 0x10c   :  { %v5143_v11 = vpack.c.bf16 %v1615_v10, %v1573_v8  ;;  %v3745_v8 = vor.u32 %v4642_v6, %v3744_v4  ;;  %v3384_v6 = vld [vmem:[#allocation5 + $0x20] sm:$0xf] }
 0x10d   :  { %1819 = vmatpush.bf16.msra.mxu2 %v3997_v3 }
 0x10e   :  { %2112 = vrot.lane.b32.xlu2 %v5143_v11, %s5057_s4  ;;  %v1869_v13 = vrot.slane %v5143_v11, 4  ;;  %1804 = vmatpush.bf16.msra.mxu1 %v3745_v8 }
 0x110   :  { %4214 = vmatmul.msk.bf16.vlgmr.msra.gmra.mxu3 %vm1848_vm0, %v5145_v12  ;;  %v1874_v14 = vsel %vm1848_vm0, %v1869_v13, 0  ;;  %v3636_v13 = vld [vmem:[#allocation5 + $0x218] sm:$0xf] }
 0x111   :  { %1883 = vmatpush.bf16.xpose.msrb.mxu3 %v1874_v14  ;;  %v4615_v14 = vld [vmem:[#allocation5 + $0x238] sm:$0xf0]  ;;  %1820 = vmatpush.bf16.msra.mxu2 %v3961_v20 }
 0x112   :  { %v3637_v16 = vor.u32 %v4615_v14, %v3636_v13 }
 0x114   :  { %1785 = vmatpush.bf16.msra.mxu0 %v3637_v16  ;;  %1821 = vmatmul.bf16.vlgmr.msra.gmra.mxu2 %v5113_v9  ;;  %v4221_v9 = vor.u32 %v4761_v48, %v4220_v47 }
 0x117   :  { %v1626_v22 = vpop.f32.mrf.mxu0 }
 0x118   :  { %v1640_v21 = vpop.f32.mrf.mxu1 }
 0x119   :  { %v1641_v25 = vadd.f32 %v1640_v21, %v1626_v22  ;;  %v3709_v21 = vor.u32 %v4633_v19, %v3708_v18  ;;  %v4256_v22 = vld [vmem:[#allocation7 + $0x48] sm:$0xf] }
 0x11a   :  { %v4257_v24 = vor.u32 %v4770_v23, %v4256_v22 }
 0x11b   :  { %1805 = vmatpush.bf16.msra.mxu1 %v3709_v21 }
 0x11c   :  { %2041 = vmatpush.bf16.msrb.mxu2 %v4257_v24 }
 0x11f   :  { %v1654_v28 = vpop.f32.mrf.mxu2  ;;  %v5157_v49 = vpop.f32.mrf.mxu0 }
 0x120   :  { %v1655_v29 = vadd.f32 %v1654_v28, %v1641_v25  ;;  %4215 = vmatmul.msk.bf16.vlgmr.msrb.gmra.mxu3 %vm1848_vm0, %v5153_v30  ;;  %v1668_v50 = vpop.f32.mrf.mxu3  ;;  %v5159_v51 = vpop.f32.mrf.mxu1  ;;  %v3600_v25 = vld [vmem:[#allocation5 + $0x1d0] sm:$0xf]  ;;  %v3672_v28 = vld [vmem:[#allocation5 + $0x260] sm:$0xf]  ;;  %2042 = vmatpush.bf16.msrb.mxu2 %v4245_v37 }
 0x121   :  { %v3601_v27 = vor.u32 %v4606_v26, %v3600_v25 }
 0x123   :  { %1786 = vmatpush.bf16.msra.mxu0 %v3601_v27 }
 0x124   :  { %2043 = vmatpush.bf16.msrb.mxu2 %v4233_v42 }
 0x127   :  { %v5161_v61 = vpop.f32.mrf.mxu2  ;;  %1787 = vmatpush.bf16.msra.mxu0 %v3565_v40 }
 0x128   :  { %v5163_v1 = vpop.f32.mrf.mxu3  ;;  %2044 = vmatpush.bf16.msrb.mxu2 %v4221_v9 }
 0x12b   :  { %1788 = vmatpush.bf16.msra.mxu0 %v3529_v46  ;;  %v2089_v46 = vunpack.c.l.b16 %v5145_v12 }
 0x12d   :  { %v2090_v47 = vpack.c.b16 %v2089_v46, %v2089_v46  ;;  %v4763_v46 = vld [vmem:[#allocation7 + $0x1c] sm:$0xf] }
 0x12f   :  { %1789 = vmatpush.bf16.msra.mxu0 %v3493_v59 }
 0x137   :  { %v1682_v60 = vpop.f32.mrf.mxu0 }
 0x138   :  { %v1683_v62 = vadd.f32 %v1682_v60, %v1668_v50  ;;  %v1696_v2 = vpop.f32.mrf.mxu1 }
 0x13a   :  { %v1697_v7 = vadd.f32 %v1696_v2, %v1683_v62  ;;  %v3420_v62 = vld [vmem:[#allocation5 + $0x68] sm:$0xf] }
 0x13b   :  { %v3421_v3 = vor.u32 %v4561_v63, %v3420_v62  ;;  %v2116_v62 = vunpack.c.l.b16 %v5153_v30 }
 0x13c   :  { %v5165_v10 = vpack.c.bf16 %v1697_v7, %v1655_v29  ;;  %v4624_v29 = vld [vmem:[#allocation5 + $0x280] sm:$0xf0] }
 0x13d   :  { %v3673_v33 = vor.u32 %v4624_v29, %v3672_v28  ;;  %v4552_v7 = vld [vmem:[#allocation5 + $0x40] sm:$0xf0]  ;;  %v2117_v63 = vpack.c.b16 %v2116_v62, %v2116_v62 }
 0x13e   :  { %v3385_v16 = vor.u32 %v4552_v7, %v3384_v6 }
 0x13f   :  { %v1710_v32 = vpop.f32.mrf.mxu2  ;;  %1806 = vmatpush.bf16.msra.mxu1 %v3673_v33  ;;  %v5171_v50 = vpop.f32.mrf.mxu0 }
 0x140   :  { %v1724_v35 = vpop.f32.mrf.mxu3  ;;  %v5169_v45 = vpop.f32.mrf.mxu1 }
 0x141   :  { %v1725_v0 = vadd.f32 %v1724_v35, %v1710_v32 }
 0x142   :  { %1807 = vmatmul.bf16.vlgmr.msra.gmra.mxu1 %v5110_v5  ;;  %v4570_v5 = vld [vmem:[#allocation5 + $0xd0] sm:$0xf0] }
 0x143   :  { %v3457_v60 = vor.u32 %v4570_v5, %v3456_v56 }
 0x145   :  { %1790 = vmatpush.bf16.msra.mxu0 %v3457_v60 }
 0x147   :  { %v1712_v52 = vpop.f32.mrf.mxu2 }
 0x148   :  { %v1726_v57 = vpop.f32.mrf.mxu3 }
 0x149   :  { %1791 = vmatpush.bf16.msra.mxu0 %v3421_v3  ;;  %v1727_v18 = vadd.f32 %v1726_v57, %v1712_v52 }
 0x14d   :  { %1792 = vmatpush.bf16.msra.mxu0 %v3385_v16 }
 0x150   :  { %1793 = vmatmul.bf16.vlgmr.msra.gmra.mxu0 %v5107_v58 }
 0x157   :  { %v1738_v4 = vpop.f32.mrf.mxu0 }
 0x158   :  { %v1752_v2 = vpop.f32.mrf.mxu1  ;;  %v1739_v14 = vadd.f32 %v1738_v4, %v1725_v0 }
 0x15f   :  { %v1766_v8 = vpop.f32.mrf.mxu2  ;;  %v1740_v21 = vpop.f32.mrf.mxu0 }
 0x160   :  { %v1767_v13 = vadd.f32 %v1766_v8, %v1752_v2  ;;  %v1780_v15 = vpop.f32.mrf.mxu3  ;;  %v1754_v20 = vpop.f32.mrf.mxu1  ;;  %v1741_v25 = vadd.f32 %v1740_v21, %v1727_v18  ;;  %v4299_v21 = vld [vmem:[#allocation7 + $0x90] sm:$0xf] }
 0x161   :  { %v2086_v27 = vpop.permute.xlu2 %2085 }
 0x162   :  { %v1781_v17 = vadd.f32 %v1780_v15, %v1767_v13  ;;  %v2087_v29 = vrot.slane %v2086_v27, 4  ;;  %v4782_v15 = vld [vmem:[#allocation7 + $0xb0] sm:$0xf0]  ;;  %v1685_v27 = vadd.f32 %v5171_v50, %v5163_v1  ;;  %v4258_v1 = vld [vmem:[#allocation7 + $0x54] sm:$0xf0] }
 0x163   :  { %v4264_v50 = vld [vmem:[#allocation7 + $0x50] sm:$0xf] }
 0x164   :  { %v5173_v19 = vpack.c.bf16 %v1781_v17, %v1739_v14  ;;  %v2097_v33 = vsel %vm1848_vm0, %v2087_v29, 0  ;;  %v4311_v14 = vld [vmem:[#allocation7 + $0xa8] sm:$0xf]  ;;  %v4275_v29 = vld [vmem:[#allocation7 + $0x60] sm:$0xf] }
 0x165   :  { %v4312_v18 = vor.u32 %v4782_v15, %v4311_v14  ;;  %v4778_v14 = vld [vmem:[#allocation7 + $0x94] sm:$0xf]  ;;  %v4301_v15 = vld [vmem:[#allocation7 + $0x9c] sm:$0xf0] }
 0x166   :  { %v1919_v22 = vsel %vm1917_vm1, %v5173_v19, 0 }
 0x167   :  { %v1768_v23 = vpop.f32.mrf.mxu2  ;;  %1928 = vmatpush.bf16.msrb.mxu0 %v1919_v22  ;;  %v4779_v22 = vld [vmem:[#allocation7 + $0x98] sm:$0xf0] }
 0x168   :  { %v1769_v24 = vadd.f32 %v1768_v23, %v1754_v20  ;;  %v1782_v26 = vpop.f32.mrf.mxu3  ;;  %v4300_v23 = vor.u32 %v4779_v22, %v4299_v21  ;;  %v4772_v22 = vld [vmem:[#allocation7 + $0x64] sm:$0xf] }
 0x169   :  { %v2113_v34 = vpop.permute.xlu2 %2112 }
 0x16a   :  { %v1783_v28 = vadd.f32 %v1782_v26, %v1769_v24  ;;  %v2114_v35 = vrot.slane %v2113_v34, 4  ;;  %v4287_v24 = vld [vmem:[#allocation7 + $0x78] sm:$0xf]  ;;  %v1643_v26 = vadd.f32 %v5159_v51, %v5157_v49  ;;  %v1699_v34 = vadd.f32 %v5169_v45, %v1685_v27  ;;  %v4769_v51 = vld [vmem:[#allocation7 + $0x4c] sm:$0xf] }
 0x16b   :  { %v4766_v45 = vld [vmem:[#allocation7 + $0x34] sm:$0xf] }
 0x16c   :  { %v5178_v31 = vpack.c.bf16 %v1783_v28, %v1741_v25  ;;  %v2124_v37 = vsel %vm1848_vm0, %v2114_v35, 0  ;;  %v4776_v25 = vld [vmem:[#allocation7 + $0x80] sm:$0xf0] }
 0x16d   :  { %2133 = vmatpush.bf16.xpose.msra.mxu2 %v2124_v37  ;;  %v4288_v28 = vor.u32 %v4776_v25, %v4287_v24  ;;  %v2407_v25 = vrot.slane %v5173_v19, 4 }
 0x16e   :  { %v1938_v32 = vsel %vm1917_vm1, %v5178_v31, 0 }
 0x16f   :  { %1947 = vmatpush.bf16.msrb.mxu1 %v1938_v32  ;;  %v4773_v32 = vld [vmem:[#allocation7 + $0x68] sm:$0xf0] }
 0x170   :  { %v4276_v35 = vor.u32 %v4773_v32, %v4275_v29  ;;  %v2412_v29 = vsel %vm1917_vm1, %v2407_v25, 0  ;;  %v4774_v25 = vld [vmem:[#allocation7 + $0x70] sm:$0xf0] }
 0x173   :  { %2106 = vmatpush.bf16.xpose.msra.mxu1 %v2097_v33  ;;  %v1657_v33 = vadd.f32 %v5161_v61, %v1643_v26 }
 0x175   :  { %v5206_v37 = vpack.c.bf16 %v1699_v34, %v1657_v33 }
 0x177   :  { %v2368_v49 = vsel %vm1848_vm0, %v5206_v37, 0 }
 0x193   :  { %v1864_v58 = vpop.f32.mrf.mxu3 }
 0x194   :  { %v1865_v39 = vadd.f32 %v1864_v58, %v5184_v38 }
 0x196   :  { %v1890_v40 = vsel %vm1889_vm2, %v1865_v39, -inf }
 0x197   :  { %1891 = vmax.xlane.f32.xlu0 %v1890_v40  ;;  %v4771_v40 = vld [vmem:[#allocation7 + $0x58] sm:$0xf0]  ;;  %v5223_v34 = vpop.f32.mrf.mxu2 }
 0x198   :  { %v4265_v61 = vor.u32 %v4771_v40, %v4264_v50 }
 0x19a   :  { %2069 = vmatpush.bf16.msra.mxu0 %v4265_v61 }
 0x19b   :  { %v1866_v36 = vpop.f32.mrf.mxu3 }
 0x19c   :  { %v4246_v36 = vld [vmem:[#allocation7 + $0x3c] sm:$0xf0] }
 0x1a3   :  { %v1885_v41 = vpop.f32.mrf.mxu3 }
 0x1a4   :  { %v1886_v42 = vadd.f32 %v1885_v41, %v5184_v38  ;;  %v4252_v41 = vld [vmem:[#allocation7 + $0x38] sm:$0xf] }
 0x1a6   :  { %v1893_v43 = vsel %vm1889_vm2, %v1886_v42, -inf }
 0x1a7   :  { %1894 = vmax.xlane.f32.xlu0 %v1893_v43  ;;  %v4768_v43 = vld [vmem:[#allocation7 + $0x40] sm:$0xf0] }
 0x1ab   :  { %v1887_v44 = vpop.f32.mrf.mxu3 }
 0x1ac   :  { %v4253_v44 = vor.u32 %v4768_v43, %v4252_v41 }
 0x1ae   :  { %2070 = vmatpush.bf16.msra.mxu0 %v4253_v44 }
 0x1bb   :  { %2091 = vrot.lane.b32.xlu0 %v2090_v47, %s5057_s4  ;;  %v4234_v47 = vld [vmem:[#allocation7 + $0x24] sm:$0xf0] }
 0x1bf   :  { %v1808_v7 = vpop.f32.mrf.mxu1 }
 0x1cd   :  { %v1794_v6 = vpop.f32.mrf.mxu0 }
 0x1ce   :  { %v5197_v8 = vadd.f32 %v1808_v7, %v1794_v6 }
 0x1d5   :  { %v5211_v62 = vpop.f32.mrf.mxu0 }
 0x20a   :  { %v1892_v48 = vpop.xlane.xlu0 %1891 }
 0x20b   :  { %v1896_v9 = vsub.f32 %v1865_v39, %v1892_v48  ;;  %v4261_v39 = vor.u32 %v4769_v51, %v4258_v1  ;;  %v4240_v48 = vld [vmem:[#allocation7 + $0x20] sm:$0xf] }
 0x20d   :  { %v1898_v52 = vmul.f32 1.442695, %v1896_v9  ;;  %2055 = vmatpush.bf16.msra.mxu3 %v4261_v39  ;;  %v4237_v9 = vor.u32 %v4763_v46, %v4234_v47 }
 0x20f   :  { %4845 = vpow2.f32 %v1898_v52  ;;  %v4765_v52 = vld [vmem:[#allocation7 + $0x28] sm:$0xf0] }
 0x215   :  { %v4846_v53 = vpop.eup %4845 }
 0x216   :  { %v1902_v55 = vsel %vm1889_vm2, %v4846_v53, 0.0 }
 0x217   :  { %1903 = vadd.xlane.f32.xlu1 %v1902_v55  ;;  %v4760_v55 = vld [vmem:[#allocation7 + $0x4] sm:$0xf] }
 0x21a   :  { %v1895_v56 = vpop.xlane.xlu0 %1894 }
 0x21b   :  { %v1897_v57 = vsub.f32 %v1886_v42, %v1895_v56  ;;  %v4249_v42 = vor.u32 %v4766_v45, %v4246_v36  ;;  %v4222_v56 = vld [vmem:[#allocation7 + $0xc] sm:$0xf0] }
 0x21d   :  { %v1900_v59 = vmul.f32 1.442695, %v1897_v57  ;;  %2056 = vmatpush.bf16.msra.mxu3 %v4249_v42  ;;  %v4228_v57 = vld [vmem:[#allocation7 + $0x8] sm:$0xf]  ;;  %v2188_v42 = vunpack.c.l.b16 %v5178_v31 }
 0x21f   :  { %4847 = vpow2.f32 %v1900_v59  ;;  %v4225_v59 = vor.u32 %v4760_v55, %v4222_v56  ;;  %v2189_v43 = vpack.c.b16 %v2188_v42, %v2188_v42  ;;  %v2348_v55 = vsel %vm1848_vm0, %v5165_v10, 0 }
 0x220   :  { %v2164_v56 = vunpack.c.l.b16 %v5173_v19 }
 0x221   :  { %2057 = vmatpush.bf16.msra.mxu3 %v4237_v9 }
 0x225   :  { %v4848_v5 = vpop.eup %4847  ;;  %2058 = vmatpush.bf16.msra.mxu3 %v4225_v59 }
 0x226   :  { %v1905_v60 = vsel %vm1889_vm2, %v4848_v5, 0.0 }
 0x227   :  { %1906 = vadd.xlane.f32.xlu1 %v1905_v60 }
 0x22d   :  { %v2092_v58 = vpop.permute.xlu0 %2091 }
 0x240   :  { %2118 = vrot.lane.b32.xlu1 %v2117_v63, %s5057_s4 }
 0x28a   :  { %v1904_v0 = vpop.xlane.xlu1 %1903 }
 0x28b   :  { %4849 = vrcp.f32 %v1904_v0  ;;  %v5213_v0 = vpop.f32.mrf.mxu1 }
 0x291   :  { %v4850_v2 = vpop.eup %4849 }
 0x292   :  { %v1910_v3 = vmul.f32 %v4850_v2, %v4846_v53  ;;  %v4241_v53 = vor.u32 %v4765_v52, %v4240_v48 }
 0x294   :  { %v1912_v4 = vpack.c.bf16 %v1910_v3, %v1910_v3  ;;  %2071 = vmatpush.bf16.msra.mxu0 %v4241_v53  ;;  %v4781_v3 = vld [vmem:[#allocation7 + $0xac] sm:$0xf] }
 0x296   :  { %4216 = vmatmul.msk.bf16.vlgmr.msrb.gmra.mxu0 %vm1889_vm2, %v1912_v4  ;;  %v4313_v4 = vld [vmem:[#allocation7 + $0xb4] sm:$0xf0] }
 0x297   :  { %v4316_v7 = vor.u32 %v4781_v3, %v4313_v4 }
 0x29a   :  { %v1907_v13 = vpop.xlane.xlu1 %1906 }
 0x29b   :  { %4851 = vrcp.f32 %v1907_v13 }
 0x2a1   :  { %v4852_v16 = vpop.eup %4851 }
 0x2a2   :  { %v1911_v17 = vmul.f32 %v4852_v16, %v4848_v5  ;;  %v4762_v5 = vld [vmem:[#allocation7 + $0x10] sm:$0xf0]  ;;  %v4304_v16 = vor.u32 %v4778_v14, %v4301_v15  ;;  %v4307_v14 = vld [vmem:[#allocation7 + $0x98] sm:$0xf]  ;;  %v4780_v15 = vld [vmem:[#allocation7 + $0xa0] sm:$0xf0] }
 0x2a3   :  { %v4229_v60 = vor.u32 %v4762_v5, %v4228_v57  ;;  %v2165_v57 = vpack.c.b16 %v2164_v56, %v2164_v56 }
 0x2a4   :  { %v1913_v20 = vpack.c.bf16 %v1911_v17, %v1911_v17  ;;  %v4775_v17 = vld [vmem:[#allocation7 + $0x7c] sm:$0xf] }
 0x2a5   :  { %2072 = vmatpush.bf16.msra.mxu0 %v4229_v60 }
 0x2a6   :  { %4217 = vmatmul.msk.bf16.vlgmr.msrb.gmra.mxu1 %vm1889_vm2, %v1913_v20 }
 0x2a7   :  { %2299 = vmatpush.bf16.msrb.mxu1 %v4312_v18  ;;  %v4289_v18 = vld [vmem:[#allocation7 + $0x84] sm:$0xf0] }
 0x2a8   :  { %v4292_v21 = vor.u32 %v4775_v17, %v4289_v18 }
 0x2ab   :  { %2300 = vmatpush.bf16.msrb.mxu1 %v4300_v23  ;;  %v4277_v23 = vld [vmem:[#allocation7 + $0x6c] sm:$0xf0] }
 0x2ac   :  { %v4280_v24 = vor.u32 %v4772_v22, %v4277_v23  ;;  %v4777_v22 = vld [vmem:[#allocation7 + $0x88] sm:$0xf0] }
 0x2af   :  { %2301 = vmatpush.bf16.msrb.mxu1 %v4288_v28 }
 0x2b2   :  { %v2119_v28 = vpop.permute.xlu1 %2118 }
 0x2b3   :  { %2302 = vmatpush.bf16.msrb.mxu1 %v4276_v35  ;;  %v5225_v35 = vpop.f32.mrf.mxu2 }
 0x2b6   :  { %4269 = vmatmul.msk.bf16.vlgmr.msra.gmra.mxu1 %vm1848_vm0, %v2092_v58 }
 0x2b7   :  { %2377 = vmatpush.bf16.xpose.msra.mxu1 %v2368_v49 }
 0x313   :  { %v1930_v63 = vpop.f32.mrf.mxu0 }
 0x31b   :  { %v1932_v2 = vpop.f32.mrf.mxu0 }
 0x31c   :  { %v4783_v2 = vld [vmem:[#allocation7 + $0xb8] sm:$0xf0] }
 0x323   :  { %v1949_v6 = vpop.f32.mrf.mxu1 }
 0x324   :  { %v1953_v13 = vpack.c.bf16 %v1949_v6, %v1930_v63  ;;  %v4319_v63 = vld [vmem:[#allocation7 + $0xb0] sm:$0xf] }
 0x325   :  { %v4320_v6 = vor.u32 %v4783_v2, %v4319_v63 }
 0x326   :  { %4266 = vmatmul.msk.bf16.vlgmr.msrb.gmra.mxu2 %vm1848_vm0, %v1953_v13  ;;  %4267 = vmatmul.msk.bf16.vlgmr.msra.gmra.mxu3 %vm1848_vm0, %v1953_v13 }
 0x327   :  { %4268 = vmatmul.msk.bf16.vlgmr.msra.gmra.mxu0 %vm1848_vm0, %v1953_v13  ;;  %2313 = vmatpush.bf16.msrb.mxu2 %v4316_v7 }
 0x32b   :  { %v1951_v20 = vpop.f32.mrf.mxu1  ;;  %2314 = vmatpush.bf16.msrb.mxu2 %v4304_v16 }
 0x32c   :  { %v4308_v20 = vor.u32 %v4780_v15, %v4307_v14 }
 0x32f   :  { %2315 = vmatpush.bf16.msrb.mxu2 %v4292_v21  ;;  %v4295_v21 = vld [vmem:[#allocation7 + $0x80] sm:$0xf] }
 0x330   :  { %v4296_v23 = vor.u32 %v4777_v22, %v4295_v21  ;;  %v2610_v21 = vunpack.c.l.b16 %v5206_v37 }
 0x332   :  { %v2611_v22 = vpack.c.b16 %v2610_v21, %v2610_v21  ;;  %v4350_v21 = vld [vmem:[#allocation7 + $0xe0] sm:$0xf] }
 0x333   :  { %v2108_v26 = vpop.f32.mrf.mxu1  ;;  %2316 = vmatpush.bf16.msrb.mxu2 %v4280_v24  ;;  %v4283_v24 = vld [vmem:[#allocation7 + $0x68] sm:$0xf] }
 0x334   :  { %v2109_v27 = vadd.f32 %v2108_v26, %v5184_v38  ;;  %v4284_v26 = vor.u32 %v4774_v25, %v4283_v24  ;;  %v4794_v24 = vld [vmem:[#allocation7 + $0x110] sm:$0xf0] }
 0x336   :  { %4270 = vmatmul.msk.bf16.vlgmr.msra.gmra.mxu2 %vm1848_vm0, %v2119_v28  ;;  %v2139_v32 = vsel %vm1889_vm2, %v2109_v27, -inf }
 0x337   :  { %2421 = vmatpush.bf16.msra.mxu2 %v2412_v29  ;;  %2140 = vmax.xlane.f32.xlu2 %v2139_v32  ;;  %v2343_v29 = vrot.slane %v5145_v12, 4 }
 0x33b   :  { %v2110_v33 = vpop.f32.mrf.mxu1 }
 0x3a4   :  { %v2074_v32 = vpop.f32.mrf.mxu0 }
 0x3a9   :  { %v5227_v58 = vpop.f32.mrf.mxu2  ;;  %v2060_v33 = vpop.f32.mrf.mxu3 }
 0x3aa   :  { %v2141_v49 = vpop.xlane.xlu2 %2140 }
 0x3ab   :  { %v2145_v51 = vsub.f32 %v2109_v27, %v2141_v49  ;;  %v2427_v27 = vrot.slane %v5178_v31, 4 }
 0x3ac   :  { %v5249_v49 = vpop.f32.mrf.mxu0 }
 0x3ad   :  { %v2147_v1 = vmul.f32 1.442695, %v2145_v51  ;;  %v2432_v28 = vsel %vm1917_vm1, %v2427_v27, 0  ;;  %v4791_v27 = vld [vmem:[#allocation7 + $0xf8] sm:$0xf0] }
 0x3af   :  { %4853 = vpow2.f32 %v2147_v1 }
 0x3b1   :  { %v5229_v50 = vpop.f32.mrf.mxu2  ;;  %v5251_v51 = vpop.f32.mrf.mxu3 }
 0x3b5   :  { %v4854_v39 = vpop.eup %4853 }
 0x3b6   :  { %v2151_v40 = vsel %vm1889_vm2, %v4854_v39, 0.0 }
 0x3b7   :  { %2152 = vadd.xlane.f32.xlu1 %v2151_v40 }
 0x3b9   :  { %v2135_v61 = vpop.f32.mrf.mxu2 }
 0x3ba   :  { %v2136_v45 = vadd.f32 %v2135_v61, %v5184_v38 }
 0x3bc   :  { %v2142_v36 = vsel %vm1889_vm2, %v2136_v45, -inf }
 0x3bd   :  { %2143 = vmax.xlane.f32.xlu0 %v2142_v36 }
 0x3c1   :  { %v2137_v41 = vpop.f32.mrf.mxu2 }
 0x3d1   :  { %2190 = vrot.lane.b32.xlu0 %v2189_v43, %s5057_s4  ;;  %v2363_v43 = vrot.slane %v5153_v30, 4 }
 0x42a   :  { %v2153_v59 = vpop.xlane.xlu1 %2152 }
 0x430   :  { %v2144_v44 = vpop.xlane.xlu0 %2143 }
 0x431   :  { %v2146_v46 = vsub.f32 %v2136_v45, %v2144_v44 }
 0x433   :  { %v2149_v47 = vmul.f32 1.442695, %v2146_v46  ;;  %v5260_v46 = vld [vmem:[#allocation8] sm:$0x7] }
 0x435   :  { %4855 = vpow2.f32 %v2149_v47  ;;  %v1840_v47 = vperm.slane %v5260_v46, 0 }
 0x436   :  { %4857 = vrcp.f32 %v2153_v59 }
 0x43b   :  { %v4856_v48 = vpop.eup %4855 }
 0x43c   :  { %v2154_v9 = vsel %vm1889_vm2, %v4856_v48, 0.0  ;;  %v4858_v60 = vpop.eup %4857 }
 0x43d   :  { %2155 = vadd.xlane.f32.xlu2 %v2154_v9  ;;  %v2159_v4 = vmul.f32 %v4858_v60, %v4854_v39 }
 0x43f   :  { %v2161_v18 = vpack.c.bf16 %v2159_v4, %v2159_v4 }
 0x443   :  { %v2191_v52 = vpop.permute.xlu0 %2190 }
 0x444   :  { %v2196_v53 = vsel %vm1917_vm1, %v2191_v52, 0 }
 0x445   :  { %2205 = vmatpush.bf16.msrb.mxu0 %v2196_v53  ;;  %v1841_v53 = vperm.slane %v5260_v46, 1 }
 0x449   :  { %2357 = vmatpush.bf16.xpose.msra.mxu0 %v2348_v55 }
 0x455   :  { %2166 = vrot.lane.b32.xlu2 %v2165_v57, %s5057_s4  ;;  %v1842_v57 = vperm.slane %v5260_v46, 2 }
 0x457   :  { %v2081_v60 = vadd.f32 %v2074_v32, %v1842_v57  ;;  %v4788_v32 = vld [vmem:[#allocation7 + $0xe0] sm:$0xf0] }
 0x4b0   :  { %v2156_v5 = vpop.xlane.xlu2 %2155 }
 0x4b1   :  { %4859 = vrcp.f32 %v2156_v5  ;;  %v2080_v5 = vadd.f32 %v2060_v33, %v1841_v53 }
 0x4b7   :  { %v4860_v3 = vpop.eup %4859 }
 0x4b8   :  { %v2160_v7 = vmul.f32 %v4860_v3, %v4856_v48  ;;  %v2167_v13 = vpop.permute.xlu2 %2166  ;;  %v2079_v48 = vadd.f32 %v5227_v58, %v1840_v47  ;;  %v2082_v58 = vadd.f32 %v5229_v50, %v1840_v47  ;;  %v2583_v50 = vunpack.c.l.b16 %v5165_v10 }
 0x4b9   :  { %v2172_v16 = vsel %vm1917_vm1, %v2167_v13, 0 }
 0x4ba   :  { %v2162_v17 = vpack.c.bf16 %v2160_v7, %v2160_v7  ;;  %2181 = vmatpush.bf16.msrb.mxu3 %v2172_v16 }
 0x4bc   :  { %4272 = vmatmul.msk.bf16.vlgmr.msrb.gmra.mxu0 %vm1889_vm2, %v2162_v17 }
 0x4bd   :  { %4271 = vmatmul.msk.bf16.vlgmr.msrb.gmra.mxu3 %vm1889_vm2, %v2161_v18 }
 0x4be   :  { %2327 = vmatpush.bf16.msra.mxu3 %v4320_v6 }
 0x4c2   :  { %2328 = vmatpush.bf16.msra.mxu3 %v4308_v20  ;;  %v2584_v20 = vpack.c.b16 %v2583_v50, %v2583_v50  ;;  %v4787_v50 = vld [vmem:[#allocation7 + $0xdc] sm:$0xf] }
 0x4c6   :  { %2329 = vmatpush.bf16.msra.mxu3 %v4296_v23  ;;  %v4366_v23 = vld [vmem:[#allocation7 + $0x108] sm:$0xf] }
 0x4c7   :  { %v4367_v25 = vor.u32 %v4794_v24, %v4366_v23 }
 0x4c9   :  { %2535 = vmatpush.bf16.msrb.mxu0 %v4367_v25  ;;  %v4421_v25 = vld [vmem:[#allocation7 + $0x168] sm:$0xf] }
 0x4ca   :  { %2330 = vmatpush.bf16.msra.mxu3 %v4284_v26  ;;  %v4354_v26 = vld [vmem:[#allocation7 + $0xf0] sm:$0xf] }
 0x4cc   :  { %4324 = vmatmul.msk.bf16.vlgmr.msra.gmra.mxu0 %vm1848_vm0, %v2343_v29  ;;  %v4342_v29 = vld [vmem:[#allocation7 + $0xd8] sm:$0xf] }
 0x4cd   :  { %v4343_v33 = vor.u32 %v4788_v32, %v4342_v29 }
 0x4ce   :  { %2441 = vmatpush.bf16.msrb.mxu3 %v2432_v28  ;;  %v4355_v28 = vor.u32 %v4791_v27, %v4354_v26  ;;  %v4806_v26 = vld [vmem:[#allocation7 + $0x170] sm:$0xf0] }
 0x4cf   :  { %v4422_v32 = vor.u32 %v4806_v26, %v4421_v25  ;;  %v1823_v25 = vadd.f32 %v5223_v34, %v5197_v8 }
 0x4d0   :  { %2536 = vmatpush.bf16.msrb.mxu0 %v4355_v28 }
 0x4d4   :  { %2537 = vmatpush.bf16.msrb.mxu0 %v4343_v33 }
 0x539   :  { %v2207_v1 = vpop.f32.mrf.mxu0 }
 0x540   :  { %v2183_v39 = vpop.f32.mrf.mxu3 }
 0x541   :  { %v2211_v40 = vpack.c.bf16 %v2207_v1, %v2183_v39  ;;  %v2209_v61 = vpop.f32.mrf.mxu0  ;;  %v4330_v1 = vld [vmem:[#allocation7 + $0xc0] sm:$0xf] }
 0x543   :  { %4321 = vmatmul.msk.bf16.vlgmr.msrb.gmra.mxu1 %vm1848_vm0, %v2211_v40  ;;  %4322 = vmatmul.msk.bf16.vlgmr.msrb.gmra.mxu2 %vm1848_vm0, %v2211_v40 }
 0x544   :  { %4323 = vmatmul.msk.bf16.vlgmr.msra.gmra.mxu3 %vm1848_vm0, %v2211_v40 }
 0x548   :  { %v2185_v45 = vpop.f32.mrf.mxu3 }
 0x549   :  { %v2359_v36 = vpop.f32.mrf.mxu0 }
 0x54a   :  { %v2360_v41 = vadd.f32 %v2359_v36, %v5184_v38 }
 0x54c   :  { %v2383_v42 = vsel %vm1889_vm2, %v2360_v41, -inf }
 0x54d   :  { %2384 = vmax.xlane.f32.xlu1 %v2383_v42 }
 0x551   :  { %v2361_v44 = vpop.f32.mrf.mxu0 }
 0x553   :  { %4325 = vmatmul.msk.bf16.vlgmr.msra.gmra.mxu1 %vm1848_vm0, %v2363_v43 }
 0x5c0   :  { %v2304_v9 = vpop.f32.mrf.mxu1  ;;  %v2385_v52 = vpop.xlane.xlu1 %2384 }
 0x5c1   :  { %v5265_v55 = vadd.f32 %v2304_v9, %v2079_v48  ;;  %v2389_v56 = vsub.f32 %v2360_v41, %v2385_v52 }
 0x5c3   :  { %v2391_v59 = vmul.f32 1.442695, %v2389_v56  ;;  %v4793_v56 = vld [vmem:[#allocation7 + $0x10c] sm:$0xf] }
 0x5c5   :  { %4861 = vpow2.f32 %v2391_v59  ;;  %v4368_v59 = vld [vmem:[#allocation7 + $0x114] sm:$0xf0] }
 0x5c6   :  { %v2318_v63 = vpop.f32.mrf.mxu2 }
 0x5c7   :  { %v5273_v2 = vadd.f32 %v2318_v63, %v2080_v5  ;;  %v2332_v3 = vpop.f32.mrf.mxu3  ;;  %v4374_v5 = vld [vmem:[#allocation7 + $0x110] sm:$0xf]  ;;  %v4795_v63 = vld [vmem:[#allocation7 + $0x118] sm:$0xf0] }
 0x5c8   :  { %v5275_v4 = vadd.f32 %v2332_v3, %v2081_v60  ;;  %v2306_v6 = vpop.f32.mrf.mxu1  ;;  %v4371_v60 = vor.u32 %v4793_v56, %v4368_v59  ;;  %v4356_v3 = vld [vmem:[#allocation7 + $0xfc] sm:$0xf0]  ;;  %v4338_v56 = vld [vmem:[#allocation7 + $0xc8] sm:$0xf] }
 0x5c9   :  { %v5277_v7 = vadd.f32 %v2306_v6, %v2082_v58  ;;  %v4790_v58 = vld [vmem:[#allocation7 + $0xf4] sm:$0xf]  ;;  %v4375_v6 = vor.u32 %v4795_v63, %v4374_v5 }
 0x5ca   :  { %2549 = vmatpush.bf16.msrb.mxu1 %v4371_v60  ;;  %v4786_v5 = vld [vmem:[#allocation7 + $0xd0] sm:$0xf0] }
 0x5cb   :  { %v4862_v13 = vpop.eup %4861  ;;  %2563 = vmatpush.bf16.msrb.mxu2 %v4375_v6  ;;  %v4339_v60 = vor.u32 %v4786_v5, %v4338_v56 }
 0x5cc   :  { %v2395_v14 = vsel %vm1889_vm2, %v4862_v13, 0.0 }
 0x5cd   :  { %2396 = vadd.xlane.f32.xlu1 %v2395_v14  ;;  %v4792_v14 = vld [vmem:[#allocation7 + $0x100] sm:$0xf0] }
 0x5cf   :  { %v5300_v63 = vpop.f32.mrf.mxu3 }
 0x5d0   :  { %v2379_v15 = vpop.f32.mrf.mxu1 }
 0x5d1   :  { %v2380_v16 = vadd.f32 %v2379_v15, %v5184_v38  ;;  %v5294_v15 = vpop.f32.mrf.mxu2 }
 0x5d3   :  { %v2386_v17 = vsel %vm1889_vm2, %v2380_v16, -inf }
 0x5d4   :  { %2387 = vmax.xlane.f32.xlu2 %v2386_v17  ;;  %v4359_v17 = vor.u32 %v4790_v58, %v4356_v3  ;;  %v4805_v58 = vld [vmem:[#allocation7 + $0x16c] sm:$0xf]  ;;  %v4423_v3 = vld [vmem:[#allocation7 + $0x174] sm:$0xf0] }
 0x5d6   :  { %2550 = vmatpush.bf16.msrb.mxu1 %v4359_v17  ;;  %v4411_v17 = vld [vmem:[#allocation7 + $0x15c] sm:$0xf0] }
 0x5d8   :  { %v2381_v18 = vpop.f32.mrf.mxu1 }
 0x5e6   :  { %2585 = vrot.lane.b32.xlu1 %v2584_v20, %s5057_s4  ;;  %v4344_v20 = vld [vmem:[#allocation7 + $0xe4] sm:$0xf0] }
 0x5e7   :  { %v4347_v23 = vor.u32 %v4787_v50, %v4344_v20  ;;  %v4799_v50 = vld [vmem:[#allocation7 + $0x13c] sm:$0xf]  ;;  %v4399_v20 = vld [vmem:[#allocation7 + $0x144] sm:$0xf0] }
 0x5e9   :  { %2551 = vmatpush.bf16.msrb.mxu1 %v4347_v23  ;;  %v4796_v23 = vld [vmem:[#allocation7 + $0x124] sm:$0xf] }
 0x5ec   :  { %2579 = vrot.lane.b32.xlu2 %v5145_v12, %s5057_s4  ;;  %v4785_v12 = vld [vmem:[#allocation7 + $0xc8] sm:$0xf0] }
 0x5ed   :  { %v4331_v40 = vor.u32 %v4785_v12, %v4330_v1  ;;  %v4409_v1 = vld [vmem:[#allocation7 + $0x150] sm:$0xf]  ;;  %v4803_v12 = vld [vmem:[#allocation7 + $0x158] sm:$0xf0] }
 0x5ee   :  { %2612 = vrot.lane.b32.xlu1 %v2611_v22, %s5057_s4  ;;  %v4789_v22 = vld [vmem:[#allocation7 + $0xe8] sm:$0xf0] }
 0x5ef   :  { %2538 = vmatpush.bf16.msrb.mxu0 %v4331_v40  ;;  %v4351_v24 = vor.u32 %v4789_v22, %v4350_v21  ;;  %v4397_v40 = vld [vmem:[#allocation7 + $0x138] sm:$0xf]  ;;  %v4402_v22 = vor.u32 %v4799_v50, %v4399_v20  ;;  %v4429_v20 = vld [vmem:[#allocation7 + $0x170] sm:$0xf] }
 0x5f6   :  { %2606 = vrot.lane.b32.xlu1 %v5153_v30, %s5057_s4 }
 0x640   :  { %v2397_v39 = vpop.xlane.xlu1 %2396 }
 0x641   :  { %4863 = vrcp.f32 %v2397_v39  ;;  %v4410_v39 = vor.u32 %v4803_v12, %v4409_v1 }
 0x647   :  { %v4864_v61 = vpop.eup %4863  ;;  %v2388_v30 = vpop.xlane.xlu2 %2387 }
 0x648   :  { %v2403_v45 = vmul.f32 %v4864_v61, %v4862_v13  ;;  %v2390_v36 = vsub.f32 %v2380_v16, %v2388_v30  ;;  %v4362_v13 = vld [vmem:[#allocation7 + $0xf8] sm:$0xf]  ;;  %v4800_v61 = vld [vmem:[#allocation7 + $0x140] sm:$0xf0] }
 0x649   :  { %v4363_v18 = vor.u32 %v4792_v14, %v4362_v13  ;;  %v4426_v13 = vor.u32 %v4805_v58, %v4423_v3  ;;  %v2833_v58 = vrot.slane %v5165_v10, 4 }
 0x64a   :  { %v2405_v41 = vpack.c.bf16 %v2403_v45, %v2403_v45  ;;  %v2393_v42 = vmul.f32 1.442695, %v2390_v36  ;;  %v4398_v45 = vor.u32 %v4800_v61, %v4397_v40  ;;  %v4385_v36 = vld [vmem:[#allocation7 + $0x120] sm:$0xf] }
 0x64b   :  { %2564 = vmatpush.bf16.msrb.mxu2 %v4363_v18 }
 0x64c   :  { %4865 = vpow2.f32 %v2393_v42  ;;  %4326 = vmatmul.msk.bf16.vlgmr.msra.gmra.mxu2 %vm1889_vm2, %v2405_v41  ;;  %v4797_v41 = vld [vmem:[#allocation7 + $0x128] sm:$0xf0] }
 0x64d   :  { %v4386_v42 = vor.u32 %v4797_v41, %v4385_v36 }
 0x64f   :  { %2565 = vmatpush.bf16.msrb.mxu2 %v4351_v24  ;;  %v4387_v24 = vld [vmem:[#allocation7 + $0x12c] sm:$0xf0] }
 0x650   :  { %v4390_v26 = vor.u32 %v4796_v23, %v4387_v24 }
 0x652   :  { %v4866_v43 = vpop.eup %4865 }
 0x653   :  { %v2398_v44 = vsel %vm1889_vm2, %v4866_v43, 0.0  ;;  %2566 = vmatpush.bf16.msrb.mxu2 %v4339_v60 }
 0x654   :  { %2399 = vadd.xlane.f32.xlu0 %v2398_v44  ;;  %v2853_v44 = vrot.slane %v5206_v37, 4 }
 0x658   :  { %v2586_v47 = vpop.permute.xlu1 %2585 }
 0x659   :  { %v2591_v48 = vsel %vm1848_vm0, %v2586_v47, 0 }
 0x65a   :  { %2600 = vmatpush.bf16.xpose.msra.mxu3 %v2591_v48  ;;  %v2858_v48 = vsel %vm1848_vm0, %v2853_v44, 0 }
 0x660   :  { %v2613_v9 = vpop.permute.xlu1 %2612 }
 0x661   :  { %v2618_v52 = vsel %vm1848_vm0, %v2613_v9, 0  ;;  %v4784_v9 = vld [vmem:[#allocation7 + $0xc4] sm:$0xf] }
 0x662   :  { %2627 = vmatpush.bf16.xpose.msra.mxu0 %v2618_v52  ;;  %v4332_v52 = vld [vmem:[#allocation7 + $0xcc] sm:$0xf0] }
 0x663   :  { %v4335_v59 = vor.u32 %v4784_v9, %v4332_v52 }
 0x665   :  { %2552 = vmatpush.bf16.msrb.mxu1 %v4335_v59 }
 0x6c7   :  { %v2400_v16 = vpop.xlane.xlu0 %2399 }
 0x6c8   :  { %4867 = vrcp.f32 %v2400_v16  ;;  %v4802_v16 = vld [vmem:[#allocation7 + $0x154] sm:$0xf] }
 0x6c9   :  { %v4414_v18 = vor.u32 %v4802_v16, %v4411_v17 }
 0x6ce   :  { %v4868_v27 = vpop.eup %4867 }
 0x6cf   :  { %v2404_v28 = vmul.f32 %v4868_v27, %v4866_v43  ;;  %v2423_v29 = vpop.f32.mrf.mxu2  ;;  %v2580_v43 = vpop.permute.xlu2 %2579 }
 0x6d0   :  { %v2581_v47 = vrot.slane %v2580_v43, 4  ;;  %v2607_v27 = vpop.permute.xlu1 %2606 }
 0x6d1   :  { %v2406_v33 = vpack.c.bf16 %v2404_v28, %v2404_v28  ;;  %v5307_v28 = vpack.c.bf16 %v1823_v25, %v1823_v25 }
 0x6d3   :  { %4327 = vmatmul.msk.bf16.vlgmr.msrb.gmra.mxu3 %vm1889_vm2, %v2406_v33  ;;  %v2901_v1 = vsel %vm1917_vm1, %v5307_v28, 0 }
 0x6d4   :  { %2789 = vmatpush.bf16.msrb.mxu3 %v4422_v32  ;;  %v2608_v32 = vrot.slane %v2607_v27, 4  ;;  %v4804_v27 = vld [vmem:[#allocation7 + $0x160] sm:$0xf0] }
 0x6d7   :  { %v2425_v30 = vpop.f32.mrf.mxu2 }
 0x6d8   :  { %2790 = vmatpush.bf16.msrb.mxu3 %v4410_v39 }
 0x6dc   :  { %2791 = vmatpush.bf16.msrb.mxu3 %v4398_v45 }
 0x6e0   :  { %2792 = vmatpush.bf16.msrb.mxu3 %v4386_v42 }
 0x6e3   :  { %4379 = vmatmul.msk.bf16.vlgmr.msra.gmra.mxu3 %vm1848_vm0, %v2581_v47 }
 0x6e4   :  { %2867 = vmatpush.bf16.xpose.msra.mxu3 %v2858_v48 }
 0x756   :  { %v2443_v6 = vpop.f32.mrf.mxu3 }
 0x757   :  { %v2447_v14 = vpack.c.bf16 %v2443_v6, %v2423_v29 }
 0x759   :  { %4376 = vmatmul.msk.bf16.vlgmr.msrb.gmra.mxu0 %vm1848_vm0, %v2447_v14  ;;  %4377 = vmatmul.msk.bf16.vlgmr.msrb.gmra.mxu1 %vm1848_vm0, %v2447_v14 }
 0x75a   :  { %4378 = vmatmul.msk.bf16.vlgmr.msrb.gmra.mxu2 %vm1848_vm0, %v2447_v14  ;;  %2803 = vmatpush.bf16.msrb.mxu0 %v4426_v13  ;;  %v2838_v13 = vsel %vm1848_vm0, %v2833_v58, 0 }
 0x75e   :  { %v2445_v21 = vpop.f32.mrf.mxu3  ;;  %2804 = vmatpush.bf16.msrb.mxu0 %v4414_v18 }
 0x75f   :  { %v4807_v21 = vld [vmem:[#allocation7 + $0x178] sm:$0xf0] }
 0x760   :  { %v4430_v25 = vor.u32 %v4807_v21, %v4429_v20  ;;  %v3096_v20 = vunpack.c.l.b16 %v5143_v11 }
 0x762   :  { %2805 = vmatpush.bf16.msrb.mxu0 %v4402_v22 }
 0x766   :  { %v2602_v29 = vpop.f32.mrf.mxu3  ;;  %2806 = vmatpush.bf16.msrb.mxu0 %v4390_v26  ;;  %v4417_v26 = vld [vmem:[#allocation7 + $0x158] sm:$0xf] }
 0x767   :  { %v2603_v33 = vadd.f32 %v2602_v29, %v5184_v38  ;;  %v1811_v29 = vadd.f32 %v5213_v0, %v5211_v62 }
 0x769   :  { %4380 = vmatmul.msk.bf16.vlgmr.msra.gmra.mxu0 %vm1848_vm0, %v2608_v32  ;;  %v2633_v12 = vsel %vm1889_vm2, %v2603_v33, -inf }
 0x76a   :  { %2910 = vmatpush.bf16.msra.mxu0 %v2901_v1  ;;  %2634 = vmax.xlane.f32.xlu1 %v2633_v12  ;;  %v4405_v1 = vld [vmem:[#allocation7 + $0x140] sm:$0xf]  ;;  %v4801_v12 = vld [vmem:[#allocation7 + $0x148] sm:$0xf0] }
 0x76e   :  { %v2604_v8 = vpop.f32.mrf.mxu3 }
 0x76f   :  { %v1825_v8 = vadd.f32 %v5225_v35, %v1811_v29 }
 0x7d6   :  { %v2540_v34 = vpop.f32.mrf.mxu0  ;;  %v2554_v39 = vpop.f32.mrf.mxu1 }
 0x7d7   :  { %v5315_v40 = vadd.f32 %v2540_v34, %v5265_v55  ;;  %v5318_v61 = vadd.f32 %v2554_v39, %v5273_v2  ;;  %v4406_v34 = vor.u32 %v4801_v12, %v4405_v1  ;;  %v4393_v39 = vld [vmem:[#allocation7 + $0x128] sm:$0xf]  ;;  %v4464_v12 = vld [vmem:[#allocation7 + $0x1b0] sm:$0xf] }
 0x7dd   :  { %v2568_v30 = vpop.f32.mrf.mxu2  ;;  %v2635_v45 = vpop.xlane.xlu1 %2634 }
 0x7de   :  { %v5321_v36 = vadd.f32 %v2568_v30, %v5275_v4  ;;  %v2639_v41 = vsub.f32 %v2603_v33, %v2635_v45  ;;  %v2542_v42 = vpop.f32.mrf.mxu0  ;;  %v4418_v33 = vor.u32 %v4804_v27, %v4417_v26  ;;  %v4798_v30 = vld [vmem:[#allocation7 + $0x130] sm:$0xf0]  ;;  %v5345_v45 = vpack.c.bf16 %v1825_v8, %v1825_v8  ;;  %v4815_v8 = vld [vmem:[#allocation7 + $0x1b8] sm:$0xf0] }
 0x7df   :  { %v5324_v43 = vadd.f32 %v2542_v42, %v5277_v7  ;;  %v4394_v62 = vor.u32 %v4798_v30, %v4393_v39  ;;  %v5351_v42 = vpop.f32.mrf.mxu1  ;;  %v4452_v39 = vld [vmem:[#allocation7 + $0x198] sm:$0xf]  ;;  %v4812_v30 = vld [vmem:[#allocation7 + $0x1a0] sm:$0xf0] }
 0x7e0   :  { %v2641_v44 = vmul.f32 1.442695, %v2639_v41  ;;  %v2920_v0 = vsel %vm1917_vm1, %v5345_v45, 0 }
 0x7e2   :  { %4869 = vpow2.f32 %v2641_v44 }
 0x7e5   :  { %v5349_v41 = vpop.f32.mrf.mxu2 }
 0x7e6   :  { %v2629_v47 = vpop.f32.mrf.mxu0 }
 0x7e7   :  { %v2630_v48 = vadd.f32 %v2629_v47, %v5184_v38 }
 0x7e8   :  { %v4870_v55 = vpop.eup %4869 }
 0x7e9   :  { %v2636_v9 = vsel %vm1889_vm2, %v2630_v48, -inf  ;;  %v2645_v2 = vsel %vm1889_vm2, %v4870_v55, 0.0 }
 0x7ea   :  { %2637 = vmax.xlane.f32.xlu0 %v2636_v9  ;;  %2646 = vadd.xlane.f32.xlu2 %v2645_v2 }
 0x7ee   :  { %v2631_v52 = vpop.f32.mrf.mxu0 }
 0x7fe   :  { %2679 = vrot.lane.b32.xlu0 %v5178_v31, %s5057_s4 }
 0x85d   :  { %v2638_v4 = vpop.xlane.xlu0 %2637  ;;  %v2647_v16 = vpop.xlane.xlu2 %2646 }
 0x85e   :  { %v2640_v56 = vsub.f32 %v2630_v48, %v2638_v4 }
 0x860   :  { %v2643_v7 = vmul.f32 1.442695, %v2640_v56 }
 0x862   :  { %4871 = vpow2.f32 %v2643_v7 }
 0x868   :  { %v4872_v59 = vpop.eup %4871 }
 0x869   :  { %v2648_v5 = vsel %vm1889_vm2, %v4872_v59, 0.0 }
 0x86a   :  { %2649 = vadd.xlane.f32.xlu0 %v2648_v5 }
 0x870   :  { %v2680_v60 = vpop.permute.xlu0 %2679 }
 0x871   :  { %v2681_v3 = vrot.slane %v2680_v60, 4 }
 0x873   :  { %v2686_v6 = vsel %vm1917_vm1, %v2681_v3, 0 }
 0x874   :  { %2695 = vmatpush.bf16.msra.mxu2 %v2686_v6 }
 0x878   :  { %2847 = vmatpush.bf16.xpose.msrb.mxu2 %v2838_v13 }
 0x87e   :  { %2657 = vrot.lane.b32.xlu0 %v5173_v19, %s5057_s4 }
 0x8dd   :  { %v2650_v31 = vpop.xlane.xlu0 %2649 }
 0x8de   :  { %4873 = vrcp.f32 %v2650_v31 }
 0x8df   :  { %4875 = vrcp.f32 %v2647_v16 }
 0x8e4   :  { %v4874_v14 = vpop.eup %4873 }
 0x8e5   :  { %v2654_v17 = vmul.f32 %v4874_v14, %v4872_v59  ;;  %v4876_v50 = vpop.eup %4875 }
 0x8e6   :  { %v2653_v23 = vmul.f32 %v4876_v50, %v4870_v55 }
 0x8e7   :  { %v2656_v18 = vpack.c.bf16 %v2654_v17, %v2654_v17 }
 0x8e8   :  { %v2655_v32 = vpack.c.bf16 %v2653_v23, %v2653_v23 }
 0x8e9   :  { %4382 = vmatmul.msk.bf16.vlgmr.msra.gmra.mxu2 %vm1889_vm2, %v2656_v18 }
 0x8f0   :  { %v2658_v22 = vpop.permute.xlu0 %2657 }
 0x8f1   :  { %v2659_v24 = vrot.slane %v2658_v22, 4  ;;  %v3097_v22 = vpack.c.b16 %v3096_v20, %v3096_v20 }
 0x8f3   :  { %v2664_v19 = vsel %vm1917_vm1, %v2659_v24, 0 }
 0x8f4   :  { %2673 = vmatpush.bf16.msra.mxu1 %v2664_v19 }
 0x8f7   :  { %4381 = vmatmul.msk.bf16.vlgmr.msra.gmra.mxu1 %vm1889_vm2, %v2655_v32  ;;  %v4476_v32 = vld [vmem:[#allocation7 + $0x1c8] sm:$0xf] }
 0x8f8   :  { %2817 = vmatpush.bf16.msrb.mxu1 %v4430_v25 }
 0x8f9   :  { %4434 = vmatmul.msk.bf16.vlgmr.msrb.gmra.mxu2 %vm1848_vm0, %v5137_v54 }
 0x8fc   :  { %2818 = vmatpush.bf16.msrb.mxu1 %v4418_v33  ;;  %v4818_v33 = vld [vmem:[#allocation7 + $0x1d0] sm:$0xf0] }
 0x8fd   :  { %v4477_v1 = vor.u32 %v4818_v33, %v4476_v32 }
 0x8ff   :  { %3023 = vmatpush.bf16.msra.mxu2 %v4477_v1 }
 0x900   :  { %2819 = vmatpush.bf16.msrb.mxu1 %v4406_v34  ;;  %v4465_v34 = vor.u32 %v4815_v8, %v4464_v12  ;;  %v4893_v12 = vld [vmem:[#allocation10] sm:$0xff] }
 0x903   :  { %3024 = vmatpush.bf16.msra.mxu2 %v4465_v34 }
 0x904   :  { %2820 = vmatpush.bf16.msrb.mxu1 %v4394_v62  ;;  %v4453_v62 = vor.u32 %v4812_v30, %v4452_v39 }
 0x907   :  { %3025 = vmatpush.bf16.msra.mxu2 %v4453_v62 }
 0x908   :  { %2929 = vmatpush.bf16.msra.mxu1 %v2920_v0  ;;  %v4440_v0 = vld [vmem:[#allocation7 + $0x180] sm:$0xf] }
 0x96c   :  { %v2697_v35 = vpop.f32.mrf.mxu2 }
 0x974   :  { %v2675_v44 = vpop.f32.mrf.mxu1  ;;  %v2699_v47 = vpop.f32.mrf.mxu2 }
 0x975   :  { %v2701_v48 = vpack.c.bf16 %v2697_v35, %v2675_v44  ;;  %v4809_v35 = vld [vmem:[#allocation7 + $0x188] sm:$0xf0] }
 0x976   :  { %v4441_v44 = vor.u32 %v4809_v35, %v4440_v0 }
 0x977   :  { %4431 = vmatmul.msk.bf16.vlgmr.msrb.gmra.mxu3 %vm1848_vm0, %v2701_v48  ;;  %4432 = vmatmul.msk.bf16.vlgmr.msrb.gmra.mxu0 %vm1848_vm0, %v2701_v48 }
 0x978   :  { %4433 = vmatmul.msk.bf16.vlgmr.msrb.gmra.mxu1 %vm1848_vm0, %v2701_v48  ;;  %3026 = vmatpush.bf16.msra.mxu2 %v4441_v44 }
 0x97c   :  { %v2677_v55 = vpop.f32.mrf.mxu1  ;;  %v2849_v9 = vpop.f32.mrf.mxu2 }
 0x97d   :  { %v2850_v2 = vadd.f32 %v2849_v9, %v5184_v38  ;;  %v4478_v55 = vld [vmem:[#allocation7 + $0x1d4] sm:$0xf0]  ;;  %v4484_v9 = vld [vmem:[#allocation7 + $0x1d0] sm:$0xf] }
 0x97f   :  { %v2873_v52 = vsel %vm1889_vm2, %v2850_v2, -inf }
 0x980   :  { %2874 = vmax.xlane.f32.xlu1 %v2873_v52  ;;  %v4819_v52 = vld [vmem:[#allocation7 + $0x1d8] sm:$0xf0] }
 0x984   :  { %v2851_v4 = vpop.f32.mrf.mxu2 }
 0x985   :  { %v4814_v4 = vld [vmem:[#allocation7 + $0x1b4] sm:$0xf] }
 0x987   :  { %4435 = vmatmul.msk.bf16.vlgmr.msra.gmra.mxu3 %vm1848_vm0, %v5143_v11 }
 0x9f3   :  { %v2875_v56 = vpop.xlane.xlu1 %2874 }
 0x9f4   :  { %v2879_v7 = vsub.f32 %v2850_v2, %v2875_v56  ;;  %v2808_v59 = vpop.f32.mrf.mxu0  ;;  %v4466_v56 = vld [vmem:[#allocation7 + $0x1bc] sm:$0xf0] }
 0x9f5   :  { %v5361_v5 = vadd.f32 %v2808_v59, %v5318_v61  ;;  %v2822_v60 = vpop.f32.mrf.mxu1  ;;  %v4472_v59 = vld [vmem:[#allocation7 + $0x1b8] sm:$0xf] }
 0x9f6   :  { %v2881_v58 = vmul.f32 1.442695, %v2879_v7  ;;  %v5364_v3 = vadd.f32 %v2822_v60, %v5321_v36  ;;  %v4485_v7 = vor.u32 %v4819_v52, %v4484_v9  ;;  %v4816_v60 = vld [vmem:[#allocation7 + $0x1c0] sm:$0xf0] }
 0x9f8   :  { %4877 = vpow2.f32 %v2881_v58  ;;  %v4469_v58 = vor.u32 %v4814_v4, %v4466_v56  ;;  %3051 = vmatpush.bf16.msrb.mxu0 %v4485_v7 }
 0x9fa   :  { %v2794_v6 = vpop.f32.mrf.mxu3 }
 0x9fb   :  { %v5367_v13 = vadd.f32 %v2794_v6, %v5315_v40  ;;  %v3070_v40 = vunpack.c.l.b16 %v5137_v54 }
 0x9fc   :  { %v5386_v47 = vpop.f32.mrf.mxu0 }
 0x9fd   :  { %v3071_v21 = vpack.c.b16 %v3070_v40, %v3070_v40 }
 0x9fe   :  { %v4878_v31 = vpop.eup %4877 }
 0x9ff   :  { %v2885_v14 = vsel %vm1889_vm2, %v4878_v31, 0.0 }
 0xa00   :  { %2886 = vadd.xlane.f32.xlu1 %v2885_v14  ;;  %v4811_v14 = vld [vmem:[#allocation7 + $0x19c] sm:$0xf] }
 0xa02   :  { %v2796_v16 = vpop.f32.mrf.mxu3 }
 0xa03   :  { %v5371_v17 = vadd.f32 %v2796_v16, %v5324_v43  ;;  %v4454_v16 = vld [vmem:[#allocation7 + $0x1a4] sm:$0xf0] }
 0xa0a   :  { %v2869_v61 = vpop.f32.mrf.mxu3 }
 0xa0b   :  { %v2870_v18 = vadd.f32 %v2869_v61, %v5184_v38  ;;  %v4460_v61 = vld [vmem:[#allocation7 + $0x1a0] sm:$0xf] }
 0xa0d   :  { %v2876_v50 = vsel %vm1889_vm2, %v2870_v18, -inf }
 0xa0e   :  { %2877 = vmax.xlane.f32.xlu0 %v2876_v50 }
 0xa12   :  { %v2871_v36 = vpop.f32.mrf.mxu3 }
 0xa13   :  { %v4457_v36 = vor.u32 %v4811_v14, %v4454_v16 }
 0xa19   :  { %3067 = vrot.lane.b32.xlu1 %v5165_v10, %s5057_s4 }
 0xa21   :  { %3072 = vrot.lane.b32.xlu1 %v3071_v21, %s5057_s4 }
 0xa22   :  { %3098 = vrot.lane.b32.xlu0 %v3097_v22, %s5057_s4 }
 0xa73   :  { %v2887_v43 = vpop.xlane.xlu1 %2886 }
 0xa74   :  { %4879 = vrcp.f32 %v2887_v43 }
 0xa7a   :  { %v4880_v38 = vpop.eup %4879 }
 0xa7b   :  { %v2893_v23 = vmul.f32 %v4880_v38, %v4878_v31  ;;  %v4473_v31 = vor.u32 %v4816_v60, %v4472_v59 }
 0xa7d   :  { %v2895_v24 = vpack.c.bf16 %v2893_v23, %v2893_v23  ;;  %3052 = vmatpush.bf16.msrb.mxu0 %v4473_v31 }
 0xa7f   :  { %4436 = vmatmul.msk.bf16.vlgmr.msra.gmra.mxu0 %vm1889_vm2, %v2895_v24 }
 0xa81   :  { %v2878_v25 = vpop.xlane.xlu0 %2877 }
 0xa82   :  { %v2880_v26 = vsub.f32 %v2870_v18, %v2878_v25  ;;  %v4813_v18 = vld [vmem:[#allocation7 + $0x1a8] sm:$0xf0]  ;;  %v4808_v25 = vld [vmem:[#allocation7 + $0x184] sm:$0xf] }
 0xa83   :  { %v4461_v40 = vor.u32 %v4813_v18, %v4460_v61 }
 0xa84   :  { %v2883_v10 = vmul.f32 1.442695, %v2880_v26  ;;  %v4442_v26 = vld [vmem:[#allocation7 + $0x18c] sm:$0xf0] }
 0xa85   :  { %3053 = vmatpush.bf16.msrb.mxu0 %v4461_v40 }
 0xa86   :  { %4881 = vpow2.f32 %v2883_v10  ;;  %v4448_v10 = vld [vmem:[#allocation7 + $0x188] sm:$0xf] }
 0xa8b   :  { %v3068_v54 = vpop.permute.xlu1 %3067 }
 0xa8c   :  { %v4882_v27 = vpop.eup %4881  ;;  %v3069_v11 = vrot.slane %v3068_v54, 4  ;;  %v4445_v54 = vor.u32 %v4808_v25, %v4442_v26  ;;  %v4830_v25 = vld [vmem:[#allocation7 + $0x230] sm:$0xf0]  ;;  %v4829_v26 = vld [vmem:[#allocation7 + $0x22c] sm:$0xf] }
 0xa8d   :  { %v2888_v19 = vsel %vm1889_vm2, %v4882_v27, 0.0 }
 0xa8e   :  { %v3078_v29 = vsel %vm1848_vm0, %v3069_v11, 0  ;;  %2889 = vadd.xlane.f32.xlu2 %v2888_v19  ;;  %v4810_v11 = vld [vmem:[#allocation7 + $0x190] sm:$0xf0] }
 0xa8f   :  { %3087 = vmatpush.bf16.xpose.msrb.mxu1 %v3078_v29  ;;  %v4449_v19 = vor.u32 %v4810_v11, %v4448_v10  ;;  %v4533_v11 = vld [vmem:[#allocation7 + $0x234] sm:$0xf0] }
 0xa91   :  { %3054 = vmatpush.bf16.msrb.mxu0 %v4449_v19  ;;  %v4539_v19 = vld [vmem:[#allocation7 + $0x230] sm:$0xf] }
 0xa93   :  { %v3073_v24 = vpop.permute.xlu1 %3072 }
 0xa94   :  { %v3099_v34 = vpop.permute.xlu0 %3098 }
 0xaa6   :  { %3093 = vrot.lane.b32.xlu2 %v5206_v37, %s5057_s4  ;;  %v4817_v37 = vld [vmem:[#allocation7 + $0x1cc] sm:$0xf] }
 0xaa7   :  { %v4481_v2 = vor.u32 %v4817_v37, %v4478_v55 }
 0xaa9   :  { %3037 = vmatpush.bf16.msrb.mxu3 %v4481_v2 }
 0xaad   :  { %3038 = vmatpush.bf16.msrb.mxu3 %v4469_v58 }
 0xab1   :  { %3039 = vmatpush.bf16.msrb.mxu3 %v4457_v36 }
 0xab5   :  { %3040 = vmatpush.bf16.msrb.mxu3 %v4445_v54 }
 0xafc   :  { %v2912_v48 = vpop.f32.mrf.mxu0 }
 0xb01   :  { %v2890_v6 = vpop.xlane.xlu2 %2889 }
 0xb02   :  { %4883 = vrcp.f32 %v2890_v6 }
 0xb04   :  { %v2914_v50 = vpop.f32.mrf.mxu0 }
 0xb08   :  { %v4884_v20 = vpop.eup %4883 }
 0xb09   :  { %v2894_v21 = vmul.f32 %v4884_v20, %v4882_v27  ;;  %v3094_v22 = vpop.permute.xlu2 %3093  ;;  %v5391_v27 = vpop.f32.mrf.mxu1  ;;  %v3168_v20 = vunpack.c.l.b16 %v5345_v45  ;;  %v4831_v45 = vld [vmem:[#allocation7 + $0x238] sm:$0xf0] }
 0xb0a   :  { %v3095_v43 = vrot.slane %v3094_v22, 4 }
 0xb0b   :  { %v2896_v38 = vpack.c.bf16 %v2894_v21, %v2894_v21  ;;  %v3169_v21 = vpack.c.b16 %v3168_v20, %v3168_v20 }
 0xb0c   :  { %v3104_v23 = vsel %vm1848_vm0, %v3095_v43, 0 }
 0xb0d   :  { %4437 = vmatmul.msk.bf16.vlgmr.msra.gmra.mxu1 %vm1889_vm2, %v2896_v38  ;;  %3113 = vmatpush.bf16.xpose.msrb.mxu2 %v3104_v23 }
 0xb1d   :  { %4489 = vmatmul.msk.bf16.vlgmr.msrb.gmra.mxu1 %vm1848_vm0, %v3073_v24  ;;  %v4531_v24 = vld [vmem:[#allocation7 + $0x228] sm:$0xf] }
 0xb1e   :  { %v4532_v54 = vor.u32 %v4830_v25, %v4531_v24 }
 0xb20   :  { %3279 = vmatpush.bf16.msra.mxu1 %v4532_v54 }
 0xb8a   :  { %v2931_v29 = vpop.f32.mrf.mxu1 }
 0xb8b   :  { %v2935_v32 = vpack.c.bf16 %v2931_v29, %v2912_v48 }
 0xb8d   :  { %4486 = vmatmul.msk.bf16.vlgmr.msra.gmra.mxu2 %vm1848_vm0, %v2935_v32  ;;  %4487 = vmatmul.msk.bf16.vlgmr.msrb.gmra.mxu3 %vm1848_vm0, %v2935_v32 }
 0xb8e   :  { %4488 = vmatmul.msk.bf16.vlgmr.msrb.gmra.mxu0 %vm1848_vm0, %v2935_v32  ;;  %v4536_v32 = vor.u32 %v4829_v26, %v4533_v11 }
 0xb90   :  { %3293 = vmatpush.bf16.msra.mxu2 %v4536_v32 }
 0xb92   :  { %v2933_v33 = vpop.f32.mrf.mxu1 }
 0xb93   :  { %v4519_v33 = vld [vmem:[#allocation7 + $0x210] sm:$0xf] }
 0xb9a   :  { %v3089_v1 = vpop.f32.mrf.mxu1 }
 0xb9b   :  { %v3090_v8 = vadd.f32 %v4893_v12, %v3089_v1  ;;  %v4827_v1 = vld [vmem:[#allocation7 + $0x218] sm:$0xf0] }
 0xb9d   :  { %4490 = vmatmul.msk.bf16.vlgmr.msrb.gmra.mxu2 %vm1848_vm0, %v3099_v34  ;;  %v3119_v39 = vsel %vm1889_vm2, %v3090_v8, -inf  ;;  %v4826_v34 = vld [vmem:[#allocation7 + $0x214] sm:$0xf] }
 0xb9e   :  { %3120 = vmax.xlane.f32.xlu2 %v3119_v39  ;;  %v4521_v39 = vld [vmem:[#allocation7 + $0x21c] sm:$0xf0] }
 0xba2   :  { %v3091_v30 = vpop.f32.mrf.mxu1 }
 0xba3   :  { %v4527_v30 = vld [vmem:[#allocation7 + $0x218] sm:$0xf] }
 0xc0b   :  { %v3056_v62 = vpop.f32.mrf.mxu0 }
 0xc0c   :  { %v5399_v0 = vadd.f32 %v3056_v62, %v5364_v3  ;;  %v4524_v62 = vor.u32 %v4826_v34, %v4521_v39 }
 0xc0e   :  { %3294 = vmatpush.bf16.msra.mxu2 %v4524_v62 }
 0xc10   :  { %v3028_v35 = vpop.f32.mrf.mxu2  ;;  %v3042_v44 = vpop.f32.mrf.mxu3 }
 0xc11   :  { %v5402_v48 = vadd.f32 %v3028_v35, %v5367_v13  ;;  %v5405_v37 = vadd.f32 %v3042_v44, %v5361_v5  ;;  %v3121_v55 = vpop.xlane.xlu2 %3120  ;;  %v3144_v5 = vunpack.c.l.b16 %v5307_v28  ;;  %v4828_v35 = vld [vmem:[#allocation7 + $0x220] sm:$0xf0]  ;;  %v4507_v44 = vld [vmem:[#allocation7 + $0x1f8] sm:$0xf] }
 0xc12   :  { %v3125_v9 = vsub.f32 %v3090_v8, %v3121_v55  ;;  %v4520_v8 = vor.u32 %v4827_v1, %v4519_v33  ;;  %v4824_v55 = vld [vmem:[#allocation7 + $0x200] sm:$0xf0] }
 0xc13   :  { %v3145_v58 = vpack.c.b16 %v3144_v5, %v3144_v5 }
 0xc14   :  { %v3127_v2 = vmul.f32 1.442695, %v3125_v9  ;;  %v4528_v9 = vor.u32 %v4828_v35, %v4527_v30  ;;  %3280 = vmatpush.bf16.msra.mxu1 %v4520_v8 }
 0xc16   :  { %4885 = vpow2.f32 %v3127_v2  ;;  %v4823_v2 = vld [vmem:[#allocation7 + $0x1fc] sm:$0xf] }
 0xc18   :  { %v3030_v52 = vpop.f32.mrf.mxu2 }
 0xc19   :  { %v5408_v4 = vadd.f32 %v3030_v52, %v5371_v17  ;;  %v4509_v52 = vld [vmem:[#allocation7 + $0x204] sm:$0xf0] }
 0xc1c   :  { %v4886_v56 = vpop.eup %4885 }
 0xc1d   :  { %v3131_v3 = vsel %vm1889_vm2, %v4886_v56, 0.0 }
 0xc1e   :  { %3132 = vadd.xlane.f32.xlu0 %v3131_v3  ;;  %v4825_v3 = vld [vmem:[#allocation7 + $0x208] sm:$0xf0] }
 0xc20   :  { %v3115_v7 = vpop.f32.mrf.mxu2 }
 0xc21   :  { %v3116_v59 = vadd.f32 %v4893_v12, %v3115_v7  ;;  %v4540_v12 = vor.u32 %v4831_v45, %v4539_v19  ;;  %v4508_v7 = vor.u32 %v4824_v55, %v4507_v44 }
 0xc23   :  { %v3122_v13 = vsel %vm1889_vm2, %v3116_v59, -inf  ;;  %3281 = vmatpush.bf16.msra.mxu1 %v4508_v7 }
 0xc24   :  { %3123 = vmax.xlane.f32.xlu1 %v3122_v13 }
 0xc28   :  { %v3117_v60 = vpop.f32.mrf.mxu2 }
 0xc29   :  { %v3044_v60 = vpop.f32.mrf.mxu3 }
 0xc3d   :  { %3146 = vrot.lane.b32.xlu1 %v3145_v58, %s5057_s4 }
 0xc91   :  { %v3133_v16 = vpop.xlane.xlu0 %3132 }
 0xc97   :  { %v3124_v6 = vpop.xlane.xlu1 %3123 }
 0xc98   :  { %v3126_v31 = vsub.f32 %v3116_v59, %v3124_v6  ;;  %v4512_v59 = vor.u32 %v4823_v2, %v4509_v52  ;;  %v4495_v6 = vld [vmem:[#allocation7 + $0x1e0] sm:$0xf] }
 0xc9a   :  { %v3129_v14 = vmul.f32 1.442695, %v3126_v31  ;;  %3295 = vmatpush.bf16.msra.mxu2 %v4512_v59  ;;  %v4821_v31 = vld [vmem:[#allocation7 + $0x1e8] sm:$0xf0] }
 0xc9c   :  { %4887 = vpow2.f32 %v3129_v14  ;;  %v4820_v14 = vld [vmem:[#allocation7 + $0x1e4] sm:$0xf] }
 0xc9d   :  { %4889 = vrcp.f32 %v3133_v16  ;;  %v4497_v16 = vld [vmem:[#allocation7 + $0x1ec] sm:$0xf0] }
 0xca2   :  { %v4888_v17 = vpop.eup %4887 }
 0xca3   :  { %v3134_v61 = vsel %vm1889_vm2, %v4888_v17, 0.0  ;;  %v4890_v18 = vpop.eup %4889 }
 0xca4   :  { %3135 = vadd.xlane.f32.xlu2 %v3134_v61  ;;  %v3139_v50 = vmul.f32 %v4890_v18, %v4886_v56  ;;  %v4515_v56 = vld [vmem:[#allocation7 + $0x200] sm:$0xf]  ;;  %v4503_v61 = vld [vmem:[#allocation7 + $0x1e8] sm:$0xf]  ;;  %v4822_v18 = vld [vmem:[#allocation7 + $0x1f0] sm:$0xf0] }
 0xca5   :  { %v4516_v13 = vor.u32 %v4825_v3, %v4515_v56 }
 0xca6   :  { %v3141_v28 = vpack.c.bf16 %v3139_v50, %v3139_v50  ;;  %v4500_v50 = vor.u32 %v4820_v14, %v4497_v16 }
 0xca8   :  { %3296 = vmatpush.bf16.msra.mxu2 %v4500_v50 }
 0xcaf   :  { %v3147_v36 = vpop.permute.xlu1 %3146 }
 0xcb0   :  { %v3152_v40 = vsel %vm1917_vm1, %v3147_v36, 0  ;;  %v4504_v36 = vor.u32 %v4822_v18, %v4503_v61 }
 0xcb1   :  { %3161 = vmatpush.bf16.msra.mxu3 %v3152_v40  ;;  %v3058_v40 = vpop.f32.mrf.mxu0 }
 0xcb4   :  { %4491 = vmatmul.msk.bf16.vlgmr.msra.gmra.mxu3 %vm1889_vm2, %v3141_v28 }
 0xcb5   :  { %3307 = vmatpush.bf16.msrb.mxu3 %v4540_v12 }
 0xcb9   :  { %3308 = vmatpush.bf16.msrb.mxu3 %v4528_v9 }
 0xcbc   :  { %3170 = vrot.lane.b32.xlu2 %v3169_v21, %s5057_s4 }
 0xcbd   :  { %3309 = vmatpush.bf16.msrb.mxu3 %v4516_v13 }
 0xcc1   :  { %3310 = vmatpush.bf16.msrb.mxu3 %v4504_v36 }
 0xd17   :  { %v3136_v22 = vpop.xlane.xlu2 %3135 }
 0xd18   :  { %4891 = vrcp.f32 %v3136_v22 }
 0xd1e   :  { %v4892_v43 = vpop.eup %4891 }
 0xd1f   :  { %v3140_v38 = vmul.f32 %v4892_v43, %v4888_v17  ;;  %v3171_v23 = vpop.permute.xlu2 %3170  ;;  %v4496_v17 = vor.u32 %v4821_v31, %v4495_v6 }
 0xd20   :  { %v3176_v10 = vsel %vm1917_vm1, %v3171_v23, 0  ;;  %v2084_v23 = vadd.f32 %v5249_v49, %v1842_v57 }
 0xd21   :  { %v3142_v29 = vpack.c.bf16 %v3140_v38, %v3140_v38  ;;  %3185 = vmatpush.bf16.msra.mxu0 %v3176_v10  ;;  %3282 = vmatpush.bf16.msra.mxu1 %v4496_v17  ;;  %v2083_v38 = vadd.f32 %v5251_v51, %v1841_v53 }
 0xd22   :  { %v2342_v54 = vadd.f32 %v5300_v63, %v2084_v23 }
 0xd23   :  { %v2341_v25 = vadd.f32 %v5294_v15, %v2083_v38 }
 0xd24   :  { %4492 = vmatmul.msk.bf16.vlgmr.msra.gmra.mxu0 %vm1889_vm2, %v3142_v29  ;;  %v2578_v46 = vadd.f32 %v5349_v41, %v2342_v54 }
 0xd25   :  { %v2577_v19 = vadd.f32 %v5351_v42, %v2341_v25 }
 0xd26   :  { %v2832_v53 = vadd.f32 %v5391_v27, %v2578_v46 }
 0xd27   :  { %v2831_v49 = vadd.f32 %v5386_v47, %v2577_v19 }
 0xd28   :  { %v3066_v15 = vadd.f32 %v3058_v40, %v2832_v53 }
 0xd29   :  { %v3065_v57 = vadd.f32 %v3044_v60, %v2831_v49 }
 0xd37   :  { %v3163_v5 = vpop.f32.mrf.mxu3 }
 0xd3f   :  { %v3165_v58 = vpop.f32.mrf.mxu3 }
 0xda1   :  { %v3187_v28 = vpop.f32.mrf.mxu0 }
 0xda2   :  { %v3191_v20 = vpack.c.bf16 %v3187_v28, %v3163_v5 }
 0xda4   :  { %4541 = vmatmul.msk.bf16.vlgmr.msra.gmra.mxu1 %vm1848_vm0, %v3191_v20  ;;  %4542 = vmatmul.msk.bf16.vlgmr.msra.gmra.mxu2 %vm1848_vm0, %v3191_v20 }
 0xda5   :  { %4543 = vmatmul.msk.bf16.vlgmr.msrb.gmra.mxu3 %vm1848_vm0, %v3191_v20 }
 0xda9   :  { %v3189_v21 = vpop.f32.mrf.mxu0 }
 0xe21   :  { %v3284_v22 = vpop.f32.mrf.mxu1 }
 0xe22   :  { %v3317_v43 = vadd.f32 %v3284_v22, %v5402_v48 }
 0xe24   :  { %3323 = vst [vmem:[#allocation11] sm:$0xff] %v3317_v43 }
 0xe27   :  { %v3298_v24 = vpop.f32.mrf.mxu2 }
 0xe28   :  { %v3318_v26 = vadd.f32 %v3298_v24, %v5405_v37  ;;  %v3312_v10 = vpop.f32.mrf.mxu3 }
 0xe29   :  { %v3319_v11 = vadd.f32 %v3312_v10, %v5399_v0  ;;  %v3286_v48 = vpop.f32.mrf.mxu1 }
 0xe2a   :  { %3324 = vst [vmem:[#allocation11 + $0x8] sm:$0xff] %v3318_v26  ;;  %v3320_v51 = vadd.f32 %v3286_v48, %v5408_v4 }
 0xe2b   :  { %3325 = vst [vmem:[#allocation11 + $0x10] sm:$0xff] %v3319_v11 }
 0xe2c   :  { %3326 = vst [vmem:[#allocation11 + $0x18] sm:$0xff] %v3320_v51 }
 0xe2f   :  { %v3300_v63 = vpop.f32.mrf.mxu2 }
 0xe30   :  { %v3321_v42 = vadd.f32 %v3300_v63, %v3065_v57  ;;  %v3314_v0 = vpop.f32.mrf.mxu3 }
 0xe31   :  { %v3322_v37 = vadd.f32 %v3314_v0, %v3066_v15 }
 0xe32   :  { %3327 = vst [vmem:[#allocation11 + $0x20] sm:$0xff] %v3321_v42 }
 0xe33   :  { %3328 = vst [vmem:[#allocation11 + $0x28] sm:$0xff] %v3322_v37 }
 0xe34   :  { %3341 = dma.vmem_to_hbm [thread:$0]  %s3334_s21, 768, %s3336_s24, [#allocation4], %s5051_s11, %s5051_s11, %s5052_s12  }
 0xe35   :  { %5044 = dma.done.wait [#allocation4], 768  }
 0xe36   :  { %5045 = vsyncadd [#allocation4], 4294966528 }
 0xe37   :  { %3346 = vsyncpa [#allocation3], 1 }
 0xe38   :  { %3347 = vsyncpa [#allocation6], 1 }
 0xe39   :  { %3348 = vsyncpa [#allocation9], 1 }
 0xe3a   :  { %3349 = vsyncpa [#allocation4], 1 }

</bundles_post_ra>
